<compile_context>
chip_gen: v7x
topology: tpu7x:2x2x1
jax: 0.10.0
libtpu: 0.0.40
codegen_flags: <defaults>
</compile_context>

<pallas_src>
import math

import jax
import jax.numpy as jnp
from jax.experimental import pallas as pl
from jax.experimental.pallas import tpu as pltpu

# ---------------- model hyper-parameters (small, synthetic) -----------------
B = 2              # per-field batch size
S = 8              # sequence length
H = 32             # hidden size
NH = 2             # attention heads
HD = H // NH       # head dim (16)
I = 64             # FFN intermediate size
L = 2              # transformer layers
VOCAB = 64
TYPE_VOCAB = 2
MAX_POS = 16
LN_EPS = 1e-12

SHARED_ENCODER = True     # args.shared_encoder
NO_PROJ = False           # args.no_proj

NB = 3 * B                # fused batch (q | c | neg) = 6
R = NB * S                # total rows folded into sublanes = 48

# w_attn blob slots (per layer, each (H, H))
A_WQ, A_WK, A_WV, A_WO = 0, 1, 2, 3
# vec32 blob rows (per layer, each (H,))
V_BQ, V_BK, V_BV, V_BO, V_B2, V_LN1G, V_LN1B, V_LN2G, V_LN2B = range(9)
NV = 9
# misc blob rows (each (H,))
M_EMB_G, M_EMB_B, M_PROJ_B, M_PROJ_LNG, M_PROJ_LNB = range(5)
NM = 5


def _layer_norm(x, g, b):
    """Two-pass LayerNorm over the last (real-width) axis."""
    mu = jnp.mean(x, axis=-1, keepdims=True)
    xc = x - mu
    var = jnp.mean(xc * xc, axis=-1, keepdims=True)
    return xc * jax.lax.rsqrt(var + LN_EPS) * g + b


def _retriever_kernel(emb_ref, mask_ref, wattn_ref, w1_ref, w2_ref,
                      vec_ref, b1_ref, misc_ref, projw_ref, out_ref):
    x = emb_ref[...].reshape(R, H)        # (48, 32) summed embeddings, f32
    add_mask = mask_ref[...]              # (48, 48) additive (cross-seq + pad) mask

    # embedding LayerNorm
    h = _layer_norm(x, misc_ref[M_EMB_G], misc_ref[M_EMB_B])

    # per-head lane masks over the 32 hidden lanes (built once, reused per layer)
    lane = jax.lax.broadcasted_iota(jnp.int32, (1, H), 1)
    head_masks = [((lane >= hh * HD) & (lane < (hh + 1) * HD)).astype(jnp.float32)
                  for hh in range(NH)]

    scale = 1.0 / math.sqrt(HD)
    for l in range(L):
        # ---- multi-head self-attention: one matmul per projection ----
        hb = h.astype(jnp.bfloat16)
        q = (jnp.dot(hb, wattn_ref[l, A_WQ], preferred_element_type=jnp.float32)
             + vec_ref[l, V_BQ]) * scale
        k = (jnp.dot(hb, wattn_ref[l, A_WK], preferred_element_type=jnp.float32)
             + vec_ref[l, V_BK])
        v = (jnp.dot(hb, wattn_ref[l, A_WV], preferred_element_type=jnp.float32)
             + vec_ref[l, V_BV])

        ctx = jnp.zeros((R, H), jnp.float32)
        for hm in head_masks:
            # lane-masking K restricts the full-lane dot to this head's lanes;
            # block-diagonal (48x48) scores + additive mask replace per-seq einsums
            kh = k * hm
            s = jnp.einsum('md,nd->mn', q, kh,
                           preferred_element_type=jnp.float32) + add_mask
            s = s - jnp.max(s, axis=-1, keepdims=True)
            p = jnp.exp(s)
            p = p * pl.reciprocal(jnp.sum(p, axis=-1, keepdims=True), approx=True)
            # masked V makes this head's context land in its own lane range
            ctx = ctx + jnp.dot(p, v * hm, preferred_element_type=jnp.float32)

        attn = (jnp.dot(ctx.astype(jnp.bfloat16), wattn_ref[l, A_WO],
                        preferred_element_type=jnp.float32) + vec_ref[l, V_BO])
        h = _layer_norm(h + attn, vec_ref[l, V_LN1G], vec_ref[l, V_LN1B])

        # ---- feed-forward ----
        ff = (jnp.dot(h.astype(jnp.bfloat16), w1_ref[l],
                      preferred_element_type=jnp.float32) + b1_ref[l])
        # TODO(synk): HF BERT default is the exact erf GELU; tanh approximation kept here.
        ff = jax.nn.gelu(ff)
        ff = (jnp.dot(ff.astype(jnp.bfloat16), w2_ref[l],
                      preferred_element_type=jnp.float32) + vec_ref[l, V_B2])
        h = _layer_norm(h + ff, vec_ref[l, V_LN2G], vec_ref[l, V_LN2B])

    # ---- CLS rows + projection head (Linear + LayerNorm) ----
    cls = h.reshape(NB, S, H)[:, 0, :]                       # (NB, H)
    if not NO_PROJ:
        cls = (jnp.dot(cls.astype(jnp.bfloat16), projw_ref[...],
                       preferred_element_type=jnp.float32) + misc_ref[M_PROJ_B])
        cls = _layer_norm(cls, misc_ref[M_PROJ_LNG], misc_ref[M_PROJ_LNB])
    out_ref[...] = cls


def _build_mask(attn_mask):
    """Combined additive attention mask: blocks cross-sequence attention and
    padded key positions (matches per-sequence BERT extended attention mask)."""
    flat_ok = attn_mask.reshape(-1) > 0                        # (R,)
    seq = jnp.arange(R, dtype=jnp.int32) // S
    allowed = (seq[:, None] == seq[None, :]) & flat_ok[None, :]
    return jnp.where(allowed, 0.0, -10000.0).astype(jnp.float32)


@jax.jit
def _encode_fused(input_ids, attn_mask, type_ids, packed):
    """Fused (q|c|neg) encoder + projection; returns CLS vectors (NB, H)."""
    pos_ids = jnp.arange(S)
    emb = (packed["word_emb"][input_ids]
           + packed["pos_emb"][pos_ids][None, :, :]
           + packed["type_emb"][type_ids])                     # (NB, S, H) f32
    add_mask = _build_mask(attn_mask)                          # (R, R) f32

    cls = pl.pallas_call(
        _retriever_kernel,
        out_shape=jax.ShapeDtypeStruct((NB, H), jnp.float32),
        grid_spec=pltpu.PrefetchScalarGridSpec(
            num_scalar_prefetch=0,
            grid=(1,),   # single step: one TC, no duplicated weight staging
            in_specs=[
                pl.BlockSpec((NB, S, H), lambda i: (0, 0, 0)),    # embeddings (real width)
                pl.BlockSpec((R, R), lambda i: (0, 0)),           # additive attention mask
                pl.BlockSpec((L, 4, H, H), lambda i: (0, 0, 0, 0)),  # Wq/Wk/Wv/Wo (bf16)
                pl.BlockSpec((L, H, I), lambda i: (0, 0, 0)),     # W1 (bf16)
                pl.BlockSpec((L, I, H), lambda i: (0, 0, 0)),     # W2 (bf16)
                pl.BlockSpec((L, NV, H), lambda i: (0, 0, 0)),    # layer bias / LN vectors
                pl.BlockSpec((L, I), lambda i: (0, 0)),           # FFN bias b1
                pl.BlockSpec((NM, H), lambda i: (0, 0)),          # emb-LN / proj vectors
                pl.BlockSpec((H, H), lambda i: (0, 0)),           # projection weight (bf16)
            ],
            out_specs=pl.BlockSpec((NB, H), lambda i: (0, 0)),
        ),
        compiler_params=pltpu.CompilerParams(
            dimension_semantics=("arbitrary",)),
    )(emb, add_mask, packed["w_attn"], packed["w_ffn1"], packed["w_ffn2"],
      packed["vec32"], packed["b1"], packed["misc"], packed["proj_w"])
    return cls


def single_retriever_forward(batch, packed):
    """Mirrors SingleRetriever.forward: q/c/neg CLS vectors through the shared
    encoder + projection head, fused into one Pallas launch."""
    # TODO(synk): shared_encoder=False would need a second (encoder_q) parameter
    # set; only the shared-encoder path is implemented here.
    ids = jnp.concatenate([batch["q_input_ids"], batch["c_input_ids"],
                           batch["neg_input_ids"]], axis=0)
    masks = jnp.concatenate([batch["q_mask"], batch["c_mask"],
                             batch["neg_mask"]], axis=0)
    types = jnp.concatenate([batch["q_type_ids"], batch["c_type_ids"],
                             batch["neg_type_ids"]], axis=0)
    cls = _encode_fused(ids, masks, types, packed)
    return {"q": cls[:B], "c": cls[B:2 * B], "neg_c": cls[2 * B:]}


def _init_params(key):
    ks = jax.random.split(key, 10)
    std = 0.02
    n = lambda k, shape: jax.random.normal(k, shape, jnp.float32) * std
    return {
        "word_emb": n(ks[0], (VOCAB, H)),
        "pos_emb": n(ks[1], (MAX_POS, H)),
        "type_emb": n(ks[2], (TYPE_VOCAB, H)),
        "emb_ln_g": jnp.ones((H,), jnp.float32),
        "emb_ln_b": jnp.zeros((H,), jnp.float32),
        "wq": n(ks[3], (L, H, H)), "bq": jnp.zeros((L, H), jnp.float32),
        "wk": n(ks[4], (L, H, H)), "bk": jnp.zeros((L, H), jnp.float32),
        "wv": n(ks[5], (L, H, H)), "bv": jnp.zeros((L, H), jnp.float32),
        "wo": n(ks[6], (L, H, H)), "bo": jnp.zeros((L, H), jnp.float32),
        "ln1_g": jnp.ones((L, H), jnp.float32),
        "ln1_b": jnp.zeros((L, H), jnp.float32),
        "w1": n(ks[7], (L, H, I)), "b1": jnp.zeros((L, I), jnp.float32),
        "w2": n(ks[8], (L, I, H)), "b2": jnp.zeros((L, H), jnp.float32),
        "ln2_g": jnp.ones((L, H), jnp.float32),
        "ln2_b": jnp.zeros((L, H), jnp.float32),
        "proj_w": n(ks[9], (H, H)),
        "proj_b": jnp.zeros((H,), jnp.float32),
        "proj_ln_g": jnp.ones((H,), jnp.float32),
        "proj_ln_b": jnp.zeros((H,), jnp.float32),
    }


def _pack_params(p):
    """Stack weights at their REAL widths; matmul weights in bf16 (halves the
    dominant weight DMA), biases / LN parameters / embeddings stay f32."""
    w_attn = jnp.stack([p["wq"], p["wk"], p["wv"], p["wo"]],
                       axis=1).astype(jnp.bfloat16)            # (L, 4, H, H)
    vec32 = jnp.stack([p["bq"], p["bk"], p["bv"], p["bo"], p["b2"],
                       p["ln1_g"], p["ln1_b"], p["ln2_g"], p["ln2_b"]],
                      axis=1)                                   # (L, NV, H)
    misc = jnp.stack([p["emb_ln_g"], p["emb_ln_b"], p["proj_b"],
                      p["proj_ln_g"], p["proj_ln_b"]], axis=0)  # (NM, H)
    return {
        "word_emb": p["word_emb"],
        "pos_emb": p["pos_emb"],
        "type_emb": p["type_emb"],
        "w_attn": w_attn,
        "w_ffn1": p["w1"].astype(jnp.bfloat16),                 # (L, H, I)
        "w_ffn2": p["w2"].astype(jnp.bfloat16),                 # (L, I, H)
        "vec32": vec32,
        "b1": p["b1"],                                          # (L, I)
        "misc": misc,
        "proj_w": p["proj_w"].astype(jnp.bfloat16),             # (H, H)
    }


if __name__ == "__main__":
    key = jax.random.PRNGKey(0)
    pkey, dkey = jax.random.split(key)
    packed = _pack_params(_init_params(pkey))

    id_keys = jax.random.split(dkey, 3)
    ones_mask = jnp.ones((B, S), jnp.int32)
    q_mask = ones_mask.at[:, -2:].set(0)      # a couple of padded positions
    batch = {
        "q_input_ids": jax.random.randint(id_keys[0], (B, S), 0, VOCAB, jnp.int32),
        "q_mask": q_mask,
        "q_type_ids": jnp.zeros((B, S), jnp.int32),
        "c_input_ids": jax.random.randint(id_keys[1], (B, S), 0, VOCAB, jnp.int32),
        "c_mask": ones_mask,
        "c_type_ids": jnp.zeros((B, S), jnp.int32),
        "neg_input_ids": jax.random.randint(id_keys[2], (B, S), 0, VOCAB, jnp.int32),
        "neg_mask": ones_mask,
        "neg_type_ids": jnp.zeros((B, S), jnp.int32),
    }

    out = single_retriever_forward(batch, packed)
    jax.block_until_ready(out)
    assert out["q"].shape == (B, H)
    assert out["c"].shape == (B, H)
    assert out["neg_c"].shape == (B, H)
    assert all(bool(jnp.all(jnp.isfinite(v))) for v in out.values())
    print("KERNEL_OK")
</pallas_src>

<mosaic_0001>
module attributes {stable_mosaic.version = 11 : i64} {
  func.func @_retriever_kernel(%arg0: i32, %arg1: memref<6x8x32xf32, #tpu.memory_space<vmem>>, %arg2: memref<48x48xf32, #tpu.memory_space<vmem>>, %arg3: memref<2x4x32x32xbf16, #tpu.memory_space<vmem>>, %arg4: memref<2x32x64xbf16, #tpu.memory_space<vmem>>, %arg5: memref<2x64x32xbf16, #tpu.memory_space<vmem>>, %arg6: memref<2x9x32xf32, #tpu.memory_space<vmem>>, %arg7: memref<2x64xf32, #tpu.memory_space<vmem>>, %arg8: memref<5x32xf32, #tpu.memory_space<vmem>>, %arg9: memref<32x32xbf16, #tpu.memory_space<vmem>>, %arg10: memref<6x32xf32, #tpu.memory_space<vmem>>) attributes {dimension_semantics = [#tpu.dimension_semantics<arbitrary>], iteration_bounds = array<i64: 1>, scalar_prefetch = 0 : i64, scratch_operands = 0 : i64, tpu.core_type = #tpu.core_type<tc>, window_params = [{pipeline_mode = #tpu.pipeline_mode<synchronous>, transform_indices = @transform_0, window_bounds = array<i64: 6, 8, 32>}, {pipeline_mode = #tpu.pipeline_mode<synchronous>, transform_indices = @transform_1, window_bounds = array<i64: 48, 48>}, {pipeline_mode = #tpu.pipeline_mode<synchronous>, transform_indices = @transform_2, window_bounds = array<i64: 2, 4, 32, 32>}, {pipeline_mode = #tpu.pipeline_mode<synchronous>, transform_indices = @transform_3, window_bounds = array<i64: 2, 32, 64>}, {pipeline_mode = #tpu.pipeline_mode<synchronous>, transform_indices = @transform_4, window_bounds = array<i64: 2, 64, 32>}, {pipeline_mode = #tpu.pipeline_mode<synchronous>, transform_indices = @transform_5, window_bounds = array<i64: 2, 9, 32>}, {pipeline_mode = #tpu.pipeline_mode<synchronous>, transform_indices = @transform_6, window_bounds = array<i64: 2, 64>}, {pipeline_mode = #tpu.pipeline_mode<synchronous>, transform_indices = @transform_7, window_bounds = array<i64: 5, 32>}, {pipeline_mode = #tpu.pipeline_mode<synchronous>, transform_indices = @transform_8, window_bounds = array<i64: 32, 32>}, {pipeline_mode = #tpu.pipeline_mode<synchronous>, transform_indices = @transform_9, window_bounds = array<i64: 6, 32>}]} {
    %c0 = arith.constant 0 : index
    %c0_0 = arith.constant 0 : index
    %c0_1 = arith.constant 0 : index
    %0 = vector.load %arg1[%c0, %c0_0, %c0_1] : memref<6x8x32xf32, #tpu.memory_space<vmem>>, vector<6x8x32xf32>
    %1 = vector.shape_cast %0 : vector<6x8x32xf32> to vector<48x32xf32>
    %c0_2 = arith.constant 0 : index
    %c0_3 = arith.constant 0 : index
    %2 = vector.load %arg2[%c0_2, %c0_3] : memref<48x48xf32, #tpu.memory_space<vmem>>, vector<48x48xf32>
    %c0_4 = arith.constant 0 : index
    %c0_5 = arith.constant 0 : index
    %3 = vector.load %arg8[%c0_4, %c0_5] : memref<5x32xf32, #tpu.memory_space<vmem>>, vector<1x32xf32>
    %4 = vector.shape_cast %3 : vector<1x32xf32> to vector<32xf32>
    %c1 = arith.constant 1 : index
    %c0_6 = arith.constant 0 : index
    %5 = vector.load %arg8[%c1, %c0_6] : memref<5x32xf32, #tpu.memory_space<vmem>>, vector<1x32xf32>
    %6 = vector.shape_cast %5 : vector<1x32xf32> to vector<32xf32>
    %cst = arith.constant dense<0.000000e+00> : vector<48xf32>
    %7 = vector.multi_reduction <add>, %1, %cst [1] : vector<48x32xf32> to vector<48xf32>
    %8 = vector.shape_cast %7 : vector<48xf32> to vector<48x1xf32>
    %cst_7 = arith.constant 3.200000e+01 : f32
    %9 = vector.broadcast %cst_7 : f32 to vector<48x1xf32>
    %10 = arith.divf %8, %9 : vector<48x1xf32>
    %11 = vector.broadcast %10 : vector<48x1xf32> to vector<48x32xf32>
    %12 = arith.subf %1, %11 : vector<48x32xf32>
    %13 = arith.mulf %12, %12 : vector<48x32xf32>
    %cst_8 = arith.constant dense<0.000000e+00> : vector<48xf32>
    %14 = vector.multi_reduction <add>, %13, %cst_8 [1] : vector<48x32xf32> to vector<48xf32>
    %15 = vector.shape_cast %14 : vector<48xf32> to vector<48x1xf32>
    %cst_9 = arith.constant 3.200000e+01 : f32
    %16 = vector.broadcast %cst_9 : f32 to vector<48x1xf32>
    %17 = arith.divf %15, %16 : vector<48x1xf32>
    %cst_10 = arith.constant 9.99999996E-13 : f32
    %18 = vector.broadcast %cst_10 : f32 to vector<48x1xf32>
    %19 = arith.addf %17, %18 : vector<48x1xf32>
    %20 = math.rsqrt %19 : vector<48x1xf32>
    %21 = vector.broadcast %20 : vector<48x1xf32> to vector<48x32xf32>
    %22 = arith.mulf %12, %21 : vector<48x32xf32>
    %23 = vector.shape_cast %4 : vector<32xf32> to vector<1x32xf32>
    %24 = vector.broadcast %23 : vector<1x32xf32> to vector<48x32xf32>
    %25 = arith.mulf %22, %24 : vector<48x32xf32>
    %26 = vector.shape_cast %6 : vector<32xf32> to vector<1x32xf32>
    %27 = vector.broadcast %26 : vector<1x32xf32> to vector<48x32xf32>
    %28 = arith.addf %25, %27 : vector<48x32xf32>
    %29 = tpu.iota {dimensions = array<i32: 1>} : vector<1x32xi32>
    %c0_i32 = arith.constant 0 : i32
    %30 = vector.broadcast %c0_i32 : i32 to vector<1x32xi32>
    %31 = arith.cmpi sge, %29, %30 : vector<1x32xi32>
    %c16_i32 = arith.constant 16 : i32
    %32 = vector.broadcast %c16_i32 : i32 to vector<1x32xi32>
    %33 = arith.cmpi slt, %29, %32 : vector<1x32xi32>
    %34 = arith.andi %31, %33 : vector<1x32xi1>
    %35 = arith.extui %34 : vector<1x32xi1> to vector<1x32xi32>
    %36 = arith.sitofp %35 : vector<1x32xi32> to vector<1x32xf32>
    %c16_i32_11 = arith.constant 16 : i32
    %37 = vector.broadcast %c16_i32_11 : i32 to vector<1x32xi32>
    %38 = arith.cmpi sge, %29, %37 : vector<1x32xi32>
    %c32_i32 = arith.constant 32 : i32
    %39 = vector.broadcast %c32_i32 : i32 to vector<1x32xi32>
    %40 = arith.cmpi slt, %29, %39 : vector<1x32xi32>
    %41 = arith.andi %38, %40 : vector<1x32xi1>
    %42 = arith.extui %41 : vector<1x32xi1> to vector<1x32xi32>
    %43 = arith.sitofp %42 : vector<1x32xi32> to vector<1x32xf32>
    %44 = arith.truncf %28 : vector<48x32xf32> to vector<48x32xbf16>
    %c0_12 = arith.constant 0 : index
    %c0_13 = arith.constant 0 : index
    %c0_14 = arith.constant 0 : index
    %c0_15 = arith.constant 0 : index
    %45 = vector.load %arg3[%c0_12, %c0_13, %c0_14, %c0_15] : memref<2x4x32x32xbf16, #tpu.memory_space<vmem>>, vector<1x1x32x32xbf16>
    %46 = vector.shape_cast %45 : vector<1x1x32x32xbf16> to vector<32x32xbf16>
    %cst_16 = arith.constant dense<0.000000e+00> : vector<48x32xf32>
    %47 = tpu.matmul %44, %46, %cst_16 {dimension_numbers = #tpu.dot_dimension_numbers<[1], [0], [0], [1], [0, 0, 1, 1], [], []>} : vector<48x32xbf16>, vector<32x32xbf16>, vector<48x32xf32> -> vector<48x32xf32>
    %c0_17 = arith.constant 0 : index
    %c0_18 = arith.constant 0 : index
    %c0_19 = arith.constant 0 : index
    %48 = vector.load %arg6[%c0_17, %c0_18, %c0_19] : memref<2x9x32xf32, #tpu.memory_space<vmem>>, vector<1x1x32xf32>
    %49 = vector.shape_cast %48 : vector<1x1x32xf32> to vector<32xf32>
    %50 = vector.shape_cast %49 : vector<32xf32> to vector<1x32xf32>
    %51 = vector.broadcast %50 : vector<1x32xf32> to vector<48x32xf32>
    %52 = arith.addf %47, %51 : vector<48x32xf32>
    %cst_20 = arith.constant 2.500000e-01 : f32
    %53 = vector.broadcast %cst_20 : f32 to vector<48x32xf32>
    %54 = arith.mulf %52, %53 : vector<48x32xf32>
    %c0_21 = arith.constant 0 : index
    %c1_22 = arith.constant 1 : index
    %c0_23 = arith.constant 0 : index
    %c0_24 = arith.constant 0 : index
    %55 = vector.load %arg3[%c0_21, %c1_22, %c0_23, %c0_24] : memref<2x4x32x32xbf16, #tpu.memory_space<vmem>>, vector<1x1x32x32xbf16>
    %56 = vector.shape_cast %55 : vector<1x1x32x32xbf16> to vector<32x32xbf16>
    %cst_25 = arith.constant dense<0.000000e+00> : vector<48x32xf32>
    %57 = tpu.matmul %44, %56, %cst_25 {dimension_numbers = #tpu.dot_dimension_numbers<[1], [0], [0], [1], [0, 0, 1, 1], [], []>} : vector<48x32xbf16>, vector<32x32xbf16>, vector<48x32xf32> -> vector<48x32xf32>
    %c0_26 = arith.constant 0 : index
    %c1_27 = arith.constant 1 : index
    %c0_28 = arith.constant 0 : index
    %58 = vector.load %arg6[%c0_26, %c1_27, %c0_28] : memref<2x9x32xf32, #tpu.memory_space<vmem>>, vector<1x1x32xf32>
    %59 = vector.shape_cast %58 : vector<1x1x32xf32> to vector<32xf32>
    %60 = vector.shape_cast %59 : vector<32xf32> to vector<1x32xf32>
    %61 = vector.broadcast %60 : vector<1x32xf32> to vector<48x32xf32>
    %62 = arith.addf %57, %61 : vector<48x32xf32>
    %c0_29 = arith.constant 0 : index
    %c2 = arith.constant 2 : index
    %c0_30 = arith.constant 0 : index
    %c0_31 = arith.constant 0 : index
    %63 = vector.load %arg3[%c0_29, %c2, %c0_30, %c0_31] : memref<2x4x32x32xbf16, #tpu.memory_space<vmem>>, vector<1x1x32x32xbf16>
    %64 = vector.shape_cast %63 : vector<1x1x32x32xbf16> to vector<32x32xbf16>
    %cst_32 = arith.constant dense<0.000000e+00> : vector<48x32xf32>
    %65 = tpu.matmul %44, %64, %cst_32 {dimension_numbers = #tpu.dot_dimension_numbers<[1], [0], [0], [1], [0, 0, 1, 1], [], []>} : vector<48x32xbf16>, vector<32x32xbf16>, vector<48x32xf32> -> vector<48x32xf32>
    %c0_33 = arith.constant 0 : index
    %c2_34 = arith.constant 2 : index
    %c0_35 = arith.constant 0 : index
    %66 = vector.load %arg6[%c0_33, %c2_34, %c0_35] : memref<2x9x32xf32, #tpu.memory_space<vmem>>, vector<1x1x32xf32>
    %67 = vector.shape_cast %66 : vector<1x1x32xf32> to vector<32xf32>
    %68 = vector.shape_cast %67 : vector<32xf32> to vector<1x32xf32>
    %69 = vector.broadcast %68 : vector<1x32xf32> to vector<48x32xf32>
    %70 = arith.addf %65, %69 : vector<48x32xf32>
    %cst_36 = arith.constant 0.000000e+00 : f32
    %71 = vector.broadcast %cst_36 : f32 to vector<48x32xf32>
    %72 = vector.broadcast %36 : vector<1x32xf32> to vector<48x32xf32>
    %73 = arith.mulf %62, %72 : vector<48x32xf32>
    "tpu.trace_start"() <{level = 10 : i32, message = "md,nd->mn"}> : () -> ()
    %cst_37 = arith.constant dense<0.000000e+00> : vector<48x48xf32>
    %74 = tpu.matmul %54, %73, %cst_37 {dimension_numbers = #tpu.dot_dimension_numbers<[1], [1], [0], [0], [0, 0, 1, 0], [], []>} : vector<48x32xf32>, vector<48x32xf32>, vector<48x48xf32> -> vector<48x48xf32>
    "tpu.trace_stop"() : () -> ()
    %75 = arith.addf %74, %2 : vector<48x48xf32>
    %cst_38 = arith.constant dense<0xFF800000> : vector<48xf32>
    %76 = vector.multi_reduction <maximumf>, %75, %cst_38 [1] : vector<48x48xf32> to vector<48xf32>
    %77 = vector.shape_cast %76 : vector<48xf32> to vector<48x1xf32>
    %78 = vector.broadcast %77 : vector<48x1xf32> to vector<48x48xf32>
    %79 = arith.subf %75, %78 : vector<48x48xf32>
    %80 = math.exp %79 : vector<48x48xf32>
    %cst_39 = arith.constant dense<0.000000e+00> : vector<48xf32>
    %81 = vector.multi_reduction <add>, %80, %cst_39 [1] : vector<48x48xf32> to vector<48xf32>
    %82 = vector.shape_cast %81 : vector<48xf32> to vector<48x1xf32>
    %83 = tpu.reciprocal %82 {approx = true} : vector<48x1xf32> -> vector<48x1xf32>
    %84 = vector.broadcast %83 : vector<48x1xf32> to vector<48x48xf32>
    %85 = arith.mulf %80, %84 : vector<48x48xf32>
    %86 = vector.broadcast %36 : vector<1x32xf32> to vector<48x32xf32>
    %87 = arith.mulf %70, %86 : vector<48x32xf32>
    %cst_40 = arith.constant dense<0.000000e+00> : vector<48x32xf32>
    %88 = tpu.matmul %85, %87, %cst_40 {dimension_numbers = #tpu.dot_dimension_numbers<[1], [0], [0], [1], [0, 0, 1, 1], [], []>} : vector<48x48xf32>, vector<48x32xf32>, vector<48x32xf32> -> vector<48x32xf32>
    %89 = arith.addf %71, %88 : vector<48x32xf32>
    %90 = vector.broadcast %43 : vector<1x32xf32> to vector<48x32xf32>
    %91 = arith.mulf %62, %90 : vector<48x32xf32>
    "tpu.trace_start"() <{level = 10 : i32, message = "md,nd->mn"}> : () -> ()
    %cst_41 = arith.constant dense<0.000000e+00> : vector<48x48xf32>
    %92 = tpu.matmul %54, %91, %cst_41 {dimension_numbers = #tpu.dot_dimension_numbers<[1], [1], [0], [0], [0, 0, 1, 0], [], []>} : vector<48x32xf32>, vector<48x32xf32>, vector<48x48xf32> -> vector<48x48xf32>
    "tpu.trace_stop"() : () -> ()
    %93 = arith.addf %92, %2 : vector<48x48xf32>
    %cst_42 = arith.constant dense<0xFF800000> : vector<48xf32>
    %94 = vector.multi_reduction <maximumf>, %93, %cst_42 [1] : vector<48x48xf32> to vector<48xf32>
    %95 = vector.shape_cast %94 : vector<48xf32> to vector<48x1xf32>
    %96 = vector.broadcast %95 : vector<48x1xf32> to vector<48x48xf32>
    %97 = arith.subf %93, %96 : vector<48x48xf32>
    %98 = math.exp %97 : vector<48x48xf32>
    %cst_43 = arith.constant dense<0.000000e+00> : vector<48xf32>
    %99 = vector.multi_reduction <add>, %98, %cst_43 [1] : vector<48x48xf32> to vector<48xf32>
    %100 = vector.shape_cast %99 : vector<48xf32> to vector<48x1xf32>
    %101 = tpu.reciprocal %100 {approx = true} : vector<48x1xf32> -> vector<48x1xf32>
    %102 = vector.broadcast %101 : vector<48x1xf32> to vector<48x48xf32>
    %103 = arith.mulf %98, %102 : vector<48x48xf32>
    %104 = vector.broadcast %43 : vector<1x32xf32> to vector<48x32xf32>
    %105 = arith.mulf %70, %104 : vector<48x32xf32>
    %cst_44 = arith.constant dense<0.000000e+00> : vector<48x32xf32>
    %106 = tpu.matmul %103, %105, %cst_44 {dimension_numbers = #tpu.dot_dimension_numbers<[1], [0], [0], [1], [0, 0, 1, 1], [], []>} : vector<48x48xf32>, vector<48x32xf32>, vector<48x32xf32> -> vector<48x32xf32>
    %107 = arith.addf %89, %106 : vector<48x32xf32>
    %108 = arith.truncf %107 : vector<48x32xf32> to vector<48x32xbf16>
    %c0_45 = arith.constant 0 : index
    %c3 = arith.constant 3 : index
    %c0_46 = arith.constant 0 : index
    %c0_47 = arith.constant 0 : index
    %109 = vector.load %arg3[%c0_45, %c3, %c0_46, %c0_47] : memref<2x4x32x32xbf16, #tpu.memory_space<vmem>>, vector<1x1x32x32xbf16>
    %110 = vector.shape_cast %109 : vector<1x1x32x32xbf16> to vector<32x32xbf16>
    %cst_48 = arith.constant dense<0.000000e+00> : vector<48x32xf32>
    %111 = tpu.matmul %108, %110, %cst_48 {dimension_numbers = #tpu.dot_dimension_numbers<[1], [0], [0], [1], [0, 0, 1, 1], [], []>} : vector<48x32xbf16>, vector<32x32xbf16>, vector<48x32xf32> -> vector<48x32xf32>
    %c0_49 = arith.constant 0 : index
    %c3_50 = arith.constant 3 : index
    %c0_51 = arith.constant 0 : index
    %112 = vector.load %arg6[%c0_49, %c3_50, %c0_51] : memref<2x9x32xf32, #tpu.memory_space<vmem>>, vector<1x1x32xf32>
    %113 = vector.shape_cast %112 : vector<1x1x32xf32> to vector<32xf32>
    %114 = vector.shape_cast %113 : vector<32xf32> to vector<1x32xf32>
    %115 = vector.broadcast %114 : vector<1x32xf32> to vector<48x32xf32>
    %116 = arith.addf %111, %115 : vector<48x32xf32>
    %117 = arith.addf %28, %116 : vector<48x32xf32>
    %c0_52 = arith.constant 0 : index
    %c5 = arith.constant 5 : index
    %c0_53 = arith.constant 0 : index
    %118 = vector.load %arg6[%c0_52, %c5, %c0_53] : memref<2x9x32xf32, #tpu.memory_space<vmem>>, vector<1x1x32xf32>
    %119 = vector.shape_cast %118 : vector<1x1x32xf32> to vector<32xf32>
    %c0_54 = arith.constant 0 : index
    %c6 = arith.constant 6 : index
    %c0_55 = arith.constant 0 : index
    %120 = vector.load %arg6[%c0_54, %c6, %c0_55] : memref<2x9x32xf32, #tpu.memory_space<vmem>>, vector<1x1x32xf32>
    %121 = vector.shape_cast %120 : vector<1x1x32xf32> to vector<32xf32>
    %cst_56 = arith.constant dense<0.000000e+00> : vector<48xf32>
    %122 = vector.multi_reduction <add>, %117, %cst_56 [1] : vector<48x32xf32> to vector<48xf32>
    %123 = vector.shape_cast %122 : vector<48xf32> to vector<48x1xf32>
    %cst_57 = arith.constant 3.200000e+01 : f32
    %124 = vector.broadcast %cst_57 : f32 to vector<48x1xf32>
    %125 = arith.divf %123, %124 : vector<48x1xf32>
    %126 = vector.broadcast %125 : vector<48x1xf32> to vector<48x32xf32>
    %127 = arith.subf %117, %126 : vector<48x32xf32>
    %128 = arith.mulf %127, %127 : vector<48x32xf32>
    %cst_58 = arith.constant dense<0.000000e+00> : vector<48xf32>
    %129 = vector.multi_reduction <add>, %128, %cst_58 [1] : vector<48x32xf32> to vector<48xf32>
    %130 = vector.shape_cast %129 : vector<48xf32> to vector<48x1xf32>
    %cst_59 = arith.constant 3.200000e+01 : f32
    %131 = vector.broadcast %cst_59 : f32 to vector<48x1xf32>
    %132 = arith.divf %130, %131 : vector<48x1xf32>
    %cst_60 = arith.constant 9.99999996E-13 : f32
    %133 = vector.broadcast %cst_60 : f32 to vector<48x1xf32>
    %134 = arith.addf %132, %133 : vector<48x1xf32>
    %135 = math.rsqrt %134 : vector<48x1xf32>
    %136 = vector.broadcast %135 : vector<48x1xf32> to vector<48x32xf32>
    %137 = arith.mulf %127, %136 : vector<48x32xf32>
    %138 = vector.shape_cast %119 : vector<32xf32> to vector<1x32xf32>
    %139 = vector.broadcast %138 : vector<1x32xf32> to vector<48x32xf32>
    %140 = arith.mulf %137, %139 : vector<48x32xf32>
    %141 = vector.shape_cast %121 : vector<32xf32> to vector<1x32xf32>
    %142 = vector.broadcast %141 : vector<1x32xf32> to vector<48x32xf32>
    %143 = arith.addf %140, %142 : vector<48x32xf32>
    %144 = arith.truncf %143 : vector<48x32xf32> to vector<48x32xbf16>
    %c0_61 = arith.constant 0 : index
    %c0_62 = arith.constant 0 : index
    %c0_63 = arith.constant 0 : index
    %145 = vector.load %arg4[%c0_61, %c0_62, %c0_63] : memref<2x32x64xbf16, #tpu.memory_space<vmem>>, vector<1x32x64xbf16>
    %146 = vector.shape_cast %145 : vector<1x32x64xbf16> to vector<32x64xbf16>
    %cst_64 = arith.constant dense<0.000000e+00> : vector<48x64xf32>
    %147 = tpu.matmul %144, %146, %cst_64 {dimension_numbers = #tpu.dot_dimension_numbers<[1], [0], [0], [1], [0, 0, 1, 1], [], []>} : vector<48x32xbf16>, vector<32x64xbf16>, vector<48x64xf32> -> vector<48x64xf32>
    %c0_65 = arith.constant 0 : index
    %c0_66 = arith.constant 0 : index
    %148 = vector.load %arg7[%c0_65, %c0_66] : memref<2x64xf32, #tpu.memory_space<vmem>>, vector<1x64xf32>
    %149 = vector.shape_cast %148 : vector<1x64xf32> to vector<64xf32>
    %150 = vector.shape_cast %149 : vector<64xf32> to vector<1x64xf32>
    %151 = vector.broadcast %150 : vector<1x64xf32> to vector<48x64xf32>
    %152 = arith.addf %147, %151 : vector<48x64xf32>
    %153 = arith.mulf %152, %152 : vector<48x64xf32>
    %154 = arith.mulf %152, %153 : vector<48x64xf32>
    %cst_67 = arith.constant 4.471500e-02 : f32
    %155 = vector.broadcast %cst_67 : f32 to vector<48x64xf32>
    %156 = arith.mulf %155, %154 : vector<48x64xf32>
    %157 = arith.addf %152, %156 : vector<48x64xf32>
    %cst_68 = arith.constant 0.797884583 : f32
    %158 = vector.broadcast %cst_68 : f32 to vector<48x64xf32>
    %159 = arith.mulf %158, %157 : vector<48x64xf32>
    %160 = math.tanh %159 : vector<48x64xf32>
    %cst_69 = arith.constant 1.000000e+00 : f32
    %161 = vector.broadcast %cst_69 : f32 to vector<48x64xf32>
    %162 = arith.addf %161, %160 : vector<48x64xf32>
    %cst_70 = arith.constant 5.000000e-01 : f32
    %163 = vector.broadcast %cst_70 : f32 to vector<48x64xf32>
    %164 = arith.mulf %163, %162 : vector<48x64xf32>
    %165 = arith.mulf %152, %164 : vector<48x64xf32>
    %166 = arith.truncf %165 : vector<48x64xf32> to vector<48x64xbf16>
    %c0_71 = arith.constant 0 : index
    %c0_72 = arith.constant 0 : index
    %c0_73 = arith.constant 0 : index
    %167 = vector.load %arg5[%c0_71, %c0_72, %c0_73] : memref<2x64x32xbf16, #tpu.memory_space<vmem>>, vector<1x64x32xbf16>
    %168 = vector.shape_cast %167 : vector<1x64x32xbf16> to vector<64x32xbf16>
    %cst_74 = arith.constant dense<0.000000e+00> : vector<48x32xf32>
    %169 = tpu.matmul %166, %168, %cst_74 {dimension_numbers = #tpu.dot_dimension_numbers<[1], [0], [0], [1], [0, 0, 1, 1], [], []>} : vector<48x64xbf16>, vector<64x32xbf16>, vector<48x32xf32> -> vector<48x32xf32>
    %c0_75 = arith.constant 0 : index
    %c4 = arith.constant 4 : index
    %c0_76 = arith.constant 0 : index
    %170 = vector.load %arg6[%c0_75, %c4, %c0_76] : memref<2x9x32xf32, #tpu.memory_space<vmem>>, vector<1x1x32xf32>
    %171 = vector.shape_cast %170 : vector<1x1x32xf32> to vector<32xf32>
    %172 = vector.shape_cast %171 : vector<32xf32> to vector<1x32xf32>
    %173 = vector.broadcast %172 : vector<1x32xf32> to vector<48x32xf32>
    %174 = arith.addf %169, %173 : vector<48x32xf32>
    %175 = arith.addf %143, %174 : vector<48x32xf32>
    %c0_77 = arith.constant 0 : index
    %c7 = arith.constant 7 : index
    %c0_78 = arith.constant 0 : index
    %176 = vector.load %arg6[%c0_77, %c7, %c0_78] : memref<2x9x32xf32, #tpu.memory_space<vmem>>, vector<1x1x32xf32>
    %177 = vector.shape_cast %176 : vector<1x1x32xf32> to vector<32xf32>
    %c0_79 = arith.constant 0 : index
    %c8 = arith.constant 8 : index
    %c0_80 = arith.constant 0 : index
    %178 = vector.load %arg6[%c0_79, %c8, %c0_80] : memref<2x9x32xf32, #tpu.memory_space<vmem>>, vector<1x1x32xf32>
    %179 = vector.shape_cast %178 : vector<1x1x32xf32> to vector<32xf32>
    %cst_81 = arith.constant dense<0.000000e+00> : vector<48xf32>
    %180 = vector.multi_reduction <add>, %175, %cst_81 [1] : vector<48x32xf32> to vector<48xf32>
    %181 = vector.shape_cast %180 : vector<48xf32> to vector<48x1xf32>
    %cst_82 = arith.constant 3.200000e+01 : f32
    %182 = vector.broadcast %cst_82 : f32 to vector<48x1xf32>
    %183 = arith.divf %181, %182 : vector<48x1xf32>
    %184 = vector.broadcast %183 : vector<48x1xf32> to vector<48x32xf32>
    %185 = arith.subf %175, %184 : vector<48x32xf32>
    %186 = arith.mulf %185, %185 : vector<48x32xf32>
    %cst_83 = arith.constant dense<0.000000e+00> : vector<48xf32>
    %187 = vector.multi_reduction <add>, %186, %cst_83 [1] : vector<48x32xf32> to vector<48xf32>
    %188 = vector.shape_cast %187 : vector<48xf32> to vector<48x1xf32>
    %cst_84 = arith.constant 3.200000e+01 : f32
    %189 = vector.broadcast %cst_84 : f32 to vector<48x1xf32>
    %190 = arith.divf %188, %189 : vector<48x1xf32>
    %cst_85 = arith.constant 9.99999996E-13 : f32
    %191 = vector.broadcast %cst_85 : f32 to vector<48x1xf32>
    %192 = arith.addf %190, %191 : vector<48x1xf32>
    %193 = math.rsqrt %192 : vector<48x1xf32>
    %194 = vector.broadcast %193 : vector<48x1xf32> to vector<48x32xf32>
    %195 = arith.mulf %185, %194 : vector<48x32xf32>
    %196 = vector.shape_cast %177 : vector<32xf32> to vector<1x32xf32>
    %197 = vector.broadcast %196 : vector<1x32xf32> to vector<48x32xf32>
    %198 = arith.mulf %195, %197 : vector<48x32xf32>
    %199 = vector.shape_cast %179 : vector<32xf32> to vector<1x32xf32>
    %200 = vector.broadcast %199 : vector<1x32xf32> to vector<48x32xf32>
    %201 = arith.addf %198, %200 : vector<48x32xf32>
    %202 = arith.truncf %201 : vector<48x32xf32> to vector<48x32xbf16>
    %c1_86 = arith.constant 1 : index
    %c0_87 = arith.constant 0 : index
    %c0_88 = arith.constant 0 : index
    %c0_89 = arith.constant 0 : index
    %203 = vector.load %arg3[%c1_86, %c0_87, %c0_88, %c0_89] : memref<2x4x32x32xbf16, #tpu.memory_space<vmem>>, vector<1x1x32x32xbf16>
    %204 = vector.shape_cast %203 : vector<1x1x32x32xbf16> to vector<32x32xbf16>
    %cst_90 = arith.constant dense<0.000000e+00> : vector<48x32xf32>
    %205 = tpu.matmul %202, %204, %cst_90 {dimension_numbers = #tpu.dot_dimension_numbers<[1], [0], [0], [1], [0, 0, 1, 1], [], []>} : vector<48x32xbf16>, vector<32x32xbf16>, vector<48x32xf32> -> vector<48x32xf32>
    %c1_91 = arith.constant 1 : index
    %c0_92 = arith.constant 0 : index
    %c0_93 = arith.constant 0 : index
    %206 = vector.load %arg6[%c1_91, %c0_92, %c0_93] : memref<2x9x32xf32, #tpu.memory_space<vmem>>, vector<1x1x32xf32>
    %207 = vector.shape_cast %206 : vector<1x1x32xf32> to vector<32xf32>
    %208 = vector.shape_cast %207 : vector<32xf32> to vector<1x32xf32>
    %209 = vector.broadcast %208 : vector<1x32xf32> to vector<48x32xf32>
    %210 = arith.addf %205, %209 : vector<48x32xf32>
    %cst_94 = arith.constant 2.500000e-01 : f32
    %211 = vector.broadcast %cst_94 : f32 to vector<48x32xf32>
    %212 = arith.mulf %210, %211 : vector<48x32xf32>
    %c1_95 = arith.constant 1 : index
    %c1_96 = arith.constant 1 : index
    %c0_97 = arith.constant 0 : index
    %c0_98 = arith.constant 0 : index
    %213 = vector.load %arg3[%c1_95, %c1_96, %c0_97, %c0_98] : memref<2x4x32x32xbf16, #tpu.memory_space<vmem>>, vector<1x1x32x32xbf16>
    %214 = vector.shape_cast %213 : vector<1x1x32x32xbf16> to vector<32x32xbf16>
    %cst_99 = arith.constant dense<0.000000e+00> : vector<48x32xf32>
    %215 = tpu.matmul %202, %214, %cst_99 {dimension_numbers = #tpu.dot_dimension_numbers<[1], [0], [0], [1], [0, 0, 1, 1], [], []>} : vector<48x32xbf16>, vector<32x32xbf16>, vector<48x32xf32> -> vector<48x32xf32>
    %c1_100 = arith.constant 1 : index
    %c1_101 = arith.constant 1 : index
    %c0_102 = arith.constant 0 : index
    %216 = vector.load %arg6[%c1_100, %c1_101, %c0_102] : memref<2x9x32xf32, #tpu.memory_space<vmem>>, vector<1x1x32xf32>
    %217 = vector.shape_cast %216 : vector<1x1x32xf32> to vector<32xf32>
    %218 = vector.shape_cast %217 : vector<32xf32> to vector<1x32xf32>
    %219 = vector.broadcast %218 : vector<1x32xf32> to vector<48x32xf32>
    %220 = arith.addf %215, %219 : vector<48x32xf32>
    %c1_103 = arith.constant 1 : index
    %c2_104 = arith.constant 2 : index
    %c0_105 = arith.constant 0 : index
    %c0_106 = arith.constant 0 : index
    %221 = vector.load %arg3[%c1_103, %c2_104, %c0_105, %c0_106] : memref<2x4x32x32xbf16, #tpu.memory_space<vmem>>, vector<1x1x32x32xbf16>
    %222 = vector.shape_cast %221 : vector<1x1x32x32xbf16> to vector<32x32xbf16>
    %cst_107 = arith.constant dense<0.000000e+00> : vector<48x32xf32>
    %223 = tpu.matmul %202, %222, %cst_107 {dimension_numbers = #tpu.dot_dimension_numbers<[1], [0], [0], [1], [0, 0, 1, 1], [], []>} : vector<48x32xbf16>, vector<32x32xbf16>, vector<48x32xf32> -> vector<48x32xf32>
    %c1_108 = arith.constant 1 : index
    %c2_109 = arith.constant 2 : index
    %c0_110 = arith.constant 0 : index
    %224 = vector.load %arg6[%c1_108, %c2_109, %c0_110] : memref<2x9x32xf32, #tpu.memory_space<vmem>>, vector<1x1x32xf32>
    %225 = vector.shape_cast %224 : vector<1x1x32xf32> to vector<32xf32>
    %226 = vector.shape_cast %225 : vector<32xf32> to vector<1x32xf32>
    %227 = vector.broadcast %226 : vector<1x32xf32> to vector<48x32xf32>
    %228 = arith.addf %223, %227 : vector<48x32xf32>
    %cst_111 = arith.constant 0.000000e+00 : f32
    %229 = vector.broadcast %cst_111 : f32 to vector<48x32xf32>
    %230 = vector.broadcast %36 : vector<1x32xf32> to vector<48x32xf32>
    %231 = arith.mulf %220, %230 : vector<48x32xf32>
    "tpu.trace_start"() <{level = 10 : i32, message = "md,nd->mn"}> : () -> ()
    %cst_112 = arith.constant dense<0.000000e+00> : vector<48x48xf32>
    %232 = tpu.matmul %212, %231, %cst_112 {dimension_numbers = #tpu.dot_dimension_numbers<[1], [1], [0], [0], [0, 0, 1, 0], [], []>} : vector<48x32xf32>, vector<48x32xf32>, vector<48x48xf32> -> vector<48x48xf32>
    "tpu.trace_stop"() : () -> ()
    %233 = arith.addf %232, %2 : vector<48x48xf32>
    %cst_113 = arith.constant dense<0xFF800000> : vector<48xf32>
    %234 = vector.multi_reduction <maximumf>, %233, %cst_113 [1] : vector<48x48xf32> to vector<48xf32>
    %235 = vector.shape_cast %234 : vector<48xf32> to vector<48x1xf32>
    %236 = vector.broadcast %235 : vector<48x1xf32> to vector<48x48xf32>
    %237 = arith.subf %233, %236 : vector<48x48xf32>
    %238 = math.exp %237 : vector<48x48xf32>
    %cst_114 = arith.constant dense<0.000000e+00> : vector<48xf32>
    %239 = vector.multi_reduction <add>, %238, %cst_114 [1] : vector<48x48xf32> to vector<48xf32>
    %240 = vector.shape_cast %239 : vector<48xf32> to vector<48x1xf32>
    %241 = tpu.reciprocal %240 {approx = true} : vector<48x1xf32> -> vector<48x1xf32>
    %242 = vector.broadcast %241 : vector<48x1xf32> to vector<48x48xf32>
    %243 = arith.mulf %238, %242 : vector<48x48xf32>
    %244 = vector.broadcast %36 : vector<1x32xf32> to vector<48x32xf32>
    %245 = arith.mulf %228, %244 : vector<48x32xf32>
    %cst_115 = arith.constant dense<0.000000e+00> : vector<48x32xf32>
    %246 = tpu.matmul %243, %245, %cst_115 {dimension_numbers = #tpu.dot_dimension_numbers<[1], [0], [0], [1], [0, 0, 1, 1], [], []>} : vector<48x48xf32>, vector<48x32xf32>, vector<48x32xf32> -> vector<48x32xf32>
    %247 = arith.addf %229, %246 : vector<48x32xf32>
    %248 = vector.broadcast %43 : vector<1x32xf32> to vector<48x32xf32>
    %249 = arith.mulf %220, %248 : vector<48x32xf32>
    "tpu.trace_start"() <{level = 10 : i32, message = "md,nd->mn"}> : () -> ()
    %cst_116 = arith.constant dense<0.000000e+00> : vector<48x48xf32>
    %250 = tpu.matmul %212, %249, %cst_116 {dimension_numbers = #tpu.dot_dimension_numbers<[1], [1], [0], [0], [0, 0, 1, 0], [], []>} : vector<48x32xf32>, vector<48x32xf32>, vector<48x48xf32> -> vector<48x48xf32>
    "tpu.trace_stop"() : () -> ()
    %251 = arith.addf %250, %2 : vector<48x48xf32>
    %cst_117 = arith.constant dense<0xFF800000> : vector<48xf32>
    %252 = vector.multi_reduction <maximumf>, %251, %cst_117 [1] : vector<48x48xf32> to vector<48xf32>
    %253 = vector.shape_cast %252 : vector<48xf32> to vector<48x1xf32>
    %254 = vector.broadcast %253 : vector<48x1xf32> to vector<48x48xf32>
    %255 = arith.subf %251, %254 : vector<48x48xf32>
    %256 = math.exp %255 : vector<48x48xf32>
    %cst_118 = arith.constant dense<0.000000e+00> : vector<48xf32>
    %257 = vector.multi_reduction <add>, %256, %cst_118 [1] : vector<48x48xf32> to vector<48xf32>
    %258 = vector.shape_cast %257 : vector<48xf32> to vector<48x1xf32>
    %259 = tpu.reciprocal %258 {approx = true} : vector<48x1xf32> -> vector<48x1xf32>
    %260 = vector.broadcast %259 : vector<48x1xf32> to vector<48x48xf32>
    %261 = arith.mulf %256, %260 : vector<48x48xf32>
    %262 = vector.broadcast %43 : vector<1x32xf32> to vector<48x32xf32>
    %263 = arith.mulf %228, %262 : vector<48x32xf32>
    %cst_119 = arith.constant dense<0.000000e+00> : vector<48x32xf32>
    %264 = tpu.matmul %261, %263, %cst_119 {dimension_numbers = #tpu.dot_dimension_numbers<[1], [0], [0], [1], [0, 0, 1, 1], [], []>} : vector<48x48xf32>, vector<48x32xf32>, vector<48x32xf32> -> vector<48x32xf32>
    %265 = arith.addf %247, %264 : vector<48x32xf32>
    %266 = arith.truncf %265 : vector<48x32xf32> to vector<48x32xbf16>
    %c1_120 = arith.constant 1 : index
    %c3_121 = arith.constant 3 : index
    %c0_122 = arith.constant 0 : index
    %c0_123 = arith.constant 0 : index
    %267 = vector.load %arg3[%c1_120, %c3_121, %c0_122, %c0_123] : memref<2x4x32x32xbf16, #tpu.memory_space<vmem>>, vector<1x1x32x32xbf16>
    %268 = vector.shape_cast %267 : vector<1x1x32x32xbf16> to vector<32x32xbf16>
    %cst_124 = arith.constant dense<0.000000e+00> : vector<48x32xf32>
    %269 = tpu.matmul %266, %268, %cst_124 {dimension_numbers = #tpu.dot_dimension_numbers<[1], [0], [0], [1], [0, 0, 1, 1], [], []>} : vector<48x32xbf16>, vector<32x32xbf16>, vector<48x32xf32> -> vector<48x32xf32>
    %c1_125 = arith.constant 1 : index
    %c3_126 = arith.constant 3 : index
    %c0_127 = arith.constant 0 : index
    %270 = vector.load %arg6[%c1_125, %c3_126, %c0_127] : memref<2x9x32xf32, #tpu.memory_space<vmem>>, vector<1x1x32xf32>
    %271 = vector.shape_cast %270 : vector<1x1x32xf32> to vector<32xf32>
    %272 = vector.shape_cast %271 : vector<32xf32> to vector<1x32xf32>
    %273 = vector.broadcast %272 : vector<1x32xf32> to vector<48x32xf32>
    %274 = arith.addf %269, %273 : vector<48x32xf32>
    %275 = arith.addf %201, %274 : vector<48x32xf32>
    %c1_128 = arith.constant 1 : index
    %c5_129 = arith.constant 5 : index
    %c0_130 = arith.constant 0 : index
    %276 = vector.load %arg6[%c1_128, %c5_129, %c0_130] : memref<2x9x32xf32, #tpu.memory_space<vmem>>, vector<1x1x32xf32>
    %277 = vector.shape_cast %276 : vector<1x1x32xf32> to vector<32xf32>
    %c1_131 = arith.constant 1 : index
    %c6_132 = arith.constant 6 : index
    %c0_133 = arith.constant 0 : index
    %278 = vector.load %arg6[%c1_131, %c6_132, %c0_133] : memref<2x9x32xf32, #tpu.memory_space<vmem>>, vector<1x1x32xf32>
    %279 = vector.shape_cast %278 : vector<1x1x32xf32> to vector<32xf32>
    %cst_134 = arith.constant dense<0.000000e+00> : vector<48xf32>
    %280 = vector.multi_reduction <add>, %275, %cst_134 [1] : vector<48x32xf32> to vector<48xf32>
    %281 = vector.shape_cast %280 : vector<48xf32> to vector<48x1xf32>
    %cst_135 = arith.constant 3.200000e+01 : f32
    %282 = vector.broadcast %cst_135 : f32 to vector<48x1xf32>
    %283 = arith.divf %281, %282 : vector<48x1xf32>
    %284 = vector.broadcast %283 : vector<48x1xf32> to vector<48x32xf32>
    %285 = arith.subf %275, %284 : vector<48x32xf32>
    %286 = arith.mulf %285, %285 : vector<48x32xf32>
    %cst_136 = arith.constant dense<0.000000e+00> : vector<48xf32>
    %287 = vector.multi_reduction <add>, %286, %cst_136 [1] : vector<48x32xf32> to vector<48xf32>
    %288 = vector.shape_cast %287 : vector<48xf32> to vector<48x1xf32>
    %cst_137 = arith.constant 3.200000e+01 : f32
    %289 = vector.broadcast %cst_137 : f32 to vector<48x1xf32>
    %290 = arith.divf %288, %289 : vector<48x1xf32>
    %cst_138 = arith.constant 9.99999996E-13 : f32
    %291 = vector.broadcast %cst_138 : f32 to vector<48x1xf32>
    %292 = arith.addf %290, %291 : vector<48x1xf32>
    %293 = math.rsqrt %292 : vector<48x1xf32>
    %294 = vector.broadcast %293 : vector<48x1xf32> to vector<48x32xf32>
    %295 = arith.mulf %285, %294 : vector<48x32xf32>
    %296 = vector.shape_cast %277 : vector<32xf32> to vector<1x32xf32>
    %297 = vector.broadcast %296 : vector<1x32xf32> to vector<48x32xf32>
    %298 = arith.mulf %295, %297 : vector<48x32xf32>
    %299 = vector.shape_cast %279 : vector<32xf32> to vector<1x32xf32>
    %300 = vector.broadcast %299 : vector<1x32xf32> to vector<48x32xf32>
    %301 = arith.addf %298, %300 : vector<48x32xf32>
    %302 = arith.truncf %301 : vector<48x32xf32> to vector<48x32xbf16>
    %c1_139 = arith.constant 1 : index
    %c0_140 = arith.constant 0 : index
    %c0_141 = arith.constant 0 : index
    %303 = vector.load %arg4[%c1_139, %c0_140, %c0_141] : memref<2x32x64xbf16, #tpu.memory_space<vmem>>, vector<1x32x64xbf16>
    %304 = vector.shape_cast %303 : vector<1x32x64xbf16> to vector<32x64xbf16>
    %cst_142 = arith.constant dense<0.000000e+00> : vector<48x64xf32>
    %305 = tpu.matmul %302, %304, %cst_142 {dimension_numbers = #tpu.dot_dimension_numbers<[1], [0], [0], [1], [0, 0, 1, 1], [], []>} : vector<48x32xbf16>, vector<32x64xbf16>, vector<48x64xf32> -> vector<48x64xf32>
    %c1_143 = arith.constant 1 : index
    %c0_144 = arith.constant 0 : index
    %306 = vector.load %arg7[%c1_143, %c0_144] : memref<2x64xf32, #tpu.memory_space<vmem>>, vector<1x64xf32>
    %307 = vector.shape_cast %306 : vector<1x64xf32> to vector<64xf32>
    %308 = vector.shape_cast %307 : vector<64xf32> to vector<1x64xf32>
    %309 = vector.broadcast %308 : vector<1x64xf32> to vector<48x64xf32>
    %310 = arith.addf %305, %309 : vector<48x64xf32>
    %311 = arith.mulf %310, %310 : vector<48x64xf32>
    %312 = arith.mulf %310, %311 : vector<48x64xf32>
    %cst_145 = arith.constant 4.471500e-02 : f32
    %313 = vector.broadcast %cst_145 : f32 to vector<48x64xf32>
    %314 = arith.mulf %313, %312 : vector<48x64xf32>
    %315 = arith.addf %310, %314 : vector<48x64xf32>
    %cst_146 = arith.constant 0.797884583 : f32
    %316 = vector.broadcast %cst_146 : f32 to vector<48x64xf32>
    %317 = arith.mulf %316, %315 : vector<48x64xf32>
    %318 = math.tanh %317 : vector<48x64xf32>
    %cst_147 = arith.constant 1.000000e+00 : f32
    %319 = vector.broadcast %cst_147 : f32 to vector<48x64xf32>
    %320 = arith.addf %319, %318 : vector<48x64xf32>
    %cst_148 = arith.constant 5.000000e-01 : f32
    %321 = vector.broadcast %cst_148 : f32 to vector<48x64xf32>
    %322 = arith.mulf %321, %320 : vector<48x64xf32>
    %323 = arith.mulf %310, %322 : vector<48x64xf32>
    %324 = arith.truncf %323 : vector<48x64xf32> to vector<48x64xbf16>
    %c1_149 = arith.constant 1 : index
    %c0_150 = arith.constant 0 : index
    %c0_151 = arith.constant 0 : index
    %325 = vector.load %arg5[%c1_149, %c0_150, %c0_151] : memref<2x64x32xbf16, #tpu.memory_space<vmem>>, vector<1x64x32xbf16>
    %326 = vector.shape_cast %325 : vector<1x64x32xbf16> to vector<64x32xbf16>
    %cst_152 = arith.constant dense<0.000000e+00> : vector<48x32xf32>
    %327 = tpu.matmul %324, %326, %cst_152 {dimension_numbers = #tpu.dot_dimension_numbers<[1], [0], [0], [1], [0, 0, 1, 1], [], []>} : vector<48x64xbf16>, vector<64x32xbf16>, vector<48x32xf32> -> vector<48x32xf32>
    %c1_153 = arith.constant 1 : index
    %c4_154 = arith.constant 4 : index
    %c0_155 = arith.constant 0 : index
    %328 = vector.load %arg6[%c1_153, %c4_154, %c0_155] : memref<2x9x32xf32, #tpu.memory_space<vmem>>, vector<1x1x32xf32>
    %329 = vector.shape_cast %328 : vector<1x1x32xf32> to vector<32xf32>
    %330 = vector.shape_cast %329 : vector<32xf32> to vector<1x32xf32>
    %331 = vector.broadcast %330 : vector<1x32xf32> to vector<48x32xf32>
    %332 = arith.addf %327, %331 : vector<48x32xf32>
    %333 = arith.addf %301, %332 : vector<48x32xf32>
    %c1_156 = arith.constant 1 : index
    %c7_157 = arith.constant 7 : index
    %c0_158 = arith.constant 0 : index
    %334 = vector.load %arg6[%c1_156, %c7_157, %c0_158] : memref<2x9x32xf32, #tpu.memory_space<vmem>>, vector<1x1x32xf32>
    %335 = vector.shape_cast %334 : vector<1x1x32xf32> to vector<32xf32>
    %c1_159 = arith.constant 1 : index
    %c8_160 = arith.constant 8 : index
    %c0_161 = arith.constant 0 : index
    %336 = vector.load %arg6[%c1_159, %c8_160, %c0_161] : memref<2x9x32xf32, #tpu.memory_space<vmem>>, vector<1x1x32xf32>
    %337 = vector.shape_cast %336 : vector<1x1x32xf32> to vector<32xf32>
    %cst_162 = arith.constant dense<0.000000e+00> : vector<48xf32>
    %338 = vector.multi_reduction <add>, %333, %cst_162 [1] : vector<48x32xf32> to vector<48xf32>
    %339 = vector.shape_cast %338 : vector<48xf32> to vector<48x1xf32>
    %cst_163 = arith.constant 3.200000e+01 : f32
    %340 = vector.broadcast %cst_163 : f32 to vector<48x1xf32>
    %341 = arith.divf %339, %340 : vector<48x1xf32>
    %342 = vector.broadcast %341 : vector<48x1xf32> to vector<48x32xf32>
    %343 = arith.subf %333, %342 : vector<48x32xf32>
    %344 = arith.mulf %343, %343 : vector<48x32xf32>
    %cst_164 = arith.constant dense<0.000000e+00> : vector<48xf32>
    %345 = vector.multi_reduction <add>, %344, %cst_164 [1] : vector<48x32xf32> to vector<48xf32>
    %346 = vector.shape_cast %345 : vector<48xf32> to vector<48x1xf32>
    %cst_165 = arith.constant 3.200000e+01 : f32
    %347 = vector.broadcast %cst_165 : f32 to vector<48x1xf32>
    %348 = arith.divf %346, %347 : vector<48x1xf32>
    %cst_166 = arith.constant 9.99999996E-13 : f32
    %349 = vector.broadcast %cst_166 : f32 to vector<48x1xf32>
    %350 = arith.addf %348, %349 : vector<48x1xf32>
    %351 = math.rsqrt %350 : vector<48x1xf32>
    %352 = vector.broadcast %351 : vector<48x1xf32> to vector<48x32xf32>
    %353 = arith.mulf %343, %352 : vector<48x32xf32>
    %354 = vector.shape_cast %335 : vector<32xf32> to vector<1x32xf32>
    %355 = vector.broadcast %354 : vector<1x32xf32> to vector<48x32xf32>
    %356 = arith.mulf %353, %355 : vector<48x32xf32>
    %357 = vector.shape_cast %337 : vector<32xf32> to vector<1x32xf32>
    %358 = vector.broadcast %357 : vector<1x32xf32> to vector<48x32xf32>
    %359 = arith.addf %356, %358 : vector<48x32xf32>
    %360 = vector.shape_cast %359 : vector<48x32xf32> to vector<6x8x32xf32>
    %361 = vector.extract_strided_slice %360 {offsets = [0, 0, 0], sizes = [6, 1, 32], strides = [1, 1, 1]} : vector<6x8x32xf32> to vector<6x1x32xf32>
    %362 = vector.shape_cast %361 : vector<6x1x32xf32> to vector<6x32xf32>
    %363 = arith.truncf %362 : vector<6x32xf32> to vector<6x32xbf16>
    %c0_167 = arith.constant 0 : index
    %c0_168 = arith.constant 0 : index
    %364 = vector.load %arg9[%c0_167, %c0_168] : memref<32x32xbf16, #tpu.memory_space<vmem>>, vector<32x32xbf16>
    %cst_169 = arith.constant dense<0.000000e+00> : vector<6x32xf32>
    %365 = tpu.matmul %363, %364, %cst_169 {dimension_numbers = #tpu.dot_dimension_numbers<[1], [0], [0], [1], [0, 0, 1, 1], [], []>} : vector<6x32xbf16>, vector<32x32xbf16>, vector<6x32xf32> -> vector<6x32xf32>
    %c2_170 = arith.constant 2 : index
    %c0_171 = arith.constant 0 : index
    %366 = vector.load %arg8[%c2_170, %c0_171] : memref<5x32xf32, #tpu.memory_space<vmem>>, vector<1x32xf32>
    %367 = vector.shape_cast %366 : vector<1x32xf32> to vector<32xf32>
    %368 = vector.shape_cast %367 : vector<32xf32> to vector<1x32xf32>
    %369 = vector.broadcast %368 : vector<1x32xf32> to vector<6x32xf32>
    %370 = arith.addf %365, %369 : vector<6x32xf32>
    %c3_172 = arith.constant 3 : index
    %c0_173 = arith.constant 0 : index
    %371 = vector.load %arg8[%c3_172, %c0_173] : memref<5x32xf32, #tpu.memory_space<vmem>>, vector<1x32xf32>
    %372 = vector.shape_cast %371 : vector<1x32xf32> to vector<32xf32>
    %c4_174 = arith.constant 4 : index
    %c0_175 = arith.constant 0 : index
    %373 = vector.load %arg8[%c4_174, %c0_175] : memref<5x32xf32, #tpu.memory_space<vmem>>, vector<1x32xf32>
    %374 = vector.shape_cast %373 : vector<1x32xf32> to vector<32xf32>
    %cst_176 = arith.constant dense<0.000000e+00> : vector<6xf32>
    %375 = vector.multi_reduction <add>, %370, %cst_176 [1] : vector<6x32xf32> to vector<6xf32>
    %376 = vector.shape_cast %375 : vector<6xf32> to vector<6x1xf32>
    %cst_177 = arith.constant 3.200000e+01 : f32
    %377 = vector.broadcast %cst_177 : f32 to vector<6x1xf32>
    %378 = arith.divf %376, %377 : vector<6x1xf32>
    %379 = vector.broadcast %378 : vector<6x1xf32> to vector<6x32xf32>
    %380 = arith.subf %370, %379 : vector<6x32xf32>
    %381 = arith.mulf %380, %380 : vector<6x32xf32>
    %cst_178 = arith.constant dense<0.000000e+00> : vector<6xf32>
    %382 = vector.multi_reduction <add>, %381, %cst_178 [1] : vector<6x32xf32> to vector<6xf32>
    %383 = vector.shape_cast %382 : vector<6xf32> to vector<6x1xf32>
    %cst_179 = arith.constant 3.200000e+01 : f32
    %384 = vector.broadcast %cst_179 : f32 to vector<6x1xf32>
    %385 = arith.divf %383, %384 : vector<6x1xf32>
    %cst_180 = arith.constant 9.99999996E-13 : f32
    %386 = vector.broadcast %cst_180 : f32 to vector<6x1xf32>
    %387 = arith.addf %385, %386 : vector<6x1xf32>
    %388 = math.rsqrt %387 : vector<6x1xf32>
    %389 = vector.broadcast %388 : vector<6x1xf32> to vector<6x32xf32>
    %390 = arith.mulf %380, %389 : vector<6x32xf32>
    %391 = vector.shape_cast %372 : vector<32xf32> to vector<1x32xf32>
    %392 = vector.broadcast %391 : vector<1x32xf32> to vector<6x32xf32>
    %393 = arith.mulf %390, %392 : vector<6x32xf32>
    %394 = vector.shape_cast %374 : vector<32xf32> to vector<1x32xf32>
    %395 = vector.broadcast %394 : vector<1x32xf32> to vector<6x32xf32>
    %396 = arith.addf %393, %395 : vector<6x32xf32>
    %c0_181 = arith.constant 0 : index
    %c0_182 = arith.constant 0 : index
    %397 = vector.load %arg10[%c0_181, %c0_182] : memref<6x32xf32, #tpu.memory_space<vmem>>, vector<6x32xf32>
    tpu.vector_store %arg10[%c0_181, %c0_182], %396 {strides = array<i32>} : memref<6x32xf32, #tpu.memory_space<vmem>>, vector<6x32xf32>,
    return
  }
  func.func @transform_0(%arg0: i32) -> (i32, i32, i32) {
    %c0_i32 = arith.constant 0 : i32
    %c0_i32_0 = arith.constant 0 : i32
    %c0_i32_1 = arith.constant 0 : i32
    %c0_i32_2 = arith.constant 0 : i32
    return %c0_i32, %c0_i32_0, %c0_i32_1 : i32, i32, i32
  }
  func.func @transform_1(%arg0: i32) -> (i32, i32) {
    %c0_i32 = arith.constant 0 : i32
    %c0_i32_0 = arith.constant 0 : i32
    %c0_i32_1 = arith.constant 0 : i32
    return %c0_i32, %c0_i32_0 : i32, i32
  }
  func.func @transform_2(%arg0: i32) -> (i32, i32, i32, i32) {
    %c0_i32 = arith.constant 0 : i32
    %c0_i32_0 = arith.constant 0 : i32
    %c0_i32_1 = arith.constant 0 : i32
    %c0_i32_2 = arith.constant 0 : i32
    %c0_i32_3 = arith.constant 0 : i32
    return %c0_i32, %c0_i32_0, %c0_i32_1, %c0_i32_2 : i32, i32, i32, i32
  }
  func.func @transform_3(%arg0: i32) -> (i32, i32, i32) {
    %c0_i32 = arith.constant 0 : i32
    %c0_i32_0 = arith.constant 0 : i32
    %c0_i32_1 = arith.constant 0 : i32
    %c0_i32_2 = arith.constant 0 : i32
    return %c0_i32, %c0_i32_0, %c0_i32_1 : i32, i32, i32
  }
  func.func @transform_4(%arg0: i32) -> (i32, i32, i32) {
    %c0_i32 = arith.constant 0 : i32
    %c0_i32_0 = arith.constant 0 : i32
    %c0_i32_1 = arith.constant 0 : i32
    %c0_i32_2 = arith.constant 0 : i32
    return %c0_i32, %c0_i32_0, %c0_i32_1 : i32, i32, i32
  }
  func.func @transform_5(%arg0: i32) -> (i32, i32, i32) {
    %c0_i32 = arith.constant 0 : i32
    %c0_i32_0 = arith.constant 0 : i32
    %c0_i32_1 = arith.constant 0 : i32
    %c0_i32_2 = arith.constant 0 : i32
    return %c0_i32, %c0_i32_0, %c0_i32_1 : i32, i32, i32
  }
  func.func @transform_6(%arg0: i32) -> (i32, i32) {
    %c0_i32 = arith.constant 0 : i32
    %c0_i32_0 = arith.constant 0 : i32
    %c0_i32_1 = arith.constant 0 : i32
    return %c0_i32, %c0_i32_0 : i32, i32
  }
  func.func @transform_7(%arg0: i32) -> (i32, i32) {
    %c0_i32 = arith.constant 0 : i32
    %c0_i32_0 = arith.constant 0 : i32
    %c0_i32_1 = arith.constant 0 : i32
    return %c0_i32, %c0_i32_0 : i32, i32
  }
  func.func @transform_8(%arg0: i32) -> (i32, i32) {
    %c0_i32 = arith.constant 0 : i32
    %c0_i32_0 = arith.constant 0 : i32
    %c0_i32_1 = arith.constant 0 : i32
    return %c0_i32, %c0_i32_0 : i32, i32
  }
  func.func @transform_9(%arg0: i32) -> (i32, i32) {
    %c0_i32 = arith.constant 0 : i32
    %c0_i32_0 = arith.constant 0 : i32
    %c0_i32_1 = arith.constant 0 : i32
    return %c0_i32, %c0_i32_0 : i32, i32
  }
}

</mosaic_0001>

<bundles_post_ra>
// kernel: _encode_fused.1
= control target key start
LH: loop header
LB: loop body
LE: loop exit
PB: predicated region body
PF: predicated region fallthrough
CT: control target
= control target key end

     0   :  { %vm48_vm0 = vcmask 261120   ;;  %s5323_s0 = inlined_call_operand.vmem [shape: f32[6,8,32], index: 0, kind: input, shape index: {}]   ;;  %s5324_s1 = inlined_call_operand.vmem [shape: f32[48,48], index: 1, kind: input, shape index: {}]   ;;  %s5325_s2 = inlined_call_operand.vmem [shape: bf16[2,4,32,32], index: 2, kind: input, shape index: {}]   ;;  %s5326_s3 = inlined_call_operand.vmem [shape: bf16[2,32,64], index: 3, kind: input, shape index: {}]   ;;  %s5327_s4 = inlined_call_operand.vmem [shape: bf16[2,64,32], index: 4, kind: input, shape index: {}]   ;;  %s5328_s5 = inlined_call_operand.vmem [shape: f32[2,9,32], index: 5, kind: input, shape index: {}]   ;;  %s5329_s6 = inlined_call_operand.vmem [shape: f32[2,64], index: 6, kind: input, shape index: {}]   ;;  %s5330_s7 = inlined_call_operand.vmem [shape: f32[5,32], index: 7, kind: input, shape index: {}]   ;;  %s5331_s8 = inlined_call_operand.vmem [shape: bf16[32,32], index: 8, kind: input, shape index: {}]   ;;  %s5332_s9 = inlined_call_operand.hbm [shape: f32[6,32], index: 9, kind: output, shape index: {}]  }
   0x1   :  { %v34_v0 = vld [vmem:[%s5323_s0] sm:$0xff]  ;;  %v36_v1 = vld [vmem:[%s5323_s0 + $0x10] sm:$0xff]  ;;  %v35_v2 = vld [vmem:[%s5323_s0 + $0x8] sm:$0xff] }
   0x2   :  { %v49_v3 = vsel %vm48_vm0, %v34_v0, 0.0  ;;  %v55_v4 = vsel %vm48_vm0, %v36_v1, 0.0  ;;  %v37_v5 = vld [vmem:[%s5323_s0 + $0x18] sm:$0xff]  ;;  %v38_v6 = vld [vmem:[%s5323_s0 + $0x20] sm:$0xff]  ;;  %v39_v7 = vld [vmem:[%s5323_s0 + $0x28] sm:$0xff]  ;;  %v52_v8 = vsel %vm48_vm0, %v35_v2, 0.0 }
   0x3   :  { %50 = vadd.xlane.f32.xlu0 %v49_v3  ;;  %56 = vadd.xlane.f32.xlu1 %v55_v4  ;;  %v58_v9 = vsel %vm48_vm0, %v37_v5, 0.0  ;;  %v61_v10 = vsel %vm48_vm0, %v38_v6, 0.0  ;;  %v64_v11 = vsel %vm48_vm0, %v39_v7, 0.0 }
   0x7   :  { %53 = vadd.xlane.f32.xlu0 %v52_v8  ;;  %59 = vadd.xlane.f32.xlu1 %v58_v9 }
   0xb   :  { %62 = vadd.xlane.f32.xlu0 %v61_v10  ;;  %65 = vadd.xlane.f32.xlu1 %v64_v11 }
   0xc   :  { %14 = vsyncpa [#allocation3], 0  ;;  %v4060_v42 = vld [vmem:[%s5325_s2] sm:$0xff]   ;;  %v4061_v43 = vld [vmem:[%s5325_s2 + $0x10] sm:$0xff]   ;;  %v4302_v44 = vmov 0.0   ;;  %vm4303_vm1 = vmmov 0  }
   0xd   :  { %3549 = vmatprep.subr.bf16.mxu0 %v4302_v44  ;;  %3565 = vmatprep.subr.bf16.mxu1 %v4302_v44  ;;  %v4062_v45 = vld [vmem:[%s5325_s2 + $0x8] sm:$0xff]   ;;  %v4063_v46 = vld [vmem:[%s5325_s2 + $0x18] sm:$0xff]   ;;  %v3171_v3 = vld [vmem:[%s5330_s7] ss:$0 sm:$0xff]  ;;  %vm551_vm7 = vcmask 392192   ;;  %vm1422_vm8 = vcmask 523264  }
   0xe   :  { %3550 = vmatpush3.bf16.msra.mxu0 %v4060_v42  ;;  %3566 = vmatpush3.bf16.msra.mxu1 %v4061_v43  ;;  %v3172_v8 = vld [vmem:[%s5330_s7 + $0x1] ss:$0 sm:$0xff]  ;;  %vm4515_vm6 = vmpackc.low %vm48_vm0, %vm48_vm0  ;;  %vm3060_vm9 = vcmask 1041409   ;;  %vm3063_vm10 = vcmask 1042434   ;;  %vm3066_vm11 = vcmask 1043459   ;;  %vm3069_vm12 = vcmask 1044484  }
   0xf   :  { %3551 = vmatprep.subr.bf16.mxu0 %v4302_v44  ;;  %3567 = vmatprep.subr.bf16.mxu1 %v4302_v44  ;;  %vm3072_vm13 = vcmask 1045509   ;;  %vm3132_vm14 = vcmask 259072   ;;  %s4304_s13 = smov [#allocation2]  }
  0x10   :  { %3553 = vmatprep.mubr.msk.bf16.mxu0 %vm4303_vm1, %v4302_v44  ;;  %3569 = vmatprep.mubr.msk.bf16.mxu1 %vm4303_vm1, %v4302_v44  ;;  %s3163_s14 = sshll.u32 %s4304_s13, 4  ;;  %s3164_s14 = int_to_ptr.vmem [resolvable:$true] %s3163_s14 }
  0x11   :  { %s4278_s15 = scalar_lea.vmem %s3164_s14, 128  ;;  %p4283_p1 = scmp.lt.s32.totalorder %s3164_s14, %s3164_s14 }
  0x12   :  { %3552 = vmatpush3.bf16.msra.mxu0 %v4062_v45  ;;  %3568 = vmatpush3.bf16.msra.mxu1 %v4063_v46  ;;  %p4279_p0 = scmp.ne.s32.totalorder %s3164_s14, %s4278_s15  ;;  %p4284_p2 = scmp.lt.s32.totalorder %s4278_s15, %s4278_s15 }
  0x13   :  { %3581 = vmatprep.subr.bf16.mxu0 %v4302_v44 }
  0x14   :  { %p4285_p3 = por %p4284_p2, %p4283_p1 }
  0x16   :  { %p4286_p4 = pnand %p4285_p3, %p4279_p0 }
  0x90   :  { %v51_v12 = vpop.xlane.xlu0 %50  ;;  %v57_v13 = vpop.xlane.xlu1 %56 }
  0x91   :  { %v68_v14 = vmul.f32 0.03125, %v51_v12  ;;  %v70_v15 = vmul.f32 0.03125, %v57_v13 }
  0x93   :  { %v4379_v16 = vsub.f32 %v34_v0, %v68_v14  ;;  %v4381_v17 = vsub.f32 %v36_v1, %v70_v15 }
  0x94   :  { %v54_v18 = vpop.xlane.xlu0 %53  ;;  %v60_v19 = vpop.xlane.xlu1 %59 }
  0x95   :  { %v69_v20 = vmul.f32 0.03125, %v54_v18  ;;  %v71_v21 = vmul.f32 0.03125, %v60_v19  ;;  %v80_v22 = vmul.f32 %v4379_v16, %v4379_v16  ;;  %v82_v23 = vmul.f32 %v4381_v17, %v4381_v17  ;;  %v4064_v18 = vld [vmem:[%s5325_s2 + $0x20] sm:$0xff]  }
  0x97   :  { %v4387_v24 = vsub.f32 %v35_v2, %v69_v20  ;;  %v4389_v25 = vsub.f32 %v37_v5, %v71_v21  ;;  %v86_v26 = vsel %vm48_vm0, %v80_v22, 0.0  ;;  %v92_v29 = vsel %vm48_vm0, %v82_v23, 0.0  ;;  %v4065_v23 = vld [vmem:[%s5325_s2 + $0x28] sm:$0xff]  }
  0x98   :  { %87 = vadd.xlane.f32.xlu0 %v86_v26  ;;  %v63_v27 = vpop.xlane.xlu0 %62  ;;  %v66_v28 = vpop.xlane.xlu1 %65 }
  0x99   :  { %v72_v30 = vmul.f32 0.03125, %v63_v27  ;;  %v73_v31 = vmul.f32 0.03125, %v66_v28  ;;  %v81_v32 = vmul.f32 %v4387_v24, %v4387_v24  ;;  %v83_v33 = vmul.f32 %v4389_v25, %v4389_v25 }
  0x9b   :  { %v4397_v34 = vsub.f32 %v38_v6, %v72_v30  ;;  %v4399_v35 = vsub.f32 %v39_v7, %v73_v31  ;;  %v89_v36 = vsel %vm48_vm0, %v81_v32, 0.0  ;;  %v95_v37 = vsel %vm48_vm0, %v83_v33, 0.0 }
  0x9c   :  { %93 = vadd.xlane.f32.xlu0 %v92_v29  ;;  %90 = vadd.xlane.f32.xlu1 %v89_v36  ;;  %v148_v32 = vlaneseq }
  0x9d   :  { %v84_v38 = vmul.f32 %v4397_v34, %v4397_v34  ;;  %v85_v39 = vmul.f32 %v4399_v35, %v4399_v35 }
  0x9e   :  { %v149_v33 = vand.u32 127, %v148_v32 }
  0x9f   :  { %v98_v40 = vsel %vm48_vm0, %v84_v38, 0.0  ;;  %v101_v41 = vsel %vm48_vm0, %v85_v39, 0.0 }
  0xa0   :  { %96 = vadd.xlane.f32.xlu1 %v95_v37  ;;  %99 = vadd.xlane.f32.xlu0 %v98_v40  ;;  %vm155_vm2 = vcmp.ge.s32.totalorder %v149_v33, 16  ;;  %vm156_vm3 = vcmp.lt.s32.totalorder %v149_v33, 32  ;;  %vm151_vm4 = vcmp.lt.s32.totalorder %v149_v33, 16 }
  0xa1   :  { %vm157_vm5 = vmand %vm155_vm2, %vm156_vm3  ;;  %v4502_v46 = vsel %vm151_vm4, 1.0, %v4302_v44 }
  0xa4   :  { %102 = vadd.xlane.f32.xlu1 %v101_v41 }
 0x125   :  { %v88_v47 = vpop.xlane.xlu0 %87 }
 0x126   :  { %v104_v48 = vmul.f32 0.03125, %v88_v47  ;;  %v4505_v47 = vsel %vm157_vm5, 1.0, %v4302_v44 }
 0x128   :  { %v110_v49 = vadd.f32 1e-12, %v104_v48 }
 0x129   :  { %v91_v50 = vpop.xlane.xlu1 %90  ;;  %v94_v51 = vpop.xlane.xlu0 %93 }
 0x12a   :  { %4090 = vrsqrt.f32 %v110_v49  ;;  %v105_v52 = vmul.f32 0.03125, %v91_v50  ;;  %v106_v53 = vmul.f32 0.03125, %v94_v51 }
 0x12c   :  { %v111_v54 = vadd.f32 1e-12, %v105_v52  ;;  %v112_v55 = vadd.f32 1e-12, %v106_v53 }
 0x12d   :  { %v97_v56 = vpop.xlane.xlu1 %96  ;;  %v100_v57 = vpop.xlane.xlu0 %99 }
 0x12e   :  { %4092 = vrsqrt.f32 %v111_v54  ;;  %v107_v58 = vmul.f32 0.03125, %v97_v56  ;;  %v108_v60 = vmul.f32 0.03125, %v100_v57 }
 0x12f   :  { %4094 = vrsqrt.f32 %v112_v55 }
 0x130   :  { %v113_v59 = vadd.f32 1e-12, %v107_v58  ;;  %v114_v0 = vadd.f32 1e-12, %v108_v60 }
 0x131   :  { %v103_v61 = vpop.xlane.xlu1 %102 }
 0x132   :  { %4096 = vrsqrt.f32 %v113_v59  ;;  %v109_v62 = vmul.f32 0.03125, %v103_v61 }
 0x134   :  { %v4091_v63 = vpop.eup %4090  ;;  %v115_v1 = vadd.f32 1e-12, %v109_v62 }
 0x135   :  { %v122_v2 = vmul.f32 %v4091_v63, %v4379_v16 }
 0x136   :  { %4098 = vrsqrt.f32 %v115_v1 }
 0x137   :  { %4100 = vrsqrt.f32 %v114_v0  ;;  %v132_v6 = vmul.f32 %v3171_v3, %v122_v2 }
 0x138   :  { %v4093_v4 = vpop.eup %4092 }
 0x139   :  { %v123_v5 = vmul.f32 %v4093_v4, %v4387_v24  ;;  %v4095_v7 = vpop.eup %4094  ;;  %v4438_v11 = vadd.f32 %v3172_v8, %v132_v6 }
 0x13a   :  { %v124_v13 = vmul.f32 %v4095_v7, %v4381_v17 }
 0x13b   :  { %v133_v9 = vmul.f32 %v3171_v3, %v123_v5 }
 0x13c   :  { %v4097_v10 = vpop.eup %4096  ;;  %v134_v20 = vmul.f32 %v3171_v3, %v124_v13 }
 0x13d   :  { %v4440_v12 = vadd.f32 %v3172_v8, %v133_v9  ;;  %v125_v14 = vmul.f32 %v4097_v10, %v4389_v25 }
 0x13e   :  { %v4462_v24 = vadd.f32 %v3172_v8, %v134_v20 }
 0x13f   :  { %v160_v15 = vpack.c.bf16 %v4440_v12, %v4438_v11  ;;  %v135_v16 = vmul.f32 %v3171_v3, %v125_v14 }
 0x140   :  { %v4099_v19 = vpop.eup %4098 }
 0x141   :  { %3554 = vmatmul.mubr.msk.bf16.vlgmr.msra.gmra.mrb[0].mxu0 %vm48_vm0, %v160_v15  ;;  %3570 = vmatmul.mubr.msk.bf16.vlgmr.msra.gmra.mrb[0].mxu1 %vm48_vm0, %v160_v15  ;;  %v4101_v21 = vpop.eup %4100  ;;  %v4455_v17 = vadd.f32 %v3172_v8, %v135_v16  ;;  %v127_v22 = vmul.f32 %v4099_v19, %v4399_v35  ;;  %v3185_v35 = vld [vmem:[%s5328_s5 + $0x1] ss:$0 sm:$0xff] }
 0x142   :  { %3557 = vmatprep.mubr.msk.bf16.mxu0 %vm4303_vm1, %v4302_v44  ;;  %3573 = vmatprep.mubr.msk.bf16.mxu1 %vm4303_vm1, %v4302_v44  ;;  %v126_v25 = vmul.f32 %v4101_v21, %v4397_v34  ;;  %v4493_v34 = vld [vmem:[%s5328_s5] ss:$0 sm:$0xff] }
 0x143   :  { %3582 = vmatpush3.bf16.msra.mxu0 %v4064_v18  ;;  %v161_v26 = vpack.c.bf16 %v4455_v17, %v4462_v24  ;;  %v137_v27 = vmul.f32 %v3171_v3, %v127_v22 }
 0x144   :  { %3583 = vmatprep.subr.bf16.mxu0 %v4302_v44  ;;  %v136_v28 = vmul.f32 %v3171_v3, %v126_v25 }
 0x145   :  { %v4473_v29 = vadd.f32 %v3172_v8, %v137_v27 }
 0x146   :  { %v4475_v30 = vadd.f32 %v3172_v8, %v136_v28  ;;  %v3195_v28 = vld [vmem:[%s5328_s5 + $0x2] ss:$0 sm:$0xff] }
 0x147   :  { %3584 = vmatpush3.bf16.msra.mxu0 %v4065_v23 }
 0x148   :  { %v162_v31 = vpack.c.bf16 %v4473_v29, %v4475_v30 }
 0x149   :  { %3558 = vmatmul.mubr.msk.bf16.gmra.mrb[4].mxu0 %vm48_vm0, %v161_v26  ;;  %3574 = vmatmul.mubr.msk.bf16.gmra.mrb[4].mxu1 %vm48_vm0, %v161_v26 }
 0x14a   :  { %3561 = vmatprep.mubr.msk.bf16.mxu0 %vm4303_vm1, %v4302_v44  ;;  %3577 = vmatprep.mubr.msk.bf16.mxu1 %vm4303_vm1, %v4302_v44 }
 0x151   :  { %3562 = vmatmul.mubr.msk.bf16.gmra.mrb[8].mxu0 %vm48_vm0, %v162_v31  ;;  %3578 = vmatmul.mubr.msk.bf16.gmra.mrb[8].mxu1 %vm48_vm0, %v162_v31 }
 0x152   :  { %3585 = vmatprep.mubr.msk.bf16.mxu0 %vm4303_vm1, %v4302_v44 }
 0x159   :  { %3586 = vmatmul.mubr.msk.bf16.vlgmr.msra.gmra.mrb[12].mxu0 %vm48_vm0, %v160_v15 }
 0x15a   :  { %3589 = vmatprep.mubr.msk.bf16.mxu0 %vm4303_vm1, %v4302_v44 }
 0x161   :  { %3590 = vmatmul.mubr.msk.bf16.gmra.mrb[16].mxu0 %vm48_vm0, %v161_v26 }
 0x162   :  { %3593 = vmatprep.mubr.msk.bf16.mxu0 %vm4303_vm1, %v4302_v44 }
 0x169   :  { %3594 = vmatmul.mubr.msk.bf16.gmra.mrb[20].mxu0 %vm48_vm0, %v162_v31 }
 0x214   :  { %v227_v36 = vpop.f32.mrb[0].mxu0  ;;  %v312_v37 = vpop.f32.mrb[0].mxu1 }
 0x215   :  { %v228_v38 = vadd.f32 %v4493_v34, %v227_v36  ;;  %v3555_v39 = vpop.f32.mrb[1].mxu0  ;;  %v3571_v40 = vpop.f32.mrb[1].mxu1  ;;  %v313_v41 = vadd.f32 %v3185_v35, %v312_v37 }
 0x216   :  { %v4499_v42 = vpop.f32.mrb[2].mxu0  ;;  %v315_v43 = vpop.f32.mrb[2].mxu1 }
 0x217   :  { %v250_v45 = vmul.f32 0.25, %v228_v38  ;;  %v3556_v48 = vpop.f32.mrb[3].mxu0  ;;  %v3572_v49 = vpop.f32.mrb[3].mxu1  ;;  %v316_v50 = vadd.f32 %v3185_v35, %v315_v43  ;;  %v414_v51 = vmul.f32 %v4502_v46, %v313_v41  ;;  %v624_v52 = vmul.f32 %v4505_v47, %v313_v41 }
 0x218   :  { %v231_v40 = vadd.f32 %v4493_v34, %v4499_v42 }
 0x219   :  { %3609 = vmatprep.mubr.msk.f32.mxu1 %vm48_vm0, %v250_v45  ;;  %3630 = vmatprep.mubr.msk.f32.mxu0 %vm48_vm0, %v250_v45  ;;  %v415_v53 = vmul.f32 %v4502_v46, %v316_v50  ;;  %v625_v54 = vmul.f32 %v4505_v47, %v316_v50 }
 0x21b   :  { %v3925_v56 = vpack.c.bf16 %v415_v53, %v414_v51  ;;  %v3943_v57 = vpack.c.bf16 %v625_v54, %v624_v52  ;;  %v251_v52 = vmul.f32 0.25, %v231_v40 }
 0x21c   :  { %v235_v58 = vpop.f32.mrb[4].mxu0  ;;  %v320_v59 = vpop.f32.mrb[4].mxu1 }
 0x21d   :  { %v3559_v60 = vpop.f32.mrb[5].mxu0  ;;  %v3575_v61 = vpop.f32.mrb[5].mxu1  ;;  %v321_v62 = vadd.f32 %v3185_v35, %v320_v59  ;;  %3927 = vmatprep.subr.msk.bf16.mxu1 %vm4515_vm6, %v3925_v56  ;;  %3945 = vmatprep.subr.msk.bf16.mxu0 %vm4515_vm6, %v3943_v57  ;;  %v236_v41 = vadd.f32 %v4493_v34, %v235_v58 }
 0x21e   :  { %v238_v63 = vpop.f32.mrb[6].mxu0  ;;  %v323_v0 = vpop.f32.mrb[6].mxu1  ;;  %3930 = vmatpush3.bf16.xpose.msk.msra.mxu1 %vm4515_vm6, %v3925_v56  ;;  %3948 = vmatpush3.bf16.xpose.msk.msra.mxu0 %vm4515_vm6, %v3943_v57 }
 0x21f   :  { %v3560_v1 = vpop.f32.mrb[7].mxu0  ;;  %v3576_v2 = vpop.f32.mrb[7].mxu1  ;;  %v324_v3 = vadd.f32 %v3185_v35, %v323_v0  ;;  %v416_v4 = vmul.f32 %v4502_v46, %v321_v62  ;;  %v626_v5 = vmul.f32 %v4505_v47, %v321_v62  ;;  %v239_v53 = vadd.f32 %v4493_v34, %v238_v63 }
 0x220   :  { %v252_v56 = vmul.f32 0.25, %v236_v41 }
 0x221   :  { %v417_v6 = vmul.f32 %v4502_v46, %v324_v3  ;;  %v627_v7 = vmul.f32 %v4505_v47, %v324_v3  ;;  %v253_v62 = vmul.f32 0.25, %v239_v53 }
 0x223   :  { %v3931_v8 = vpack.c.bf16 %v417_v6, %v416_v4  ;;  %v3949_v9 = vpack.c.bf16 %v627_v7, %v626_v5 }
 0x224   :  { %v243_v10 = vpop.f32.mrb[8].mxu0  ;;  %v328_v13 = vpop.f32.mrb[8].mxu1 }
 0x225   :  { %v3563_v14 = vpop.f32.mrb[9].mxu0  ;;  %v3579_v15 = vpop.f32.mrb[9].mxu1  ;;  %v329_v16 = vadd.f32 %v3185_v35, %v328_v13  ;;  %3933 = vmatprep.subr.msk.bf16.mxu1 %vm4515_vm6, %v3931_v8  ;;  %3951 = vmatprep.subr.msk.bf16.mxu0 %vm4515_vm6, %v3949_v9  ;;  %v244_v42 = vadd.f32 %v4493_v34, %v243_v10 }
 0x226   :  { %v246_v18 = vpop.f32.mrb[10].mxu0  ;;  %v331_v19 = vpop.f32.mrb[10].mxu1  ;;  %3936 = vmatpush3.bf16.xpose.msk.msra.mxu1 %vm4515_vm6, %v3931_v8  ;;  %3954 = vmatpush3.bf16.xpose.msk.msra.mxu0 %vm4515_vm6, %v3949_v9 }
 0x227   :  { %v3564_v20 = vpop.f32.mrb[11].mxu0  ;;  %v3580_v21 = vpop.f32.mrb[11].mxu1  ;;  %v332_v22 = vadd.f32 %v3185_v35, %v331_v19  ;;  %v418_v23 = vmul.f32 %v4502_v46, %v329_v16  ;;  %v628_v25 = vmul.f32 %v4505_v47, %v329_v16  ;;  %v254_v63 = vmul.f32 0.25, %v244_v42 }
 0x228   :  { %v247_v0 = vadd.f32 %v4493_v34, %v246_v18 }
 0x229   :  { %v419_v26 = vmul.f32 %v4502_v46, %v332_v22  ;;  %v629_v27 = vmul.f32 %v4505_v47, %v332_v22  ;;  %v41_v22 = vld [vmem:[%s5324_s1 + $0x8] sm:$0xff] }
 0x22a   :  { %v255_v34 = vmul.f32 0.25, %v247_v0 }
 0x22b   :  { %v3937_v31 = vpack.c.bf16 %v419_v26, %v418_v23  ;;  %v3955_v32 = vpack.c.bf16 %v629_v27, %v628_v25  ;;  %v40_v23 = vld [vmem:[%s5324_s1] sm:$0xff] }
 0x22c   :  { %v391_v33 = vpop.f32.mrb[12].mxu0 }
 0x22d   :  { %v392_v36 = vadd.f32 %v3195_v28, %v391_v33  ;;  %v3587_v37 = vpop.f32.mrb[13].mxu0  ;;  %3939 = vmatprep.subr.msk.bf16.mxu1 %vm4515_vm6, %v3937_v31  ;;  %3957 = vmatprep.subr.msk.bf16.mxu0 %vm4515_vm6, %v3955_v32  ;;  %v43_v33 = vld [vmem:[%s5324_s1 + $0x18] sm:$0xff] }
 0x22e   :  { %v394_v35 = vpop.f32.mrb[14].mxu0  ;;  %3942 = vmatpush3.bf16.xpose.msk.msra.mxu1 %vm4515_vm6, %v3937_v31  ;;  %3960 = vmatpush3.bf16.xpose.msk.msra.mxu0 %vm4515_vm6, %v3955_v32  ;;  %v42_v37 = vld [vmem:[%s5324_s1 + $0x10] sm:$0xff] }
 0x22f   :  { %v395_v38 = vadd.f32 %v3195_v28, %v394_v35  ;;  %v3588_v39 = vpop.f32.mrb[15].mxu0  ;;  %3681 = vmatprep.subr.bf16.mxu0 %v4302_v44  ;;  %v618_v43 = vmul.f32 %v4502_v46, %v392_v36  ;;  %v809_v45 = vmul.f32 %v4505_v47, %v392_v36 }
 0x231   :  { %v619_v48 = vmul.f32 %v4502_v46, %v395_v38  ;;  %v810_v49 = vmul.f32 %v4505_v47, %v395_v38 }
 0x233   :  { %v3961_v50 = vpack.c.bf16 %v810_v49, %v809_v45  ;;  %v4562_v51 = vpack.c.bf16 %v619_v48, %v618_v43  ;;  %v45_v48 = vld [vmem:[%s5324_s1 + $0x28] sm:$0xff] }
 0x234   :  { %v399_v54 = vpop.f32.mrb[16].mxu0 }
 0x235   :  { %v400_v57 = vadd.f32 %v3195_v28, %v399_v54  ;;  %v3591_v58 = vpop.f32.mrb[17].mxu0  ;;  %3962 = vmatprep.subr.bf16.mxu1 %v3961_v50  ;;  %3610 = vmatmul.mubr.msk.f32.vlgmr.msra.gmra.mrb[12].mxu1 %vm48_vm0, %v251_v52 }
 0x236   :  { %3631 = vmatmul.mubr.msk.f32.vlgmr.msra.gmra.mrb[24].mxu0 %vm48_vm0, %v251_v52  ;;  %v402_v59 = vpop.f32.mrb[18].mxu0  ;;  %3612 = vmatprep.mubr.msk.f32.mxu1 %vm48_vm0, %v252_v56 }
 0x237   :  { %v403_v60 = vadd.f32 %v3195_v28, %v402_v59  ;;  %3633 = vmatprep.mubr.msk.f32.mxu0 %vm48_vm0, %v252_v56  ;;  %v3592_v61 = vpop.f32.mrb[19].mxu0  ;;  %3964 = vmatpush3.bf16.msra.mxu1 %v3961_v50  ;;  %v620_v1 = vmul.f32 %v4502_v46, %v400_v57  ;;  %v811_v2 = vmul.f32 %v4505_v47, %v400_v57  ;;  %v44_v50 = vld [vmem:[%s5324_s1 + $0x20] sm:$0xff] }
 0x239   :  { %v621_v3 = vmul.f32 %v4502_v46, %v403_v60  ;;  %v812_v4 = vmul.f32 %v4505_v47, %v403_v60  ;;  %3613 = vmatmul.mubr.msk.f32.gmra.mrb[14].mxu1 %vm48_vm0, %v253_v62 }
 0x23a   :  { %3634 = vmatmul.mubr.msk.f32.gmra.mrb[26].mxu0 %vm48_vm0, %v253_v62  ;;  %3615 = vmatprep.mubr.msk.f32.mxu1 %vm48_vm0, %v254_v63 }
 0x23b   :  { %3636 = vmatprep.mubr.msk.f32.mxu0 %vm48_vm0, %v254_v63  ;;  %v3965_v5 = vpack.c.bf16 %v812_v4, %v811_v2  ;;  %v4579_v6 = vpack.c.bf16 %v621_v3, %v620_v1 }
 0x23c   :  { %v407_v7 = vpop.f32.mrb[20].mxu0 }
 0x23d   :  { %v408_v8 = vadd.f32 %v3195_v28, %v407_v7  ;;  %v3595_v9 = vpop.f32.mrb[21].mxu0  ;;  %3966 = vmatprep.subr.bf16.mxu1 %v3965_v5  ;;  %3616 = vmatmul.mubr.msk.f32.gmra.mrb[16].mxu1 %vm48_vm0, %v255_v34 }
 0x23e   :  { %3637 = vmatmul.mubr.msk.f32.gmra.mrb[28].mxu0 %vm48_vm0, %v255_v34  ;;  %v410_v10 = vpop.f32.mrb[22].mxu0  ;;  %3968 = vmatpush3.bf16.msra.mxu1 %v3965_v5 }
 0x23f   :  { %v411_v13 = vadd.f32 %v3195_v28, %v410_v10  ;;  %v3596_v14 = vpop.f32.mrb[23].mxu0  ;;  %3685 = vmatprep.mubr.msk.bf16.mxu0 %vm4303_vm1, %v4302_v44  ;;  %v622_v15 = vmul.f32 %v4502_v46, %v408_v8  ;;  %v813_v16 = vmul.f32 %v4505_v47, %v408_v8 }
 0x241   :  { %v623_v18 = vmul.f32 %v4502_v46, %v411_v13  ;;  %v814_v19 = vmul.f32 %v4505_v47, %v411_v13 }
 0x243   :  { %v3969_v20 = vpack.c.bf16 %v814_v19, %v813_v16  ;;  %v4589_v21 = vpack.c.bf16 %v623_v18, %v622_v15 }
 0x245   :  { %3970 = vmatprep.subr.bf16.mxu1 %v3969_v20 }
 0x246   :  { %3972 = vmatpush3.bf16.msra.mxu1 %v3969_v20 }
 0x247   :  { %3974 = vmatprep.subr.bf16.mxu1 %v4562_v51 }
 0x308   :  { %v3611_v25 = vpop.f32.mrb[12].mxu1 }
 0x309   :  { %v3632_v26 = vpop.f32.mrb[24].mxu0  ;;  %v522_v28 = vpop.f32.mrb[13].mxu1  ;;  %v528_v59 = vadd.f32 %v3611_v25, %v41_v22 }
 0x30a   :  { %v720_v27 = vadd.f32 %v3632_v26, %v41_v22  ;;  %v714_v31 = vpop.f32.mrb[25].mxu0  ;;  %v523_v61 = vadd.f32 %v522_v28, %v40_v23 }
 0x30b   :  { %v715_v32 = vadd.f32 %v714_v31, %v40_v23  ;;  %v555_v0 = vsel %vm551_vm7, %v528_v59, -inf }
 0x30c   :  { %v746_v36 = vsel %vm551_vm7, %v720_v27, -inf  ;;  %v3614_v35 = vpop.f32.mrb[14].mxu1  ;;  %v552_v2 = vsel %vm551_vm7, %v523_v61, -inf }
 0x30d   :  { %747 = vmax.xlane.f32.xlu1 %v746_v36  ;;  %v3635_v38 = vpop.f32.mrb[26].mxu0  ;;  %v743_v39 = vsel %vm551_vm7, %v715_v32, -inf  ;;  %v532_v41 = vpop.f32.mrb[15].mxu1  ;;  %v538_v63 = vadd.f32 %v3614_v35, %v43_v33 }
 0x30e   :  { %v730_v40 = vadd.f32 %v3635_v38, %v43_v33  ;;  %v724_v43 = vpop.f32.mrb[27].mxu0  ;;  %744 = vmax.xlane.f32.xlu0 %v743_v39  ;;  %v533_v1 = vadd.f32 %v532_v41, %v42_v37 }
 0x30f   :  { %v725_v45 = vadd.f32 %v724_v43, %v42_v37  ;;  %v561_v4 = vsel %vm551_vm7, %v538_v63, -inf }
 0x310   :  { %v752_v49 = vsel %vm551_vm7, %v730_v40, -inf  ;;  %v3617_v52 = vpop.f32.mrb[16].mxu1  ;;  %v558_v34 = vsel %vm551_vm7, %v533_v1, -inf }
 0x311   :  { %753 = vmax.xlane.f32.xlu1 %v752_v49  ;;  %v3638_v53 = vpop.f32.mrb[28].mxu0  ;;  %v749_v42 = vsel %vm551_vm7, %v725_v45, -inf  ;;  %v542_v56 = vpop.f32.mrb[17].mxu1  ;;  %v4618_v3 = vadd.f32 %v3617_v52, %v45_v48 }
 0x312   :  { %v740_v54 = vadd.f32 %v3638_v53, %v45_v48  ;;  %v734_v57 = vpop.f32.mrb[29].mxu0  ;;  %750 = vmax.xlane.f32.xlu0 %v749_v42  ;;  %v4621_v5 = vadd.f32 %v542_v56, %v44_v50 }
 0x313   :  { %v735_v58 = vadd.f32 %v734_v57, %v44_v50  ;;  %v567_v7 = vsel %vm551_vm7, %v4618_v3, -inf }
 0x314   :  { %v758_v60 = vsel %vm551_vm7, %v740_v54, -inf  ;;  %v564_v8 = vsel %vm551_vm7, %v4621_v5, -inf }
 0x315   :  { %759 = vmax.xlane.f32.xlu1 %v758_v60  ;;  %v755_v62 = vsel %vm551_vm7, %v735_v58, -inf }
 0x316   :  { %756 = vmax.xlane.f32.xlu0 %v755_v62 }
 0x319   :  { %556 = vmax.xlane.f32.xlu1 %v555_v0 }
 0x31a   :  { %553 = vmax.xlane.f32.xlu0 %v552_v2 }
 0x31d   :  { %562 = vmax.xlane.f32.xlu1 %v561_v4 }
 0x31e   :  { %559 = vmax.xlane.f32.xlu0 %v558_v34 }
 0x321   :  { %568 = vmax.xlane.f32.xlu1 %v567_v7 }
 0x322   :  { %565 = vmax.xlane.f32.xlu0 %v564_v8 }
 0x39a   :  { %v748_v9 = vpop.xlane.xlu1 %747 }
 0x39b   :  { %v762_v10 = vsub.f32 %v720_v27, %v748_v9  ;;  %v745_v13 = vpop.xlane.xlu0 %744 }
 0x39c   :  { %v761_v14 = vsub.f32 %v715_v32, %v745_v13 }
 0x39d   :  { %v769_v15 = vmul.f32 1.442695, %v762_v10 }
 0x39e   :  { %v767_v16 = vmul.f32 1.442695, %v761_v14  ;;  %v754_v18 = vpop.xlane.xlu1 %753 }
 0x39f   :  { %4102 = vpow2.f32 %v769_v15  ;;  %v764_v19 = vsub.f32 %v730_v40, %v754_v18  ;;  %v751_v20 = vpop.xlane.xlu0 %750 }
 0x3a0   :  { %4104 = vpow2.f32 %v767_v16  ;;  %v763_v22 = vsub.f32 %v725_v45, %v751_v20 }
 0x3a1   :  { %v773_v23 = vmul.f32 1.442695, %v764_v19 }
 0x3a2   :  { %v771_v25 = vmul.f32 1.442695, %v763_v22  ;;  %v760_v26 = vpop.xlane.xlu1 %759  ;;  %v4066_v22 = vld [vmem:[%s5325_s2 + $0x30] sm:$0xff]  }
 0x3a3   :  { %4106 = vpow2.f32 %v773_v23  ;;  %v766_v28 = vsub.f32 %v740_v54, %v760_v26  ;;  %v757_v31 = vpop.xlane.xlu0 %756  ;;  %3682 = vmatpush3.bf16.msra.mxu0 %v4066_v22  ;;  %v4067_v23 = vld [vmem:[%s5325_s2 + $0x38] sm:$0xff]  }
 0x3a4   :  { %4108 = vpow2.f32 %v771_v25  ;;  %v765_v33 = vsub.f32 %v735_v58, %v757_v31  ;;  %3683 = vmatprep.subr.bf16.mxu0 %v4302_v44 }
 0x3a5   :  { %v777_v36 = vmul.f32 1.442695, %v766_v28 }
 0x3a6   :  { %v775_v27 = vmul.f32 1.442695, %v765_v33  ;;  %v557_v37 = vpop.xlane.xlu1 %556 }
 0x3a7   :  { %4110 = vpow2.f32 %v777_v36  ;;  %v571_v32 = vsub.f32 %v528_v59, %v557_v37  ;;  %v554_v35 = vpop.xlane.xlu0 %553  ;;  %3684 = vmatpush3.bf16.msra.mxu0 %v4067_v23 }
 0x3a8   :  { %4112 = vpow2.f32 %v775_v27  ;;  %v570_v38 = vsub.f32 %v523_v61, %v554_v35  ;;  %3713 = vmatprep.subr.bf16.mxu0 %v4302_v44 }
 0x3a9   :  { %v4628_v39 = vpop.eup %4102  ;;  %v578_v40 = vmul.f32 1.442695, %v571_v32 }
 0x3aa   :  { %v4630_v41 = vpop.eup %4104  ;;  %v576_v43 = vmul.f32 1.442695, %v570_v38  ;;  %v563_v45 = vpop.xlane.xlu1 %562  ;;  %v782_v48 = vsel %vm551_vm7, %v4628_v39, 0.0 }
 0x3ab   :  { %4114 = vpow2.f32 %v578_v40  ;;  %v573_v49 = vsub.f32 %v538_v63, %v563_v45  ;;  %783 = vadd.xlane.f32.xlu1 %v782_v48  ;;  %v560_v50 = vpop.xlane.xlu0 %559  ;;  %v779_v52 = vsel %vm551_vm7, %v4630_v41, 0.0 }
 0x3ac   :  { %4116 = vpow2.f32 %v576_v43  ;;  %v572_v53 = vsub.f32 %v533_v1, %v560_v50  ;;  %780 = vadd.xlane.f32.xlu0 %v779_v52 }
 0x3ad   :  { %v4636_v42 = vpop.eup %4106  ;;  %v582_v54 = vmul.f32 1.442695, %v573_v49 }
 0x3ae   :  { %v4638_v56 = vpop.eup %4108  ;;  %v580_v57 = vmul.f32 1.442695, %v572_v53  ;;  %v569_v58 = vpop.xlane.xlu1 %568  ;;  %v788_v59 = vsel %vm551_vm7, %v4636_v42, 0.0 }
 0x3af   :  { %4118 = vpow2.f32 %v582_v54  ;;  %v575_v60 = vsub.f32 %v4618_v3, %v569_v58  ;;  %789 = vadd.xlane.f32.xlu1 %v788_v59  ;;  %v566_v61 = vpop.xlane.xlu0 %565  ;;  %v785_v62 = vsel %vm551_vm7, %v4638_v56, 0.0 }
 0x3b0   :  { %4120 = vpow2.f32 %v580_v57  ;;  %v574_v63 = vsub.f32 %v4621_v5, %v566_v61  ;;  %786 = vadd.xlane.f32.xlu0 %v785_v62 }
 0x3b1   :  { %v4646_v0 = vpop.eup %4110  ;;  %v586_v1 = vmul.f32 1.442695, %v575_v60 }
 0x3b2   :  { %v4648_v2 = vpop.eup %4112  ;;  %v584_v4 = vmul.f32 1.442695, %v574_v63  ;;  %v794_v34 = vsel %vm551_vm7, %v4646_v0, 0.0 }
 0x3b3   :  { %4122 = vpow2.f32 %v586_v1  ;;  %795 = vadd.xlane.f32.xlu1 %v794_v34  ;;  %v791_v3 = vsel %vm551_vm7, %v4648_v2, 0.0 }
 0x3b4   :  { %4124 = vpow2.f32 %v584_v4  ;;  %792 = vadd.xlane.f32.xlu0 %v791_v3 }
 0x3b5   :  { %v4654_v7 = vpop.eup %4114 }
 0x3b6   :  { %v4656_v5 = vpop.eup %4116  ;;  %v591_v8 = vsel %vm551_vm7, %v4654_v7, 0.0 }
 0x3b7   :  { %592 = vadd.xlane.f32.xlu1 %v591_v8  ;;  %v588_v9 = vsel %vm551_vm7, %v4656_v5, 0.0 }
 0x3b8   :  { %589 = vadd.xlane.f32.xlu0 %v588_v9 }
 0x3b9   :  { %v4662_v10 = vpop.eup %4118 }
 0x3ba   :  { %v4664_v13 = vpop.eup %4120  ;;  %v597_v14 = vsel %vm551_vm7, %v4662_v10, 0.0 }
 0x3bb   :  { %598 = vadd.xlane.f32.xlu1 %v597_v14  ;;  %v594_v15 = vsel %vm551_vm7, %v4664_v13, 0.0 }
 0x3bc   :  { %595 = vadd.xlane.f32.xlu0 %v594_v15 }
 0x3bd   :  { %v4670_v16 = vpop.eup %4122 }
 0x3be   :  { %v4672_v18 = vpop.eup %4124  ;;  %v603_v19 = vsel %vm551_vm7, %v4670_v16, 0.0 }
 0x3bf   :  { %604 = vadd.xlane.f32.xlu1 %v603_v19  ;;  %v600_v20 = vsel %vm551_vm7, %v4672_v18, 0.0 }
 0x3c0   :  { %601 = vadd.xlane.f32.xlu0 %v600_v20 }
 0x438   :  { %v784_v25 = vpop.xlane.xlu1 %783 }
 0x439   :  { %4126 = vrcp.f32 %v784_v25  ;;  %v781_v26 = vpop.xlane.xlu0 %780 }
 0x43a   :  { %4128 = vrcp.f32 %v781_v26 }
 0x43c   :  { %v790_v28 = vpop.xlane.xlu1 %789 }
 0x43d   :  { %4130 = vrcp.f32 %v790_v28  ;;  %v787_v31 = vpop.xlane.xlu0 %786 }
 0x43e   :  { %4132 = vrcp.f32 %v787_v31 }
 0x440   :  { %v796_v33 = vpop.xlane.xlu1 %795 }
 0x441   :  { %4134 = vrcp.f32 %v796_v33  ;;  %v793_v36 = vpop.xlane.xlu0 %792 }
 0x442   :  { %4136 = vrcp.f32 %v793_v36 }
 0x443   :  { %v4127_v27 = vpop.eup %4126 }
 0x444   :  { %v4129_v37 = vpop.eup %4128  ;;  %v593_v32 = vpop.xlane.xlu1 %592  ;;  %v804_v40 = vmul.f32 %v4127_v27, %v4628_v39 }
 0x445   :  { %4138 = vrcp.f32 %v593_v32  ;;  %v590_v35 = vpop.xlane.xlu0 %589  ;;  %v803_v38 = vmul.f32 %v4129_v37, %v4630_v41 }
 0x446   :  { %4140 = vrcp.f32 %v590_v35 }
 0x447   :  { %v4131_v43 = vpop.eup %4130  ;;  %3651 = vmatprep.mubr.msk.f32.mxu1 %vm551_vm7, %v803_v38 }
 0x448   :  { %v4133_v45 = vpop.eup %4132  ;;  %v599_v48 = vpop.xlane.xlu1 %598  ;;  %3652 = vmatmul.mubr.msk.f32.vlgmr.msra.gmra.mrb[18].mxu1 %vm551_vm7, %v804_v40  ;;  %v806_v41 = vmul.f32 %v4131_v43, %v4636_v42 }
 0x449   :  { %4142 = vrcp.f32 %v599_v48  ;;  %3976 = vmatpush3.bf16.msra.mxu1 %v4562_v51  ;;  %v596_v49 = vpop.xlane.xlu0 %595  ;;  %v805_v50 = vmul.f32 %v4133_v45, %v4638_v56 }
 0x44a   :  { %3978 = vmatprep.subr.bf16.mxu1 %v4579_v6  ;;  %4144 = vrcp.f32 %v596_v49 }
 0x44b   :  { %v4135_v39 = vpop.eup %4134  ;;  %3654 = vmatprep.mubr.msk.f32.mxu1 %vm551_vm7, %v805_v50 }
 0x44c   :  { %v4137_v52 = vpop.eup %4136  ;;  %v605_v53 = vpop.xlane.xlu1 %604  ;;  %3655 = vmatmul.mubr.msk.f32.gmra.mrb[20].mxu1 %vm551_vm7, %v806_v41  ;;  %v808_v56 = vmul.f32 %v4135_v39, %v4646_v0 }
 0x44d   :  { %4146 = vrcp.f32 %v605_v53  ;;  %3980 = vmatpush3.bf16.msra.mxu1 %v4579_v6  ;;  %v602_v54 = vpop.xlane.xlu0 %601  ;;  %v807_v51 = vmul.f32 %v4137_v52, %v4648_v2 }
 0x44e   :  { %3982 = vmatprep.subr.bf16.mxu1 %v4589_v21  ;;  %4148 = vrcp.f32 %v602_v54 }
 0x44f   :  { %v4139_v57 = vpop.eup %4138  ;;  %3657 = vmatprep.mubr.msk.f32.mxu1 %vm551_vm7, %v807_v51 }
 0x450   :  { %v4141_v42 = vpop.eup %4140  ;;  %3658 = vmatmul.mubr.msk.f32.gmra.mrb[22].mxu1 %vm551_vm7, %v808_v56  ;;  %v613_v6 = vmul.f32 %v4139_v57, %v4654_v7 }
 0x451   :  { %3984 = vmatpush3.bf16.msra.mxu1 %v4589_v21  ;;  %v612_v58 = vmul.f32 %v4141_v42, %v4656_v5 }
 0x452   :  { %3697 = vmatprep.subr.bf16.mxu1 %v4302_v44 }
 0x453   :  { %v4143_v59 = vpop.eup %4142  ;;  %3672 = vmatprep.mubr.msk.f32.mxu1 %vm551_vm7, %v612_v58 }
 0x454   :  { %v4145_v60 = vpop.eup %4144  ;;  %3673 = vmatmul.mubr.msk.f32.vlgmr.msra.gmra.mrb[18].mxu1 %vm551_vm7, %v613_v6  ;;  %v615_v62 = vmul.f32 %v4143_v59, %v4662_v10 }
 0x455   :  { %v614_v61 = vmul.f32 %v4145_v60, %v4664_v13  ;;  %v3241_v13 = vld [vmem:[%s5328_s5 + $0x3] ss:$0 sm:$0xff] }
 0x457   :  { %v4147_v63 = vpop.eup %4146  ;;  %3675 = vmatprep.mubr.msk.f32.mxu1 %vm551_vm7, %v614_v61 }
 0x458   :  { %v4149_v21 = vpop.eup %4148  ;;  %3676 = vmatmul.mubr.msk.f32.gmra.mrb[20].mxu1 %vm551_vm7, %v615_v62  ;;  %v617_v1 = vmul.f32 %v4147_v63, %v4670_v16 }
 0x459   :  { %v616_v0 = vmul.f32 %v4149_v21, %v4672_v18 }
 0x45b   :  { %3678 = vmatprep.mubr.msk.f32.mxu1 %vm551_vm7, %v616_v0 }
 0x45c   :  { %3679 = vmatmul.mubr.msk.f32.gmra.mrb[22].mxu1 %vm551_vm7, %v617_v1 }
 0x45d   :  { %3701 = vmatprep.mubr.msk.bf16.mxu1 %vm4303_vm1, %v4302_v44 }
 0x527   :  { %v3674_v2 = vpop.f32.mrb[18].mxu1 }
 0x528   :  { %v1012_v4 = vpop.f32.mrb[19].mxu1 }
 0x529   :  { %v1041_v34 = vpack.c.bf16 %v3674_v2, %v1012_v4 }
 0x52b   :  { %v3677_v3 = vpop.f32.mrb[20].mxu1  ;;  %3686 = vmatmul.mubr.msk.bf16.vlgmr.msra.gmra.mrb[32].mxu0 %vm48_vm0, %v1041_v34 }
 0x52c   :  { %v1022_v7 = vpop.f32.mrb[21].mxu1  ;;  %3689 = vmatprep.mubr.msk.bf16.mxu0 %vm4303_vm1, %v4302_v44 }
 0x52d   :  { %v1042_v5 = vpack.c.bf16 %v3677_v3, %v1022_v7 }
 0x52f   :  { %v3680_v8 = vpop.f32.mrb[22].mxu1 }
 0x530   :  { %v1032_v9 = vpop.f32.mrb[23].mxu1 }
 0x531   :  { %v1043_v10 = vpack.c.bf16 %v3680_v8, %v1032_v9 }
 0x533   :  { %3690 = vmatmul.mubr.msk.bf16.gmra.mrb[36].mxu0 %vm48_vm0, %v1042_v5 }
 0x534   :  { %3693 = vmatprep.mubr.msk.bf16.mxu0 %vm4303_vm1, %v4302_v44 }
 0x53b   :  { %3694 = vmatmul.mubr.msk.bf16.gmra.mrb[40].mxu0 %vm48_vm0, %v1043_v10 }
 0x53c   :  { %3721 = vmatprep.mubr.msk.bf16.mxu0 %vm4303_vm1, %v4302_v44 }
 0x5fe   :  { %v1109_v14 = vpop.f32.mrb[32].mxu0 }
 0x5ff   :  { %v1110_v15 = vadd.f32 %v3241_v13, %v1109_v14  ;;  %v3687_v16 = vpop.f32.mrb[33].mxu0  ;;  %v4068_v14 = vld [vmem:[%s5326_s3] sm:$0xff]  }
 0x600   :  { %v1112_v18 = vpop.f32.mrb[34].mxu0  ;;  %3698 = vmatpush3.bf16.msra.mxu1 %v4068_v14 }
 0x601   :  { %v1113_v19 = vadd.f32 %v3241_v13, %v1112_v18  ;;  %v3688_v20 = vpop.f32.mrb[35].mxu0  ;;  %v1132_v22 = vadd.f32 %v1110_v15, %v4438_v11  ;;  %3699 = vmatprep.subr.bf16.mxu1 %v4302_v44  ;;  %v4069_v15 = vld [vmem:[%s5326_s3 + $0x8] sm:$0xff]  }
 0x603   :  { %v1140_v23 = vsel %vm48_vm0, %v1132_v22, 0.0  ;;  %v1133_v25 = vadd.f32 %v1113_v19, %v4440_v12 }
 0x604   :  { %1141 = vadd.xlane.f32.xlu0 %v1140_v23  ;;  %3700 = vmatpush3.bf16.msra.mxu1 %v4069_v15 }
 0x605   :  { %v1143_v26 = vsel %vm48_vm0, %v1133_v25, 0.0  ;;  %3733 = vmatprep.subr.bf16.mxu1 %v4302_v44 }
 0x606   :  { %1144 = vadd.xlane.f32.xlu1 %v1143_v26  ;;  %v1117_v28 = vpop.f32.mrb[36].mxu0 }
 0x607   :  { %v1118_v31 = vadd.f32 %v3241_v13, %v1117_v28  ;;  %v3691_v33 = vpop.f32.mrb[37].mxu0 }
 0x608   :  { %v1120_v36 = vpop.f32.mrb[38].mxu0 }
 0x609   :  { %v1121_v27 = vadd.f32 %v3241_v13, %v1120_v36  ;;  %v3692_v37 = vpop.f32.mrb[39].mxu0  ;;  %v1134_v32 = vadd.f32 %v1118_v31, %v4462_v24 }
 0x60a   :  { %v3247_v37 = vld [vmem:[%s5328_s5 + $0x5] ss:$0 sm:$0xff] }
 0x60b   :  { %v1146_v35 = vsel %vm48_vm0, %v1134_v32, 0.0  ;;  %v1135_v11 = vadd.f32 %v1121_v27, %v4455_v17 }
 0x60c   :  { %1147 = vadd.xlane.f32.xlu0 %v1146_v35 }
 0x60d   :  { %v1149_v38 = vsel %vm48_vm0, %v1135_v11, 0.0 }
 0x60e   :  { %1150 = vadd.xlane.f32.xlu1 %v1149_v38  ;;  %v1125_v12 = vpop.f32.mrb[40].mxu0 }
 0x60f   :  { %v1126_v40 = vadd.f32 %v3241_v13, %v1125_v12  ;;  %v3695_v43 = vpop.f32.mrb[41].mxu0 }
 0x610   :  { %v1128_v45 = vpop.f32.mrb[42].mxu0 }
 0x611   :  { %v1129_v48 = vadd.f32 %v3241_v13, %v1128_v45  ;;  %v3696_v49 = vpop.f32.mrb[43].mxu0  ;;  %v1136_v50 = vadd.f32 %v1126_v40, %v4475_v30  ;;  %v3248_v45 = vld [vmem:[%s5328_s5 + $0x6] ss:$0 sm:$0xff] }
 0x613   :  { %v1152_v41 = vsel %vm48_vm0, %v1136_v50, 0.0  ;;  %v1137_v24 = vadd.f32 %v1129_v48, %v4473_v29 }
 0x614   :  { %1153 = vadd.xlane.f32.xlu0 %v1152_v41 }
 0x615   :  { %v1155_v39 = vsel %vm48_vm0, %v1137_v24, 0.0 }
 0x616   :  { %1156 = vadd.xlane.f32.xlu1 %v1155_v39 }
 0x691   :  { %v1142_v17 = vpop.xlane.xlu0 %1141 }
 0x692   :  { %v1158_v52 = vmul.f32 0.03125, %v1142_v17 }
 0x693   :  { %v1145_v53 = vpop.xlane.xlu1 %1144 }
 0x694   :  { %v1164_v54 = vsub.f32 %v1132_v22, %v1158_v52  ;;  %v1159_v51 = vmul.f32 0.03125, %v1145_v53 }
 0x696   :  { %v1165_v56 = vsub.f32 %v1133_v25, %v1159_v51  ;;  %v1170_v57 = vmul.f32 %v1164_v54, %v1164_v54 }
 0x698   :  { %v1176_v42 = vsel %vm48_vm0, %v1170_v57, 0.0  ;;  %v1171_v58 = vmul.f32 %v1165_v56, %v1165_v56 }
 0x699   :  { %1177 = vadd.xlane.f32.xlu0 %v1176_v42  ;;  %v1148_v30 = vpop.xlane.xlu0 %1147 }
 0x69a   :  { %v1160_v6 = vmul.f32 0.03125, %v1148_v30  ;;  %v1179_v59 = vsel %vm48_vm0, %v1171_v58, 0.0 }
 0x69b   :  { %v1151_v29 = vpop.xlane.xlu1 %1150  ;;  %1180 = vadd.xlane.f32.xlu1 %v1179_v59 }
 0x69c   :  { %v1166_v60 = vsub.f32 %v1134_v32, %v1160_v6  ;;  %v1161_v61 = vmul.f32 0.03125, %v1151_v29 }
 0x69e   :  { %v4744_v62 = vsub.f32 %v1135_v11, %v1161_v61  ;;  %v1172_v63 = vmul.f32 %v1166_v60, %v1166_v60 }
 0x6a0   :  { %v1182_v21 = vsel %vm48_vm0, %v1172_v63, 0.0  ;;  %v1173_v0 = vmul.f32 %v4744_v62, %v4744_v62 }
 0x6a1   :  { %1183 = vadd.xlane.f32.xlu0 %v1182_v21  ;;  %v1154_v1 = vpop.xlane.xlu0 %1153 }
 0x6a2   :  { %v1162_v2 = vmul.f32 0.03125, %v1154_v1  ;;  %v1185_v4 = vsel %vm48_vm0, %v1173_v0, 0.0  ;;  %v4070_v1 = vld [vmem:[%s5327_s4] sm:$0xff]  }
 0x6a3   :  { %1186 = vadd.xlane.f32.xlu1 %v1185_v4  ;;  %v1157_v34 = vpop.xlane.xlu1 %1156  ;;  %3714 = vmatpush3.bf16.msra.mxu0 %v4070_v1  ;;  %v4072_v4 = vld [vmem:[%s5327_s4 + $0x10] sm:$0xff]  }
 0x6a4   :  { %v1168_v3 = vsub.f32 %v1136_v50, %v1162_v2  ;;  %v1163_v7 = vmul.f32 0.03125, %v1157_v34  ;;  %3715 = vmatprep.subr.bf16.mxu0 %v4302_v44  ;;  %v4071_v2 = vld [vmem:[%s5327_s4 + $0x8] sm:$0xff]   ;;  %v4073_v34 = vld [vmem:[%s5327_s4 + $0x18] sm:$0xff]  }
 0x6a6   :  { %v1169_v5 = vsub.f32 %v1137_v24, %v1163_v7  ;;  %v1174_v8 = vmul.f32 %v1168_v3, %v1168_v3 }
 0x6a7   :  { %3716 = vmatpush3.bf16.msra.mxu0 %v4071_v2 }
 0x6a8   :  { %v1188_v9 = vsel %vm48_vm0, %v1174_v8, 0.0  ;;  %v1175_v10 = vmul.f32 %v1169_v5, %v1169_v5  ;;  %3717 = vmatprep.subr.bf16.mxu0 %v4302_v44 }
 0x6a9   :  { %1189 = vadd.xlane.f32.xlu0 %v1188_v9 }
 0x6aa   :  { %v1191_v13 = vsel %vm48_vm0, %v1175_v10, 0.0 }
 0x6ab   :  { %1192 = vadd.xlane.f32.xlu1 %v1191_v13  ;;  %3718 = vmatpush3.bf16.msra.mxu0 %v4072_v4 }
 0x6ac   :  { %3719 = vmatprep.subr.bf16.mxu0 %v4302_v44 }
 0x6af   :  { %3720 = vmatpush3.bf16.msra.mxu0 %v4073_v34 }
 0x6b0   :  { %3749 = vmatprep.subr.bf16.mxu0 %v4302_v44 }
 0x726   :  { %v1178_v16 = vpop.xlane.xlu0 %1177 }
 0x727   :  { %v1194_v18 = vmul.f32 0.03125, %v1178_v16 }
 0x728   :  { %v1181_v19 = vpop.xlane.xlu1 %1180 }
 0x729   :  { %v1200_v20 = vadd.f32 1e-12, %v1194_v18  ;;  %v1195_v22 = vmul.f32 0.03125, %v1181_v19 }
 0x72b   :  { %4150 = vrsqrt.f32 %v1200_v20  ;;  %v1201_v23 = vadd.f32 1e-12, %v1195_v22 }
 0x72d   :  { %4152 = vrsqrt.f32 %v1201_v23 }
 0x72e   :  { %v1184_v25 = vpop.xlane.xlu0 %1183 }
 0x72f   :  { %v1196_v26 = vmul.f32 0.03125, %v1184_v25 }
 0x730   :  { %v1187_v28 = vpop.xlane.xlu1 %1186 }
 0x731   :  { %v1202_v31 = vadd.f32 1e-12, %v1196_v26  ;;  %v1197_v33 = vmul.f32 0.03125, %v1187_v28 }
 0x733   :  { %4154 = vrsqrt.f32 %v1202_v31  ;;  %v1203_v36 = vadd.f32 1e-12, %v1197_v33 }
 0x735   :  { %v4151_v27 = vpop.eup %4150  ;;  %4156 = vrsqrt.f32 %v1203_v36 }
 0x736   :  { %v1212_v32 = vmul.f32 %v4151_v27, %v1164_v54  ;;  %v1190_v35 = vpop.xlane.xlu0 %1189 }
 0x737   :  { %v4153_v11 = vpop.eup %4152  ;;  %v1198_v38 = vmul.f32 0.03125, %v1190_v35 }
 0x738   :  { %v1222_v12 = vmul.f32 %v3247_v37, %v1212_v32  ;;  %v1213_v40 = vmul.f32 %v4153_v11, %v1165_v56  ;;  %v1193_v43 = vpop.xlane.xlu1 %1192 }
 0x739   :  { %v1204_v48 = vadd.f32 1e-12, %v1198_v38  ;;  %v1199_v49 = vmul.f32 0.03125, %v1193_v43 }
 0x73a   :  { %v1223_v50 = vmul.f32 %v3247_v37, %v1213_v40  ;;  %v4766_v24 = vadd.f32 %v3248_v45, %v1222_v12 }
 0x73b   :  { %4158 = vrsqrt.f32 %v1204_v48  ;;  %v1205_v41 = vadd.f32 1e-12, %v1199_v49 }
 0x73c   :  { %v4768_v39 = vadd.f32 %v3248_v45, %v1223_v50 }
 0x73d   :  { %v4155_v17 = vpop.eup %4154  ;;  %4160 = vrsqrt.f32 %v1205_v41 }
 0x73e   :  { %v1214_v52 = vmul.f32 %v4155_v17, %v1166_v60  ;;  %v1238_v53 = vpack.c.bf16 %v4768_v39, %v4766_v24 }
 0x73f   :  { %v4157_v54 = vpop.eup %4156 }
 0x740   :  { %v1215_v51 = vmul.f32 %v4157_v54, %v4744_v62  ;;  %3702 = vmatmul.mubr.msk.bf16.vlgmr.msra.gmra.mrb[24].mxu1 %vm48_vm0, %v1238_v53  ;;  %v1224_v56 = vmul.f32 %v3247_v37, %v1214_v52 }
 0x741   :  { %3705 = vmatprep.mubr.msk.bf16.mxu1 %vm4303_vm1, %v4302_v44 }
 0x742   :  { %v1225_v57 = vmul.f32 %v3247_v37, %v1215_v51  ;;  %v4776_v42 = vadd.f32 %v3248_v45, %v1224_v56 }
 0x744   :  { %v4778_v58 = vadd.f32 %v3248_v45, %v1225_v57 }
 0x745   :  { %v4159_v30 = vpop.eup %4158 }
 0x746   :  { %v1216_v6 = vmul.f32 %v4159_v30, %v1168_v3  ;;  %v1239_v59 = vpack.c.bf16 %v4778_v58, %v4776_v42  ;;  %v3249_v3 = vld [vmem:[%s5329_s6] ss:$0 sm:$0xff] }
 0x747   :  { %v4161_v29 = vpop.eup %4160 }
 0x748   :  { %v1217_v60 = vmul.f32 %v4161_v29, %v1169_v5  ;;  %3706 = vmatmul.mubr.msk.bf16.gmra.mrb[28].mxu1 %vm48_vm0, %v1239_v59  ;;  %v1226_v61 = vmul.f32 %v3247_v37, %v1216_v6 }
 0x749   :  { %3709 = vmatprep.mubr.msk.bf16.mxu1 %vm4303_vm1, %v4302_v44 }
 0x74a   :  { %v1227_v62 = vmul.f32 %v3247_v37, %v1217_v60  ;;  %v4785_v63 = vadd.f32 %v3248_v45, %v1226_v61 }
 0x74c   :  { %v4787_v21 = vadd.f32 %v3248_v45, %v1227_v62 }
 0x74e   :  { %v1240_v0 = vpack.c.bf16 %v4787_v21, %v4785_v63 }
 0x750   :  { %3710 = vmatmul.mubr.msk.bf16.gmra.mrb[32].mxu1 %vm48_vm0, %v1240_v0 }
 0x751   :  { %3737 = vmatprep.mubr.msk.bf16.mxu1 %vm4303_vm1, %v4302_v44 }
 0x813   :  { %v1305_v7 = vpop.f32.mrb[24].mxu1 }
 0x814   :  { %v1306_v5 = vadd.f32 %v3249_v3, %v1305_v7  ;;  %v3703_v8 = vpop.f32.mrb[25].mxu1 }
 0x815   :  { %v1308_v9 = vpop.f32.mrb[26].mxu1 }
 0x816   :  { %v1328_v10 = vmul.f32 %v1306_v5, %v1306_v5  ;;  %v1309_v13 = vadd.f32 %v3249_v3, %v1308_v9  ;;  %v3704_v14 = vpop.f32.mrb[27].mxu1 }
 0x818   :  { %v1334_v15 = vmul.f32 %v1328_v10, %v1306_v5  ;;  %v1329_v16 = vmul.f32 %v1309_v13, %v1309_v13 }
 0x81a   :  { %v1340_v18 = vmul.f32 0.044715, %v1334_v15  ;;  %v1335_v19 = vmul.f32 %v1329_v16, %v1309_v13 }
 0x81b   :  { %v1313_v20 = vpop.f32.mrb[28].mxu1 }
 0x81c   :  { %v1346_v22 = vadd.f32 %v1340_v18, %v1306_v5  ;;  %v1341_v23 = vmul.f32 0.044715, %v1335_v19  ;;  %v1314_v25 = vadd.f32 %v3249_v3, %v1313_v20  ;;  %v3707_v26 = vpop.f32.mrb[29].mxu1 }
 0x81d   :  { %v1316_v28 = vpop.f32.mrb[30].mxu1 }
 0x81e   :  { %v1352_v31 = vmul.f32 0.7978846, %v1346_v22  ;;  %v1347_v33 = vadd.f32 %v1341_v23, %v1309_v13  ;;  %v1330_v36 = vmul.f32 %v1314_v25, %v1314_v25  ;;  %v1317_v27 = vadd.f32 %v3249_v3, %v1316_v28  ;;  %v3708_v37 = vpop.f32.mrb[31].mxu1 }
 0x820   :  { %4162 = vtanh.f32 %v1352_v31  ;;  %v1353_v32 = vmul.f32 0.7978846, %v1347_v33  ;;  %v1336_v35 = vmul.f32 %v1330_v36, %v1314_v25  ;;  %v1331_v11 = vmul.f32 %v1317_v27, %v1317_v27 }
 0x822   :  { %4164 = vtanh.f32 %v1353_v32  ;;  %v1342_v38 = vmul.f32 0.044715, %v1336_v35  ;;  %v1337_v12 = vmul.f32 %v1331_v11, %v1317_v27 }
 0x823   :  { %v1321_v40 = vpop.f32.mrb[32].mxu1 }
 0x824   :  { %v1348_v43 = vadd.f32 %v1342_v38, %v1314_v25  ;;  %v1343_v45 = vmul.f32 0.044715, %v1337_v12  ;;  %v1322_v48 = vadd.f32 %v3249_v3, %v1321_v40  ;;  %v3711_v49 = vpop.f32.mrb[33].mxu1 }
 0x825   :  { %v1324_v50 = vpop.f32.mrb[34].mxu1 }
 0x826   :  { %v1354_v41 = vmul.f32 0.7978846, %v1348_v43  ;;  %v1349_v17 = vadd.f32 %v1343_v45, %v1317_v27  ;;  %v1332_v52 = vmul.f32 %v1322_v48, %v1322_v48  ;;  %v1325_v53 = vadd.f32 %v3249_v3, %v1324_v50  ;;  %v3712_v54 = vpop.f32.mrb[35].mxu1 }
 0x828   :  { %4166 = vtanh.f32 %v1354_v41  ;;  %v1355_v51 = vmul.f32 0.7978846, %v1349_v17  ;;  %v1338_v56 = vmul.f32 %v1332_v52, %v1322_v48  ;;  %v1333_v57 = vmul.f32 %v1325_v53, %v1325_v53 }
 0x82a   :  { %v4163_v30 = vpop.eup %4162  ;;  %4168 = vtanh.f32 %v1355_v51  ;;  %v1344_v6 = vmul.f32 0.044715, %v1338_v56  ;;  %v1339_v59 = vmul.f32 %v1333_v57, %v1325_v53 }
 0x82b   :  { %v1364_v29 = vadd.f32 1.0, %v4163_v30 }
 0x82c   :  { %v4165_v60 = vpop.eup %4164  ;;  %v1350_v61 = vadd.f32 %v1344_v6, %v1322_v48  ;;  %v1345_v62 = vmul.f32 0.044715, %v1339_v59 }
 0x82d   :  { %v1370_v0 = vmul.f32 0.5, %v1364_v29  ;;  %v1365_v1 = vadd.f32 1.0, %v4165_v60 }
 0x82e   :  { %v1356_v2 = vmul.f32 0.7978846, %v1350_v61  ;;  %v1351_v4 = vadd.f32 %v1345_v62, %v1325_v53 }
 0x82f   :  { %v1371_v34 = vmul.f32 0.5, %v1365_v1  ;;  %v1376_v7 = vmul.f32 %v1370_v0, %v1306_v5 }
 0x830   :  { %4170 = vtanh.f32 %v1356_v2  ;;  %v1357_v3 = vmul.f32 0.7978846, %v1351_v4 }
 0x831   :  { %v1377_v8 = vmul.f32 %v1371_v34, %v1309_v13 }
 0x832   :  { %v4167_v9 = vpop.eup %4166  ;;  %4172 = vtanh.f32 %v1357_v3 }
 0x833   :  { %v1382_v10 = vpack.c.bf16 %v1377_v8, %v1376_v7  ;;  %v1366_v14 = vadd.f32 1.0, %v4167_v9 }
 0x834   :  { %v4169_v15 = vpop.eup %4168 }
 0x835   :  { %v1372_v16 = vmul.f32 0.5, %v1366_v14  ;;  %v1367_v18 = vadd.f32 1.0, %v4169_v15  ;;  %3722 = vmatmul.mubr.msk.bf16.vlgmr.msra.gmra.mrb[44].mxu0 %vm1422_vm8, %v1382_v10 }
 0x836   :  { %3725 = vmatprep.mubr.msk.bf16.mxu0 %vm4303_vm1, %v4302_v44 }
 0x837   :  { %v1373_v19 = vmul.f32 0.5, %v1367_v18  ;;  %v1378_v20 = vmul.f32 %v1372_v16, %v1314_v25  ;;  %v3255_v25 = vld [vmem:[%s5328_s5 + $0x4] ss:$0 sm:$0xff] }
 0x839   :  { %v1379_v22 = vmul.f32 %v1373_v19, %v1317_v27 }
 0x83a   :  { %v4171_v23 = vpop.eup %4170 }
 0x83b   :  { %v1368_v26 = vadd.f32 1.0, %v4171_v23  ;;  %v1383_v5 = vpack.c.bf16 %v1379_v22, %v1378_v20 }
 0x83c   :  { %v4173_v13 = vpop.eup %4172 }
 0x83d   :  { %v1374_v28 = vmul.f32 0.5, %v1368_v26  ;;  %v1369_v31 = vadd.f32 1.0, %v4173_v13  ;;  %3726 = vmatmul.mubr.msk.bf16.gmra.mrb[48].mxu0 %vm1422_vm8, %v1383_v5 }
 0x83e   :  { %3729 = vmatprep.mubr.msk.bf16.mxu0 %vm4303_vm1, %v4302_v44 }
 0x83f   :  { %v1375_v33 = vmul.f32 0.5, %v1369_v31  ;;  %v1380_v36 = vmul.f32 %v1374_v28, %v1322_v48 }
 0x841   :  { %v1381_v37 = vmul.f32 %v1375_v33, %v1325_v53 }
 0x843   :  { %v1384_v32 = vpack.c.bf16 %v1381_v37, %v1380_v36 }
 0x845   :  { %3730 = vmatmul.mubr.msk.bf16.gmra.mrb[52].mxu0 %vm1422_vm8, %v1384_v32 }
 0x846   :  { %3753 = vmatprep.mubr.msk.bf16.mxu0 %vm4303_vm1, %v4302_v44 }
 0x908   :  { %v1466_v27 = vpop.f32.mrb[44].mxu0 }
 0x909   :  { %v1467_v35 = vadd.f32 %v3255_v25, %v1466_v27  ;;  %v3723_v11 = vpop.f32.mrb[45].mxu0  ;;  %v4074_v27 = vld [vmem:[%s5325_s2 + $0x50] sm:$0xff]  }
 0x90a   :  { %v1469_v38 = vpop.f32.mrb[46].mxu0  ;;  %3750 = vmatpush3.bf16.msra.mxu0 %v4074_v27  ;;  %v4075_v11 = vld [vmem:[%s5325_s2 + $0x58] sm:$0xff]  }
 0x90b   :  { %v1470_v12 = vadd.f32 %v3255_v25, %v1469_v38  ;;  %v3724_v40 = vpop.f32.mrb[47].mxu0  ;;  %v1489_v43 = vadd.f32 %v1467_v35, %v4766_v24  ;;  %v4076_v35 = vld [vmem:[%s5325_s2 + $0x40] sm:$0xff]   ;;  %3751 = vmatprep.subr.bf16.mxu0 %v4302_v44  ;;  %v4077_v38 = vld [vmem:[%s5325_s2 + $0x48] sm:$0xff]  }
 0x90c   :  { %3734 = vmatpush3.bf16.msra.mxu1 %v4076_v35 }
 0x90d   :  { %v1497_v45 = vsel %vm48_vm0, %v1489_v43, 0.0  ;;  %v1490_v48 = vadd.f32 %v1470_v12, %v4768_v39  ;;  %3735 = vmatprep.subr.bf16.mxu1 %v4302_v44 }
 0x90e   :  { %1498 = vadd.xlane.f32.xlu0 %v1497_v45  ;;  %3752 = vmatpush3.bf16.msra.mxu0 %v4075_v11 }
 0x90f   :  { %v1500_v49 = vsel %vm48_vm0, %v1490_v48, 0.0 }
 0x910   :  { %1501 = vadd.xlane.f32.xlu1 %v1500_v49  ;;  %v1474_v50 = vpop.f32.mrb[48].mxu0  ;;  %3736 = vmatpush3.bf16.msra.mxu1 %v4077_v38 }
 0x911   :  { %v1475_v41 = vadd.f32 %v3255_v25, %v1474_v50  ;;  %v3727_v17 = vpop.f32.mrb[49].mxu0  ;;  %3765 = vmatprep.subr.bf16.mxu1 %v4302_v44 }
 0x912   :  { %v1477_v52 = vpop.f32.mrb[50].mxu0 }
 0x913   :  { %v1478_v53 = vadd.f32 %v3255_v25, %v1477_v52  ;;  %v3728_v54 = vpop.f32.mrb[51].mxu0  ;;  %v1491_v51 = vadd.f32 %v1475_v41, %v4776_v42 }
 0x915   :  { %v1503_v56 = vsel %vm48_vm0, %v1491_v51, 0.0  ;;  %v1492_v24 = vadd.f32 %v1478_v53, %v4778_v58 }
 0x916   :  { %1504 = vadd.xlane.f32.xlu0 %v1503_v56  ;;  %v3263_v56 = vld [vmem:[%s5328_s5 + $0x7] ss:$0 sm:$0xff] }
 0x917   :  { %v1506_v57 = vsel %vm48_vm0, %v1492_v24, 0.0 }
 0x918   :  { %1507 = vadd.xlane.f32.xlu1 %v1506_v57  ;;  %v1482_v39 = vpop.f32.mrb[52].mxu0 }
 0x919   :  { %v1483_v30 = vadd.f32 %v3255_v25, %v1482_v39  ;;  %v3731_v6 = vpop.f32.mrb[53].mxu0 }
 0x91a   :  { %v1485_v59 = vpop.f32.mrb[54].mxu0 }
 0x91b   :  { %v1486_v29 = vadd.f32 %v3255_v25, %v1485_v59  ;;  %v3732_v60 = vpop.f32.mrb[55].mxu0  ;;  %v1493_v61 = vadd.f32 %v1483_v30, %v4785_v63 }
 0x91c   :  { %v3264_v60 = vld [vmem:[%s5328_s5 + $0x8] ss:$0 sm:$0xff] }
 0x91d   :  { %v1509_v62 = vsel %vm48_vm0, %v1493_v61, 0.0  ;;  %v1494_v42 = vadd.f32 %v1486_v29, %v4787_v21 }
 0x91e   :  { %1510 = vadd.xlane.f32.xlu0 %v1509_v62 }
 0x91f   :  { %v1512_v0 = vsel %vm48_vm0, %v1494_v42, 0.0 }
 0x920   :  { %1513 = vadd.xlane.f32.xlu1 %v1512_v0 }
 0x99b   :  { %v1499_v58 = vpop.xlane.xlu0 %1498 }
 0x99c   :  { %v1515_v1 = vmul.f32 0.03125, %v1499_v58 }
 0x99d   :  { %v1502_v2 = vpop.xlane.xlu1 %1501 }
 0x99e   :  { %v1521_v4 = vsub.f32 %v1489_v43, %v1515_v1  ;;  %v1516_v34 = vmul.f32 0.03125, %v1502_v2 }
 0x9a0   :  { %v4837_v3 = vsub.f32 %v1490_v48, %v1516_v34  ;;  %v1527_v7 = vmul.f32 %v1521_v4, %v1521_v4 }
 0x9a2   :  { %v1533_v8 = vsel %vm48_vm0, %v1527_v7, 0.0  ;;  %v1528_v63 = vmul.f32 %v4837_v3, %v4837_v3 }
 0x9a3   :  { %1534 = vadd.xlane.f32.xlu0 %v1533_v8  ;;  %v1505_v9 = vpop.xlane.xlu0 %1504 }
 0x9a4   :  { %v1517_v21 = vmul.f32 0.03125, %v1505_v9  ;;  %v1536_v10 = vsel %vm48_vm0, %v1528_v63, 0.0 }
 0x9a5   :  { %v1508_v14 = vpop.xlane.xlu1 %1507  ;;  %1537 = vadd.xlane.f32.xlu1 %v1536_v10 }
 0x9a6   :  { %v4843_v15 = vsub.f32 %v1491_v51, %v1517_v21  ;;  %v1518_v16 = vmul.f32 0.03125, %v1508_v14  ;;  %v4079_v21 = vld [vmem:[%s5325_s2 + $0x68] sm:$0xff]  }
 0x9a8   :  { %v4845_v18 = vsub.f32 %v1492_v24, %v1518_v16  ;;  %v1529_v19 = vmul.f32 %v4843_v15, %v4843_v15 }
 0x9aa   :  { %v1539_v20 = vsel %vm48_vm0, %v1529_v19, 0.0  ;;  %v1530_v22 = vmul.f32 %v4845_v18, %v4845_v18 }
 0x9ab   :  { %1540 = vadd.xlane.f32.xlu0 %v1539_v20  ;;  %v1511_v23 = vpop.xlane.xlu0 %1510 }
 0x9ac   :  { %v1519_v26 = vmul.f32 0.03125, %v1511_v23  ;;  %v1542_v5 = vsel %vm48_vm0, %v1530_v22, 0.0 }
 0x9ad   :  { %1543 = vadd.xlane.f32.xlu1 %v1542_v5  ;;  %v1514_v13 = vpop.xlane.xlu1 %1513 }
 0x9ae   :  { %v4853_v28 = vsub.f32 %v1493_v61, %v1519_v26  ;;  %v1520_v31 = vmul.f32 0.03125, %v1514_v13 }
 0x9b0   :  { %v4855_v33 = vsub.f32 %v1494_v42, %v1520_v31  ;;  %v1531_v36 = vmul.f32 %v4853_v28, %v4853_v28  ;;  %v3281_v31 = vld [vmem:[%s5328_s5 + $0x11] ss:$0 sm:$0xff] }
 0x9b2   :  { %v1545_v37 = vsel %vm48_vm0, %v1531_v36, 0.0  ;;  %v1532_v32 = vmul.f32 %v4855_v33, %v4855_v33 }
 0x9b3   :  { %1546 = vadd.xlane.f32.xlu0 %v1545_v37 }
 0x9b4   :  { %v1548_v25 = vsel %vm48_vm0, %v1532_v32, 0.0 }
 0x9b5   :  { %1549 = vadd.xlane.f32.xlu1 %v1548_v25 }
 0xa30   :  { %v1535_v12 = vpop.xlane.xlu0 %1534 }
 0xa31   :  { %v1551_v40 = vmul.f32 0.03125, %v1535_v12 }
 0xa32   :  { %v1538_v43 = vpop.xlane.xlu1 %1537 }
 0xa33   :  { %v1557_v45 = vadd.f32 1e-12, %v1551_v40  ;;  %v1552_v48 = vmul.f32 0.03125, %v1538_v43 }
 0xa35   :  { %4174 = vrsqrt.f32 %v1557_v45  ;;  %v1558_v49 = vadd.f32 1e-12, %v1552_v48 }
 0xa37   :  { %4176 = vrsqrt.f32 %v1558_v49 }
 0xa38   :  { %v1541_v50 = vpop.xlane.xlu0 %1540 }
 0xa39   :  { %v1553_v41 = vmul.f32 0.03125, %v1541_v50 }
 0xa3a   :  { %v1544_v17 = vpop.xlane.xlu1 %1543 }
 0xa3b   :  { %v1559_v52 = vadd.f32 1e-12, %v1553_v41  ;;  %v1554_v53 = vmul.f32 0.03125, %v1544_v17 }
 0xa3d   :  { %4178 = vrsqrt.f32 %v1559_v52  ;;  %v1560_v54 = vadd.f32 1e-12, %v1554_v53 }
 0xa3f   :  { %v4175_v51 = vpop.eup %4174  ;;  %4180 = vrsqrt.f32 %v1560_v54 }
 0xa40   :  { %v1569_v24 = vmul.f32 %v4175_v51, %v1521_v4  ;;  %v1547_v57 = vpop.xlane.xlu0 %1546 }
 0xa41   :  { %v4177_v39 = vpop.eup %4176  ;;  %v1555_v30 = vmul.f32 0.03125, %v1547_v57 }
 0xa42   :  { %v1579_v6 = vmul.f32 %v3263_v56, %v1569_v24  ;;  %v1570_v59 = vmul.f32 %v4177_v39, %v4837_v3  ;;  %v1550_v29 = vpop.xlane.xlu1 %1549  ;;  %v4078_v3 = vld [vmem:[%s5325_s2 + $0x60] sm:$0xff]  }
 0xa43   :  { %v1561_v61 = vadd.f32 1e-12, %v1555_v30  ;;  %v1556_v62 = vmul.f32 0.03125, %v1550_v29 }
 0xa44   :  { %v1580_v42 = vmul.f32 %v3263_v56, %v1570_v59  ;;  %v4885_v58 = vadd.f32 %v3264_v60, %v1579_v6 }
 0xa45   :  { %4182 = vrsqrt.f32 %v1561_v61  ;;  %v1562_v0 = vadd.f32 1e-12, %v1556_v62 }
 0xa46   :  { %v4887_v1 = vadd.f32 %v3264_v60, %v1580_v42 }
 0xa47   :  { %v4179_v2 = vpop.eup %4178  ;;  %4184 = vrsqrt.f32 %v1562_v0 }
 0xa48   :  { %v1571_v4 = vmul.f32 %v4179_v2, %v4843_v15  ;;  %v1595_v34 = vpack.c.bf16 %v4887_v1, %v4885_v58 }
 0xa49   :  { %v4181_v7 = vpop.eup %4180 }
 0xa4a   :  { %v1572_v8 = vmul.f32 %v4181_v7, %v4845_v18  ;;  %3738 = vmatmul.mubr.msk.bf16.vlgmr.msra.gmra.mrb[36].mxu1 %vm48_vm0, %v1595_v34  ;;  %3754 = vmatmul.mubr.msk.bf16.vlgmr.msra.gmra.mrb[56].mxu0 %vm48_vm0, %v1595_v34  ;;  %v1581_v63 = vmul.f32 %v3263_v56, %v1571_v4 }
 0xa4b   :  { %3741 = vmatprep.mubr.msk.bf16.mxu1 %vm4303_vm1, %v4302_v44  ;;  %3757 = vmatprep.mubr.msk.bf16.mxu0 %vm4303_vm1, %v4302_v44 }
 0xa4c   :  { %v1582_v9 = vmul.f32 %v3263_v56, %v1572_v8  ;;  %3766 = vmatpush3.bf16.msra.mxu1 %v4078_v3  ;;  %v4906_v10 = vadd.f32 %v3264_v60, %v1581_v63 }
 0xa4d   :  { %3767 = vmatprep.subr.bf16.mxu1 %v4302_v44 }
 0xa4e   :  { %v4908_v14 = vadd.f32 %v3264_v60, %v1582_v9 }
 0xa4f   :  { %v4183_v15 = vpop.eup %4182 }
 0xa50   :  { %v1573_v16 = vmul.f32 %v4183_v15, %v4853_v28  ;;  %v1596_v18 = vpack.c.bf16 %v4908_v14, %v4906_v10  ;;  %3768 = vmatpush3.bf16.msra.mxu1 %v4079_v21  ;;  %v4940_v28 = vld [vmem:[%s5328_s5 + $0x10] ss:$0 sm:$0xff] }
 0xa51   :  { %v4185_v19 = vpop.eup %4184 }
 0xa52   :  { %v1574_v20 = vmul.f32 %v4185_v19, %v4855_v33  ;;  %3742 = vmatmul.mubr.msk.bf16.gmra.mrb[40].mxu1 %vm48_vm0, %v1596_v18  ;;  %3758 = vmatmul.mubr.msk.bf16.gmra.mrb[60].mxu0 %vm48_vm0, %v1596_v18  ;;  %v1583_v22 = vmul.f32 %v3263_v56, %v1573_v16 }
 0xa53   :  { %3745 = vmatprep.mubr.msk.bf16.mxu1 %vm4303_vm1, %v4302_v44  ;;  %3761 = vmatprep.mubr.msk.bf16.mxu0 %vm4303_vm1, %v4302_v44 }
 0xa54   :  { %v1584_v23 = vmul.f32 %v3263_v56, %v1574_v20  ;;  %v4920_v26 = vadd.f32 %v3264_v60, %v1583_v22  ;;  %v3292_v20 = vld [vmem:[%s5328_s5 + $0x12] ss:$0 sm:$0xff] }
 0xa56   :  { %v4922_v5 = vadd.f32 %v3264_v60, %v1584_v23 }
 0xa58   :  { %v1597_v13 = vpack.c.bf16 %v4922_v5, %v4920_v26 }
 0xa5a   :  { %3746 = vmatmul.mubr.msk.bf16.gmra.mrb[44].mxu1 %vm48_vm0, %v1597_v13  ;;  %3762 = vmatmul.mubr.msk.bf16.gmra.mrb[64].mxu0 %vm48_vm0, %v1597_v13 }
 0xa5b   :  { %3769 = vmatprep.mubr.msk.bf16.mxu1 %vm4303_vm1, %v4302_v44 }
 0xa62   :  { %3770 = vmatmul.mubr.msk.bf16.vlgmr.msra.gmra.mrb[48].mxu1 %vm48_vm0, %v1595_v34 }
 0xa63   :  { %3773 = vmatprep.mubr.msk.bf16.mxu1 %vm4303_vm1, %v4302_v44 }
 0xa6a   :  { %3774 = vmatmul.mubr.msk.bf16.gmra.mrb[52].mxu1 %vm48_vm0, %v1596_v18 }
 0xa6b   :  { %3777 = vmatprep.mubr.msk.bf16.mxu1 %vm4303_vm1, %v4302_v44 }
 0xa72   :  { %3778 = vmatmul.mubr.msk.bf16.gmra.mrb[56].mxu1 %vm48_vm0, %v1597_v13 }
 0xb1d   :  { %v1664_v33 = vpop.f32.mrb[36].mxu1  ;;  %v1749_v36 = vpop.f32.mrb[56].mxu0 }
 0xb1e   :  { %v1665_v37 = vadd.f32 %v4940_v28, %v1664_v33  ;;  %v3739_v32 = vpop.f32.mrb[37].mxu1  ;;  %v3755_v25 = vpop.f32.mrb[57].mxu0  ;;  %v1750_v27 = vadd.f32 %v3281_v31, %v1749_v36 }
 0xb1f   :  { %v4946_v35 = vpop.f32.mrb[38].mxu1  ;;  %v1752_v11 = vpop.f32.mrb[58].mxu0 }
 0xb20   :  { %v1687_v38 = vmul.f32 0.25, %v1665_v37  ;;  %v3740_v12 = vpop.f32.mrb[39].mxu1  ;;  %v3756_v40 = vpop.f32.mrb[59].mxu0  ;;  %v1753_v43 = vadd.f32 %v3281_v31, %v1752_v11  ;;  %v1851_v45 = vmul.f32 %v4502_v46, %v1750_v27  ;;  %v2060_v48 = vmul.f32 %v4505_v47, %v1750_v27 }
 0xb21   :  { %v1668_v25 = vadd.f32 %v4940_v28, %v4946_v35 }
 0xb22   :  { %3793 = vmatprep.mubr.msk.f32.mxu0 %vm48_vm0, %v1687_v38  ;;  %3814 = vmatprep.mubr.msk.f32.mxu1 %vm48_vm0, %v1687_v38  ;;  %v1852_v49 = vmul.f32 %v4502_v46, %v1753_v43  ;;  %v2061_v50 = vmul.f32 %v4505_v47, %v1753_v43 }
 0xb23   :  { %v1688_v55 = vmul.f32 0.25, %v1668_v25 }
 0xb24   :  { %v3985_v41 = vpack.c.bf16 %v1852_v49, %v1851_v45  ;;  %v4003_v17 = vpack.c.bf16 %v2061_v50, %v2060_v48 }
 0xb25   :  { %v1672_v52 = vpop.f32.mrb[40].mxu1  ;;  %v1757_v53 = vpop.f32.mrb[60].mxu0 }
 0xb26   :  { %v3743_v54 = vpop.f32.mrb[41].mxu1  ;;  %v3759_v51 = vpop.f32.mrb[61].mxu0  ;;  %v1758_v56 = vadd.f32 %v3281_v31, %v1757_v53  ;;  %3987 = vmatprep.subr.msk.bf16.mxu0 %vm4515_vm6, %v3985_v41  ;;  %4005 = vmatprep.subr.msk.bf16.mxu1 %vm4515_vm6, %v4003_v17  ;;  %v1673_v27 = vadd.f32 %v4940_v28, %v1672_v52 }
 0xb27   :  { %v1675_v24 = vpop.f32.mrb[42].mxu1  ;;  %v1760_v57 = vpop.f32.mrb[62].mxu0  ;;  %3990 = vmatpush3.bf16.xpose.msk.msra.mxu0 %vm4515_vm6, %v3985_v41  ;;  %4008 = vmatpush3.bf16.xpose.msk.msra.mxu1 %vm4515_vm6, %v4003_v17 }
 0xb28   :  { %v3744_v39 = vpop.f32.mrb[43].mxu1  ;;  %v3760_v30 = vpop.f32.mrb[63].mxu0  ;;  %v1761_v6 = vadd.f32 %v3281_v31, %v1760_v57  ;;  %v1853_v59 = vmul.f32 %v4502_v46, %v1758_v56  ;;  %v2062_v29 = vmul.f32 %v4505_v47, %v1758_v56  ;;  %v1676_v48 = vadd.f32 %v4940_v28, %v1675_v24 }
 0xb29   :  { %v1689_v50 = vmul.f32 0.25, %v1673_v27 }
 0xb2a   :  { %v1854_v60 = vmul.f32 %v4502_v46, %v1761_v6  ;;  %v2063_v61 = vmul.f32 %v4505_v47, %v1761_v6  ;;  %v1690_v51 = vmul.f32 0.25, %v1676_v48 }
 0xb2c   :  { %v3991_v62 = vpack.c.bf16 %v1854_v60, %v1853_v59  ;;  %v4009_v42 = vpack.c.bf16 %v2063_v61, %v2062_v29 }
 0xb2d   :  { %v1680_v0 = vpop.f32.mrb[44].mxu1  ;;  %v1765_v2 = vpop.f32.mrb[64].mxu0 }
 0xb2e   :  { %v3747_v4 = vpop.f32.mrb[45].mxu1  ;;  %v3763_v34 = vpop.f32.mrb[65].mxu0  ;;  %v1766_v3 = vadd.f32 %v3281_v31, %v1765_v2  ;;  %3993 = vmatprep.subr.msk.bf16.mxu0 %vm4515_vm6, %v3991_v62  ;;  %4011 = vmatprep.subr.msk.bf16.mxu1 %vm4515_vm6, %v4009_v42  ;;  %v1681_v35 = vadd.f32 %v4940_v28, %v1680_v0 }
 0xb2f   :  { %v1683_v7 = vpop.f32.mrb[46].mxu1  ;;  %v1768_v8 = vpop.f32.mrb[66].mxu0  ;;  %3996 = vmatpush3.bf16.xpose.msk.msra.mxu0 %vm4515_vm6, %v3991_v62  ;;  %4014 = vmatpush3.bf16.xpose.msk.msra.mxu1 %vm4515_vm6, %v4009_v42 }
 0xb30   :  { %v3748_v63 = vpop.f32.mrb[47].mxu1  ;;  %v3764_v9 = vpop.f32.mrb[67].mxu0  ;;  %v1769_v21 = vadd.f32 %v3281_v31, %v1768_v8  ;;  %v1855_v15 = vmul.f32 %v4502_v46, %v1766_v3  ;;  %v2064_v16 = vmul.f32 %v4505_v47, %v1766_v3  ;;  %v1691_v56 = vmul.f32 0.25, %v1681_v35  ;;  %v4277_v35 = vld [vmem:[%s5324_s1 + $0x20] sm:$0xff] }
 0xb31   :  { %v1684_v24 = vadd.f32 %v4940_v28, %v1683_v7 }
 0xb32   :  { %v1856_v18 = vmul.f32 %v4502_v46, %v1769_v21  ;;  %v2065_v19 = vmul.f32 %v4505_v47, %v1769_v21 }
 0xb33   :  { %v1692_v28 = vmul.f32 0.25, %v1684_v24 }
 0xb34   :  { %v3997_v22 = vpack.c.bf16 %v1856_v18, %v1855_v15  ;;  %v4015_v23 = vpack.c.bf16 %v2065_v19, %v2064_v16  ;;  %v4272_v15 = vld [vmem:[%s5324_s1 + $0x8] sm:$0xff] }
 0xb35   :  { %v1828_v13 = vpop.f32.mrb[48].mxu1 }
 0xb36   :  { %v1829_v33 = vadd.f32 %v3292_v20, %v1828_v13  ;;  %v3771_v36 = vpop.f32.mrb[49].mxu1  ;;  %3999 = vmatprep.subr.msk.bf16.mxu0 %vm4515_vm6, %v3997_v22  ;;  %4017 = vmatprep.subr.msk.bf16.mxu1 %vm4515_vm6, %v4015_v23 }
 0xb37   :  { %v1831_v31 = vpop.f32.mrb[50].mxu1  ;;  %4002 = vmatpush3.bf16.xpose.msk.msra.mxu0 %vm4515_vm6, %v3997_v22  ;;  %4020 = vmatpush3.bf16.xpose.msk.msra.mxu1 %vm4515_vm6, %v4015_v23 }
 0xb38   :  { %v1832_v37 = vadd.f32 %v3292_v20, %v1831_v31  ;;  %v3772_v32 = vpop.f32.mrb[51].mxu1  ;;  %3865 = vmatprep.subr.bf16.mxu1 %v4302_v44  ;;  %v2054_v11 = vmul.f32 %v4502_v46, %v1829_v33  ;;  %v2245_v38 = vmul.f32 %v4505_v47, %v1829_v33  ;;  %v4274_v33 = vld [vmem:[%s5324_s1 + $0x18] sm:$0xff] }
 0xb39   :  { %v4275_v32 = vld [vmem:[%s5324_s1 + $0x10] sm:$0xff] }
 0xb3a   :  { %v2055_v12 = vmul.f32 %v4502_v46, %v1832_v37  ;;  %v2246_v40 = vmul.f32 %v4505_v47, %v1832_v37 }
 0xb3c   :  { %v4021_v43 = vpack.c.bf16 %v2246_v40, %v2245_v38  ;;  %v4997_v45 = vpack.c.bf16 %v2055_v12, %v2054_v11  ;;  %v4276_v40 = vld [vmem:[%s5324_s1 + $0x28] sm:$0xff] }
 0xb3d   :  { %v1836_v49 = vpop.f32.mrb[52].mxu1 }
 0xb3e   :  { %v1837_v41 = vadd.f32 %v3292_v20, %v1836_v49  ;;  %v3775_v17 = vpop.f32.mrb[53].mxu1  ;;  %4022 = vmatprep.subr.bf16.mxu0 %v4021_v43  ;;  %3794 = vmatmul.mubr.msk.f32.vlgmr.msra.gmra.mrb[30].mxu0 %vm48_vm0, %v1688_v55 }
 0xb3f   :  { %3815 = vmatmul.mubr.msk.f32.vlgmr.msra.gmra.mrb[60].mxu1 %vm48_vm0, %v1688_v55  ;;  %v1839_v52 = vpop.f32.mrb[54].mxu1  ;;  %3796 = vmatprep.mubr.msk.f32.mxu0 %vm48_vm0, %v1689_v50 }
 0xb40   :  { %v1840_v53 = vadd.f32 %v3292_v20, %v1839_v52  ;;  %3817 = vmatprep.mubr.msk.f32.mxu1 %vm48_vm0, %v1689_v50  ;;  %v3776_v54 = vpop.f32.mrb[55].mxu1  ;;  %4024 = vmatpush3.bf16.msra.mxu0 %v4021_v43  ;;  %v2056_v57 = vmul.f32 %v4502_v46, %v1837_v41  ;;  %v2247_v39 = vmul.f32 %v4505_v47, %v1837_v41 }
 0xb42   :  { %v2057_v30 = vmul.f32 %v4502_v46, %v1840_v53  ;;  %v2248_v6 = vmul.f32 %v4505_v47, %v1840_v53  ;;  %3797 = vmatmul.mubr.msk.f32.gmra.mrb[68].mxu0 %vm48_vm0, %v1690_v51 }
 0xb43   :  { %3818 = vmatmul.mubr.msk.f32.gmra.mrb[62].mxu1 %vm48_vm0, %v1690_v51  ;;  %3799 = vmatprep.mubr.msk.f32.mxu0 %vm48_vm0, %v1691_v56 }
 0xb44   :  { %3820 = vmatprep.mubr.msk.f32.mxu1 %vm48_vm0, %v1691_v56  ;;  %v4025_v59 = vpack.c.bf16 %v2248_v6, %v2247_v39  ;;  %v5014_v29 = vpack.c.bf16 %v2057_v30, %v2056_v57 }
 0xb45   :  { %v1844_v60 = vpop.f32.mrb[56].mxu1 }
 0xb46   :  { %v1845_v61 = vadd.f32 %v3292_v20, %v1844_v60  ;;  %v3779_v62 = vpop.f32.mrb[57].mxu1  ;;  %4026 = vmatprep.subr.bf16.mxu0 %v4025_v59  ;;  %3800 = vmatmul.mubr.msk.f32.gmra.mrb[70].mxu0 %vm48_vm0, %v1692_v28 }
 0xb47   :  { %3821 = vmatmul.mubr.msk.f32.gmra.mrb[64].mxu1 %vm48_vm0, %v1692_v28  ;;  %v1847_v42 = vpop.f32.mrb[58].mxu1  ;;  %4028 = vmatpush3.bf16.msra.mxu0 %v4025_v59 }
 0xb48   :  { %v1848_v0 = vadd.f32 %v3292_v20, %v1847_v42  ;;  %v3780_v2 = vpop.f32.mrb[59].mxu1  ;;  %3869 = vmatprep.mubr.msk.bf16.mxu1 %vm4303_vm1, %v4302_v44  ;;  %v2058_v4 = vmul.f32 %v4502_v46, %v1845_v61  ;;  %v2249_v34 = vmul.f32 %v4505_v47, %v1845_v61 }
 0xb4a   :  { %v2059_v3 = vmul.f32 %v4502_v46, %v1848_v0  ;;  %v2250_v7 = vmul.f32 %v4505_v47, %v1848_v0  ;;  %v4273_v46 = vld [vmem:[%s5324_s1] sm:$0xff] }
 0xb4c   :  { %v4029_v8 = vpack.c.bf16 %v2250_v7, %v2249_v34  ;;  %v5024_v63 = vpack.c.bf16 %v2059_v3, %v2058_v4 }
 0xb4e   :  { %4030 = vmatprep.subr.bf16.mxu0 %v4029_v8 }
 0xb4f   :  { %4032 = vmatpush3.bf16.msra.mxu0 %v4029_v8 }
 0xb50   :  { %4034 = vmatprep.subr.bf16.mxu0 %v4997_v45 }
 0xc11   :  { %v3795_v9 = vpop.f32.mrb[30].mxu0 }
 0xc12   :  { %v3816_v21 = vpop.f32.mrb[60].mxu1  ;;  %v1959_v18 = vpop.f32.mrb[31].mxu0  ;;  %v1965_v50 = vadd.f32 %v4272_v15, %v3795_v9 }
 0xc13   :  { %v2156_v16 = vadd.f32 %v4272_v15, %v3816_v21  ;;  %v2150_v19 = vpop.f32.mrb[61].mxu1  ;;  %v1960_v17 = vadd.f32 %v4273_v46, %v1959_v18 }
 0xc14   :  { %v2151_v47 = vadd.f32 %v4273_v46, %v2150_v19  ;;  %v1991_v54 = vsel %vm551_vm7, %v1965_v50, -inf }
 0xc15   :  { %v2182_v20 = vsel %vm551_vm7, %v2156_v16, -inf  ;;  %v3798_v22 = vpop.f32.mrb[68].mxu0  ;;  %v1988_v56 = vsel %vm551_vm7, %v1960_v17, -inf }
 0xc16   :  { %2183 = vmax.xlane.f32.xlu1 %v2182_v20  ;;  %v3819_v23 = vpop.f32.mrb[62].mxu1  ;;  %v2179_v13 = vsel %vm551_vm7, %v2151_v47, -inf  ;;  %v1969_v31 = vpop.f32.mrb[69].mxu0  ;;  %v1975_v53 = vadd.f32 %v4274_v33, %v3798_v22 }
 0xc17   :  { %v2166_v36 = vadd.f32 %v4274_v33, %v3819_v23  ;;  %v2160_v37 = vpop.f32.mrb[63].mxu1  ;;  %2180 = vmax.xlane.f32.xlu0 %v2179_v13  ;;  %v1970_v51 = vadd.f32 %v4275_v32, %v1969_v31 }
 0xc18   :  { %v2161_v25 = vadd.f32 %v4275_v32, %v2160_v37  ;;  %v1997_v57 = vsel %vm551_vm7, %v1975_v53, -inf }
 0xc19   :  { %v2188_v27 = vsel %vm551_vm7, %v2166_v36, -inf  ;;  %v3801_v11 = vpop.f32.mrb[70].mxu0  ;;  %v1994_v30 = vsel %vm551_vm7, %v1970_v51, -inf }
 0xc1a   :  { %2189 = vmax.xlane.f32.xlu1 %v2188_v27  ;;  %v3822_v38 = vpop.f32.mrb[64].mxu1  ;;  %v2185_v12 = vsel %vm551_vm7, %v2161_v25, -inf  ;;  %v1979_v55 = vpop.f32.mrb[71].mxu0  ;;  %v5053_v24 = vadd.f32 %v4276_v40, %v3801_v11 }
 0xc1b   :  { %v2176_v43 = vadd.f32 %v4276_v40, %v3822_v38  ;;  %v2170_v48 = vpop.f32.mrb[65].mxu1  ;;  %2186 = vmax.xlane.f32.xlu0 %v2185_v12  ;;  %v5056_v39 = vadd.f32 %v4277_v35, %v1979_v55 }
 0xc1c   :  { %v2171_v49 = vadd.f32 %v4277_v35, %v2170_v48  ;;  %v2003_v6 = vsel %vm551_vm7, %v5053_v24, -inf }
 0xc1d   :  { %v2194_v41 = vsel %vm551_vm7, %v2176_v43, -inf  ;;  %v2000_v59 = vsel %vm551_vm7, %v5056_v39, -inf }
 0xc1e   :  { %2195 = vmax.xlane.f32.xlu1 %v2194_v41  ;;  %v2191_v52 = vsel %vm551_vm7, %v2171_v49, -inf }
 0xc1f   :  { %2192 = vmax.xlane.f32.xlu0 %v2191_v52 }
 0xc22   :  { %1992 = vmax.xlane.f32.xlu1 %v1991_v54 }
 0xc23   :  { %1989 = vmax.xlane.f32.xlu0 %v1988_v56 }
 0xc26   :  { %1998 = vmax.xlane.f32.xlu1 %v1997_v57 }
 0xc27   :  { %1995 = vmax.xlane.f32.xlu0 %v1994_v30 }
 0xc2a   :  { %2004 = vmax.xlane.f32.xlu1 %v2003_v6 }
 0xc2b   :  { %2001 = vmax.xlane.f32.xlu0 %v2000_v59 }
 0xca3   :  { %v2184_v28 = vpop.xlane.xlu1 %2183 }
 0xca4   :  { %v2198_v60 = vsub.f32 %v2156_v16, %v2184_v28  ;;  %v2181_v61 = vpop.xlane.xlu0 %2180 }
 0xca5   :  { %v2197_v62 = vsub.f32 %v2151_v47, %v2181_v61 }
 0xca6   :  { %v2205_v42 = vmul.f32 1.442695, %v2198_v60 }
 0xca7   :  { %v2203_v0 = vmul.f32 1.442695, %v2197_v62  ;;  %v2190_v2 = vpop.xlane.xlu1 %2189 }
 0xca8   :  { %4186 = vpow2.f32 %v2205_v42  ;;  %v2200_v4 = vsub.f32 %v2166_v36, %v2190_v2  ;;  %v2187_v34 = vpop.xlane.xlu0 %2186  ;;  %v4080_v2 = vld [vmem:[%s5325_s2 + $0x70] sm:$0xff]  }
 0xca9   :  { %4188 = vpow2.f32 %v2203_v0  ;;  %v2199_v3 = vsub.f32 %v2161_v25, %v2187_v34  ;;  %3866 = vmatpush3.bf16.msra.mxu1 %v4080_v2 }
 0xcaa   :  { %v2209_v7 = vmul.f32 1.442695, %v2200_v4  ;;  %v4081_v4 = vld [vmem:[%s5325_s2 + $0x78] sm:$0xff]   ;;  %3867 = vmatprep.subr.bf16.mxu1 %v4302_v44 }
 0xcab   :  { %v2207_v8 = vmul.f32 1.442695, %v2199_v3  ;;  %v2196_v9 = vpop.xlane.xlu1 %2195 }
 0xcac   :  { %4190 = vpow2.f32 %v2209_v7  ;;  %v2202_v21 = vsub.f32 %v2176_v43, %v2196_v9  ;;  %v2193_v15 = vpop.xlane.xlu0 %2192 }
 0xcad   :  { %4192 = vpow2.f32 %v2207_v8  ;;  %v2201_v18 = vsub.f32 %v2171_v49, %v2193_v15  ;;  %3868 = vmatpush3.bf16.msra.mxu1 %v4081_v4 }
 0xcae   :  { %v2213_v19 = vmul.f32 1.442695, %v2202_v21  ;;  %3897 = vmatprep.subr.bf16.mxu1 %v4302_v44 }
 0xcaf   :  { %v2211_v16 = vmul.f32 1.442695, %v2201_v18  ;;  %v1993_v46 = vpop.xlane.xlu1 %1992 }
 0xcb0   :  { %4194 = vpow2.f32 %v2213_v19  ;;  %v2007_v47 = vsub.f32 %v1965_v50, %v1993_v46  ;;  %v1990_v20 = vpop.xlane.xlu0 %1989 }
 0xcb1   :  { %4196 = vpow2.f32 %v2211_v16  ;;  %v2006_v22 = vsub.f32 %v1960_v17, %v1990_v20 }
 0xcb2   :  { %v5063_v23 = vpop.eup %4186  ;;  %v2014_v13 = vmul.f32 1.442695, %v2007_v47 }
 0xcb3   :  { %v5065_v33 = vpop.eup %4188  ;;  %v2012_v36 = vmul.f32 1.442695, %v2006_v22  ;;  %v1999_v31 = vpop.xlane.xlu1 %1998  ;;  %v2218_v37 = vsel %vm551_vm7, %v5063_v23, 0.0 }
 0xcb4   :  { %4198 = vpow2.f32 %v2014_v13  ;;  %v2009_v32 = vsub.f32 %v1975_v53, %v1999_v31  ;;  %2219 = vadd.xlane.f32.xlu1 %v2218_v37  ;;  %v1996_v25 = vpop.xlane.xlu0 %1995  ;;  %v2215_v27 = vsel %vm551_vm7, %v5065_v33, 0.0 }
 0xcb5   :  { %4200 = vpow2.f32 %v2012_v36  ;;  %v2008_v11 = vsub.f32 %v1970_v51, %v1996_v25  ;;  %2216 = vadd.xlane.f32.xlu0 %v2215_v27 }
 0xcb6   :  { %v5071_v38 = vpop.eup %4190  ;;  %v2018_v12 = vmul.f32 1.442695, %v2009_v32 }
 0xcb7   :  { %v5073_v40 = vpop.eup %4192  ;;  %v2016_v43 = vmul.f32 1.442695, %v2008_v11  ;;  %v2005_v55 = vpop.xlane.xlu1 %2004  ;;  %v2224_v48 = vsel %vm551_vm7, %v5071_v38, 0.0 }
 0xcb8   :  { %4202 = vpow2.f32 %v2018_v12  ;;  %v2011_v35 = vsub.f32 %v5053_v24, %v2005_v55  ;;  %2225 = vadd.xlane.f32.xlu1 %v2224_v48  ;;  %v2002_v49 = vpop.xlane.xlu0 %2001  ;;  %v2221_v50 = vsel %vm551_vm7, %v5073_v40, 0.0 }
 0xcb9   :  { %4204 = vpow2.f32 %v2016_v43  ;;  %v2010_v41 = vsub.f32 %v5056_v39, %v2002_v49  ;;  %2222 = vadd.xlane.f32.xlu0 %v2221_v50 }
 0xcba   :  { %v5081_v17 = vpop.eup %4194  ;;  %v2022_v52 = vmul.f32 1.442695, %v2011_v35 }
 0xcbb   :  { %v5083_v53 = vpop.eup %4196  ;;  %v2020_v54 = vmul.f32 1.442695, %v2010_v41  ;;  %v2230_v51 = vsel %vm551_vm7, %v5081_v17, 0.0 }
 0xcbc   :  { %4206 = vpow2.f32 %v2022_v52  ;;  %2231 = vadd.xlane.f32.xlu1 %v2230_v51  ;;  %v2227_v56 = vsel %vm551_vm7, %v5083_v53, 0.0 }
 0xcbd   :  { %4208 = vpow2.f32 %v2020_v54  ;;  %2228 = vadd.xlane.f32.xlu0 %v2227_v56 }
 0xcbe   :  { %v5089_v24 = vpop.eup %4198 }
 0xcbf   :  { %v5091_v57 = vpop.eup %4200  ;;  %v2027_v39 = vsel %vm551_vm7, %v5089_v24, 0.0 }
 0xcc0   :  { %2028 = vadd.xlane.f32.xlu1 %v2027_v39  ;;  %v2024_v30 = vsel %vm551_vm7, %v5091_v57, 0.0  ;;  %v3339_v39 = vld [vmem:[%s5328_s5 + $0x13] ss:$0 sm:$0xff] }
 0xcc1   :  { %2025 = vadd.xlane.f32.xlu0 %v2024_v30 }
 0xcc2   :  { %v5097_v6 = vpop.eup %4202 }
 0xcc3   :  { %v5099_v59 = vpop.eup %4204  ;;  %v2033_v28 = vsel %vm551_vm7, %v5097_v6, 0.0 }
 0xcc4   :  { %2034 = vadd.xlane.f32.xlu1 %v2033_v28  ;;  %v2030_v60 = vsel %vm551_vm7, %v5099_v59, 0.0 }
 0xcc5   :  { %2031 = vadd.xlane.f32.xlu0 %v2030_v60 }
 0xcc6   :  { %v5105_v61 = vpop.eup %4206 }
 0xcc7   :  { %v5107_v62 = vpop.eup %4208  ;;  %v2039_v42 = vsel %vm551_vm7, %v5105_v61, 0.0 }
 0xcc8   :  { %2040 = vadd.xlane.f32.xlu1 %v2039_v42  ;;  %v2036_v0 = vsel %vm551_vm7, %v5107_v62, 0.0 }
 0xcc9   :  { %2037 = vadd.xlane.f32.xlu0 %v2036_v0 }
 0xd41   :  { %v2220_v34 = vpop.xlane.xlu1 %2219 }
 0xd42   :  { %4210 = vrcp.f32 %v2220_v34  ;;  %v2217_v3 = vpop.xlane.xlu0 %2216 }
 0xd43   :  { %4212 = vrcp.f32 %v2217_v3 }
 0xd45   :  { %v2226_v7 = vpop.xlane.xlu1 %2225 }
 0xd46   :  { %4214 = vrcp.f32 %v2226_v7  ;;  %v2223_v8 = vpop.xlane.xlu0 %2222 }
 0xd47   :  { %4216 = vrcp.f32 %v2223_v8 }
 0xd49   :  { %v2232_v9 = vpop.xlane.xlu1 %2231 }
 0xd4a   :  { %4218 = vrcp.f32 %v2232_v9  ;;  %v2229_v21 = vpop.xlane.xlu0 %2228 }
 0xd4b   :  { %4220 = vrcp.f32 %v2229_v21 }
 0xd4c   :  { %v4211_v15 = vpop.eup %4210 }
 0xd4d   :  { %v4213_v18 = vpop.eup %4212  ;;  %v2029_v19 = vpop.xlane.xlu1 %2028  ;;  %v2240_v47 = vmul.f32 %v4211_v15, %v5063_v23 }
 0xd4e   :  { %4222 = vrcp.f32 %v2029_v19  ;;  %v2026_v16 = vpop.xlane.xlu0 %2025  ;;  %v2239_v46 = vmul.f32 %v4213_v18, %v5065_v33 }
 0xd4f   :  { %4224 = vrcp.f32 %v2026_v16 }
 0xd50   :  { %v4215_v20 = vpop.eup %4214  ;;  %3835 = vmatprep.mubr.msk.f32.mxu0 %vm551_vm7, %v2239_v46 }
 0xd51   :  { %v4217_v22 = vpop.eup %4216  ;;  %v2035_v13 = vpop.xlane.xlu1 %2034  ;;  %3836 = vmatmul.mubr.msk.f32.vlgmr.msra.gmra.mrb[72].mxu0 %vm551_vm7, %v2240_v47  ;;  %v2242_v33 = vmul.f32 %v4215_v20, %v5071_v38 }
 0xd52   :  { %4226 = vrcp.f32 %v2035_v13  ;;  %4036 = vmatpush3.bf16.msra.mxu0 %v4997_v45  ;;  %v2032_v36 = vpop.xlane.xlu0 %2031  ;;  %v2241_v31 = vmul.f32 %v4217_v22, %v5073_v40 }
 0xd53   :  { %4038 = vmatprep.subr.bf16.mxu0 %v5014_v29  ;;  %4228 = vrcp.f32 %v2032_v36 }
 0xd54   :  { %v4219_v23 = vpop.eup %4218  ;;  %3838 = vmatprep.mubr.msk.f32.mxu0 %vm551_vm7, %v2241_v31 }
 0xd55   :  { %v4221_v37 = vpop.eup %4220  ;;  %v2041_v32 = vpop.xlane.xlu1 %2040  ;;  %3839 = vmatmul.mubr.msk.f32.gmra.mrb[74].mxu0 %vm551_vm7, %v2242_v33  ;;  %v2244_v27 = vmul.f32 %v4219_v23, %v5081_v17 }
 0xd56   :  { %4230 = vrcp.f32 %v2041_v32  ;;  %4040 = vmatpush3.bf16.msra.mxu0 %v5014_v29  ;;  %v2038_v25 = vpop.xlane.xlu0 %2037  ;;  %v2243_v45 = vmul.f32 %v4221_v37, %v5083_v53 }
 0xd57   :  { %4042 = vmatprep.subr.bf16.mxu0 %v5024_v63  ;;  %4232 = vrcp.f32 %v2038_v25 }
 0xd58   :  { %v4223_v11 = vpop.eup %4222  ;;  %3841 = vmatprep.mubr.msk.f32.mxu0 %vm551_vm7, %v2243_v45 }
 0xd59   :  { %v4225_v38 = vpop.eup %4224  ;;  %3842 = vmatmul.mubr.msk.f32.gmra.mrb[76].mxu0 %vm551_vm7, %v2244_v27  ;;  %v2049_v29 = vmul.f32 %v4223_v11, %v5089_v24 }
 0xd5a   :  { %4044 = vmatpush3.bf16.msra.mxu0 %v5024_v63  ;;  %v2048_v12 = vmul.f32 %v4225_v38, %v5091_v57 }
 0xd5b   :  { %3881 = vmatprep.subr.bf16.mxu0 %v4302_v44 }
 0xd5c   :  { %v4227_v40 = vpop.eup %4226  ;;  %3856 = vmatprep.mubr.msk.f32.mxu0 %vm551_vm7, %v2048_v12 }
 0xd5d   :  { %v4229_v43 = vpop.eup %4228  ;;  %3857 = vmatmul.mubr.msk.f32.vlgmr.msra.gmra.mrb[72].mxu0 %vm551_vm7, %v2049_v29  ;;  %v2051_v48 = vmul.f32 %v4227_v40, %v5097_v6 }
 0xd5e   :  { %v2050_v55 = vmul.f32 %v4229_v43, %v5099_v59 }
 0xd60   :  { %v4231_v35 = vpop.eup %4230  ;;  %3859 = vmatprep.mubr.msk.f32.mxu0 %vm551_vm7, %v2050_v55 }
 0xd61   :  { %v4233_v63 = vpop.eup %4232  ;;  %3860 = vmatmul.mubr.msk.f32.gmra.mrb[74].mxu0 %vm551_vm7, %v2051_v48  ;;  %v2053_v50 = vmul.f32 %v4231_v35, %v5105_v61 }
 0xd62   :  { %v2052_v49 = vmul.f32 %v4233_v63, %v5107_v62 }
 0xd64   :  { %3862 = vmatprep.mubr.msk.f32.mxu0 %vm551_vm7, %v2052_v49 }
 0xd65   :  { %3863 = vmatmul.mubr.msk.f32.gmra.mrb[76].mxu0 %vm551_vm7, %v2053_v50 }
 0xd66   :  { %3885 = vmatprep.mubr.msk.bf16.mxu0 %vm4303_vm1, %v4302_v44 }
 0xe30   :  { %v3858_v41 = vpop.f32.mrb[72].mxu0 }
 0xe31   :  { %v2448_v17 = vpop.f32.mrb[73].mxu0 }
 0xe32   :  { %v2477_v52 = vpack.c.bf16 %v3858_v41, %v2448_v17 }
 0xe34   :  { %v3861_v53 = vpop.f32.mrb[74].mxu0  ;;  %3870 = vmatmul.mubr.msk.bf16.vlgmr.msra.gmra.mrb[68].mxu1 %vm48_vm0, %v2477_v52 }
 0xe35   :  { %v2458_v54 = vpop.f32.mrb[75].mxu0  ;;  %3873 = vmatprep.mubr.msk.bf16.mxu1 %vm4303_vm1, %v4302_v44 }
 0xe36   :  { %v2478_v51 = vpack.c.bf16 %v3861_v53, %v2458_v54 }
 0xe38   :  { %v3864_v56 = vpop.f32.mrb[76].mxu0 }
 0xe39   :  { %v2468_v24 = vpop.f32.mrb[77].mxu0 }
 0xe3a   :  { %v2479_v57 = vpack.c.bf16 %v3864_v56, %v2468_v24  ;;  %v4082_v24 = vld [vmem:[%s5326_s3 + $0x10] sm:$0xff]  }
 0xe3b   :  { %3882 = vmatpush3.bf16.msra.mxu0 %v4082_v24 }
 0xe3c   :  { %3874 = vmatmul.mubr.msk.bf16.gmra.mrb[72].mxu1 %vm48_vm0, %v2478_v51  ;;  %3883 = vmatprep.subr.bf16.mxu0 %v4302_v44 }
 0xe3d   :  { %3877 = vmatprep.mubr.msk.bf16.mxu1 %vm4303_vm1, %v4302_v44 }
 0xe44   :  { %3878 = vmatmul.mubr.msk.bf16.gmra.mrb[76].mxu1 %vm48_vm0, %v2479_v57  ;;  %v4083_v57 = vld [vmem:[%s5326_s3 + $0x18] sm:$0xff]  }
 0xe45   :  { %3905 = vmatprep.mubr.msk.bf16.mxu1 %vm4303_vm1, %v4302_v44  ;;  %3884 = vmatpush3.bf16.msra.mxu0 %v4083_v57 }
 0xe46   :  { %3917 = vmatprep.subr.bf16.mxu0 %v4302_v44 }
 0xf07   :  { %v2545_v30 = vpop.f32.mrb[68].mxu1 }
 0xf08   :  { %v2546_v6 = vadd.f32 %v3339_v39, %v2545_v30  ;;  %v3871_v59 = vpop.f32.mrb[69].mxu1 }
 0xf09   :  { %v2548_v28 = vpop.f32.mrb[70].mxu1 }
 0xf0a   :  { %v2549_v60 = vadd.f32 %v3339_v39, %v2548_v28  ;;  %v3872_v61 = vpop.f32.mrb[71].mxu1  ;;  %v2568_v62 = vadd.f32 %v2546_v6, %v4885_v58 }
 0xf0c   :  { %v2576_v42 = vsel %vm48_vm0, %v2568_v62, 0.0  ;;  %v2569_v0 = vadd.f32 %v2549_v60, %v4887_v1 }
 0xf0d   :  { %2577 = vadd.xlane.f32.xlu0 %v2576_v42 }
 0xf0e   :  { %v2579_v2 = vsel %vm48_vm0, %v2569_v0, 0.0 }
 0xf0f   :  { %2580 = vadd.xlane.f32.xlu1 %v2579_v2  ;;  %v2553_v4 = vpop.f32.mrb[72].mxu1 }
 0xf10   :  { %v2554_v34 = vadd.f32 %v3339_v39, %v2553_v4  ;;  %v3875_v3 = vpop.f32.mrb[73].mxu1 }
 0xf11   :  { %v2556_v7 = vpop.f32.mrb[74].mxu1  ;;  %v3347_v3 = vld [vmem:[%s5328_s5 + $0x15] ss:$0 sm:$0xff] }
 0xf12   :  { %v2557_v8 = vadd.f32 %v3339_v39, %v2556_v7  ;;  %v3876_v9 = vpop.f32.mrb[75].mxu1  ;;  %v2570_v21 = vadd.f32 %v2554_v34, %v4906_v10 }
 0xf14   :  { %v2582_v15 = vsel %vm48_vm0, %v2570_v21, 0.0  ;;  %v2571_v58 = vadd.f32 %v2557_v8, %v4908_v14 }
 0xf15   :  { %2583 = vadd.xlane.f32.xlu0 %v2582_v15 }
 0xf16   :  { %v2585_v18 = vsel %vm48_vm0, %v2571_v58, 0.0 }
 0xf17   :  { %2586 = vadd.xlane.f32.xlu1 %v2585_v18  ;;  %v2561_v1 = vpop.f32.mrb[76].mxu1 }
 0xf18   :  { %v2562_v19 = vadd.f32 %v3339_v39, %v2561_v1  ;;  %v3879_v16 = vpop.f32.mrb[77].mxu1  ;;  %v3348_v1 = vld [vmem:[%s5328_s5 + $0x16] ss:$0 sm:$0xff] }
 0xf19   :  { %v2564_v46 = vpop.f32.mrb[78].mxu1 }
 0xf1a   :  { %v2565_v47 = vadd.f32 %v3339_v39, %v2564_v46  ;;  %v3880_v20 = vpop.f32.mrb[79].mxu1  ;;  %v2572_v22 = vadd.f32 %v2562_v19, %v4920_v26 }
 0xf1c   :  { %v2588_v13 = vsel %vm48_vm0, %v2572_v22, 0.0  ;;  %v2573_v10 = vadd.f32 %v2565_v47, %v4922_v5 }
 0xf1d   :  { %2589 = vadd.xlane.f32.xlu0 %v2588_v13 }
 0xf1e   :  { %v2591_v36 = vsel %vm48_vm0, %v2573_v10, 0.0 }
 0xf1f   :  { %2592 = vadd.xlane.f32.xlu1 %v2591_v36 }
 0xf9a   :  { %v2578_v14 = vpop.xlane.xlu0 %2577 }
 0xf9b   :  { %v2594_v31 = vmul.f32 0.03125, %v2578_v14 }
 0xf9c   :  { %v2581_v33 = vpop.xlane.xlu1 %2580 }
 0xf9d   :  { %v2600_v23 = vsub.f32 %v2568_v62, %v2594_v31  ;;  %v2595_v37 = vmul.f32 0.03125, %v2581_v33 }
 0xf9f   :  { %v2601_v32 = vsub.f32 %v2569_v0, %v2595_v37  ;;  %v2606_v25 = vmul.f32 %v2600_v23, %v2600_v23 }
 0xfa1   :  { %v2612_v45 = vsel %vm48_vm0, %v2606_v25, 0.0  ;;  %v2607_v27 = vmul.f32 %v2601_v32, %v2601_v32 }
 0xfa2   :  { %2613 = vadd.xlane.f32.xlu0 %v2612_v45  ;;  %v2584_v26 = vpop.xlane.xlu0 %2583 }
 0xfa3   :  { %v2596_v11 = vmul.f32 0.03125, %v2584_v26  ;;  %v2615_v38 = vsel %vm48_vm0, %v2607_v27, 0.0 }
 0xfa4   :  { %v2587_v5 = vpop.xlane.xlu1 %2586  ;;  %2616 = vadd.xlane.f32.xlu1 %v2615_v38 }
 0xfa5   :  { %v2602_v12 = vsub.f32 %v2570_v21, %v2596_v11  ;;  %v2597_v29 = vmul.f32 0.03125, %v2587_v5 }
 0xfa7   :  { %v5179_v40 = vsub.f32 %v2571_v58, %v2597_v29  ;;  %v2608_v43 = vmul.f32 %v2602_v12, %v2602_v12 }
 0xfa9   :  { %v2618_v55 = vsel %vm48_vm0, %v2608_v43, 0.0  ;;  %v2609_v48 = vmul.f32 %v5179_v40, %v5179_v40  ;;  %v4084_v43 = vld [vmem:[%s5327_s4 + $0x20] sm:$0xff]  }
 0xfaa   :  { %2619 = vadd.xlane.f32.xlu0 %v2618_v55  ;;  %v2590_v35 = vpop.xlane.xlu0 %2589  ;;  %3898 = vmatpush3.bf16.msra.mxu1 %v4084_v43  ;;  %v4085_v55 = vld [vmem:[%s5327_s4 + $0x28] sm:$0xff]  }
 0xfab   :  { %v2598_v63 = vmul.f32 0.03125, %v2590_v35  ;;  %v2621_v49 = vsel %vm48_vm0, %v2609_v48, 0.0  ;;  %3899 = vmatprep.subr.bf16.mxu1 %v4302_v44  ;;  %v4086_v48 = vld [vmem:[%s5327_s4 + $0x30] sm:$0xff]   ;;  %v4087_v35 = vld [vmem:[%s5327_s4 + $0x38] sm:$0xff]  }
 0xfac   :  { %2622 = vadd.xlane.f32.xlu1 %v2621_v49  ;;  %v2593_v50 = vpop.xlane.xlu1 %2592 }
 0xfad   :  { %v2604_v41 = vsub.f32 %v2572_v22, %v2598_v63  ;;  %v2599_v17 = vmul.f32 0.03125, %v2593_v50  ;;  %v3353_v63 = vld [vmem:[%s5329_s6 + $0x1] ss:$0 sm:$0xff] }
 0xfae   :  { %3900 = vmatpush3.bf16.msra.mxu1 %v4085_v55 }
 0xfaf   :  { %v2605_v52 = vsub.f32 %v2573_v10, %v2599_v17  ;;  %v2610_v53 = vmul.f32 %v2604_v41, %v2604_v41  ;;  %3901 = vmatprep.subr.bf16.mxu1 %v4302_v44 }
 0xfb1   :  { %v2624_v54 = vsel %vm48_vm0, %v2610_v53, 0.0  ;;  %v2611_v51 = vmul.f32 %v2605_v52, %v2605_v52 }
 0xfb2   :  { %2625 = vadd.xlane.f32.xlu0 %v2624_v54  ;;  %3902 = vmatpush3.bf16.msra.mxu1 %v4086_v48 }
 0xfb3   :  { %v2627_v56 = vsel %vm48_vm0, %v2611_v51, 0.0  ;;  %3903 = vmatprep.subr.bf16.mxu1 %v4302_v44 }
 0xfb4   :  { %2628 = vadd.xlane.f32.xlu1 %v2627_v56 }
 0xfb6   :  { %3904 = vmatpush3.bf16.msra.mxu1 %v4087_v35 }
0x102f   :  { %v2614_v39 = vpop.xlane.xlu0 %2613 }
0x1030   :  { %v2630_v30 = vmul.f32 0.03125, %v2614_v39 }
0x1031   :  { %v2617_v6 = vpop.xlane.xlu1 %2616 }
0x1032   :  { %v2636_v59 = vadd.f32 1e-12, %v2630_v30  ;;  %v2631_v28 = vmul.f32 0.03125, %v2617_v6 }
0x1034   :  { %4234 = vrsqrt.f32 %v2636_v59  ;;  %v2637_v60 = vadd.f32 1e-12, %v2631_v28 }
0x1036   :  { %4236 = vrsqrt.f32 %v2637_v60 }
0x1037   :  { %v2620_v61 = vpop.xlane.xlu0 %2619 }
0x1038   :  { %v2632_v62 = vmul.f32 0.03125, %v2620_v61 }
0x1039   :  { %v2623_v42 = vpop.xlane.xlu1 %2622 }
0x103a   :  { %v2638_v0 = vadd.f32 1e-12, %v2632_v62  ;;  %v2633_v2 = vmul.f32 0.03125, %v2623_v42 }
0x103c   :  { %4238 = vrsqrt.f32 %v2638_v0  ;;  %v2639_v4 = vadd.f32 1e-12, %v2633_v2 }
0x103e   :  { %v4235_v34 = vpop.eup %4234  ;;  %4240 = vrsqrt.f32 %v2639_v4 }
0x103f   :  { %v2648_v7 = vmul.f32 %v4235_v34, %v2600_v23  ;;  %v2626_v8 = vpop.xlane.xlu0 %2625 }
0x1040   :  { %v4237_v9 = vpop.eup %4236  ;;  %v2634_v21 = vmul.f32 0.03125, %v2626_v8 }
0x1041   :  { %v2658_v15 = vmul.f32 %v3347_v3, %v2648_v7  ;;  %v2649_v58 = vmul.f32 %v4237_v9, %v2601_v32  ;;  %v2629_v18 = vpop.xlane.xlu1 %2628 }
0x1042   :  { %v2640_v19 = vadd.f32 1e-12, %v2634_v21  ;;  %v2635_v16 = vmul.f32 0.03125, %v2629_v18 }
0x1043   :  { %v2659_v46 = vmul.f32 %v3347_v3, %v2649_v58  ;;  %v5201_v20 = vadd.f32 %v3348_v1, %v2658_v15 }
0x1044   :  { %4242 = vrsqrt.f32 %v2640_v19  ;;  %v2641_v47 = vadd.f32 1e-12, %v2635_v16 }
0x1045   :  { %v5203_v22 = vadd.f32 %v3348_v1, %v2659_v46 }
0x1046   :  { %v4239_v13 = vpop.eup %4238  ;;  %4244 = vrsqrt.f32 %v2641_v47 }
0x1047   :  { %v2650_v10 = vmul.f32 %v4239_v13, %v2602_v12  ;;  %v2674_v36 = vpack.c.bf16 %v5203_v22, %v5201_v20 }
0x1048   :  { %v4241_v14 = vpop.eup %4240 }
0x1049   :  { %v2651_v31 = vmul.f32 %v4241_v14, %v5179_v40  ;;  %3886 = vmatmul.mubr.msk.bf16.vlgmr.msra.gmra.mrb[80].mxu0 %vm48_vm0, %v2674_v36  ;;  %v2660_v33 = vmul.f32 %v3347_v3, %v2650_v10 }
0x104a   :  { %3889 = vmatprep.mubr.msk.bf16.mxu0 %vm4303_vm1, %v4302_v44 }
0x104b   :  { %v2661_v23 = vmul.f32 %v3347_v3, %v2651_v31  ;;  %v5211_v37 = vadd.f32 %v3348_v1, %v2660_v33 }
0x104d   :  { %v5213_v32 = vadd.f32 %v3348_v1, %v2661_v23 }
0x104e   :  { %v4243_v25 = vpop.eup %4242 }
0x104f   :  { %v2652_v45 = vmul.f32 %v4243_v25, %v2604_v41  ;;  %v2675_v27 = vpack.c.bf16 %v5213_v32, %v5211_v37 }
0x1050   :  { %v4245_v26 = vpop.eup %4244 }
0x1051   :  { %v2653_v11 = vmul.f32 %v4245_v26, %v2605_v52  ;;  %3890 = vmatmul.mubr.msk.bf16.gmra.mrb[84].mxu0 %vm48_vm0, %v2675_v27  ;;  %v2662_v38 = vmul.f32 %v3347_v3, %v2652_v45 }
0x1052   :  { %3893 = vmatprep.mubr.msk.bf16.mxu0 %vm4303_vm1, %v4302_v44 }
0x1053   :  { %v2663_v5 = vmul.f32 %v3347_v3, %v2653_v11  ;;  %v5220_v12 = vadd.f32 %v3348_v1, %v2662_v38 }
0x1055   :  { %v5222_v29 = vadd.f32 %v3348_v1, %v2663_v5 }
0x1057   :  { %v2676_v40 = vpack.c.bf16 %v5222_v29, %v5220_v12 }
0x1059   :  { %3894 = vmatmul.mubr.msk.bf16.gmra.mrb[88].mxu0 %vm48_vm0, %v2676_v40 }
0x105a   :  { %3921 = vmatprep.mubr.msk.bf16.mxu0 %vm4303_vm1, %v4302_v44 }
0x111c   :  { %v2742_v49 = vpop.f32.mrb[80].mxu0 }
0x111d   :  { %v2743_v50 = vadd.f32 %v3353_v63, %v2742_v49  ;;  %v3887_v41 = vpop.f32.mrb[81].mxu0 }
0x111e   :  { %v2745_v17 = vpop.f32.mrb[82].mxu0 }
0x111f   :  { %v2765_v52 = vmul.f32 %v2743_v50, %v2743_v50  ;;  %v2746_v53 = vadd.f32 %v3353_v63, %v2745_v17  ;;  %v3888_v54 = vpop.f32.mrb[83].mxu0 }
0x1121   :  { %v2771_v51 = vmul.f32 %v2765_v52, %v2743_v50  ;;  %v2766_v56 = vmul.f32 %v2746_v53, %v2746_v53 }
0x1123   :  { %v2777_v24 = vmul.f32 0.044715, %v2771_v51  ;;  %v2772_v57 = vmul.f32 %v2766_v56, %v2746_v53 }
0x1124   :  { %v2750_v39 = vpop.f32.mrb[84].mxu0 }
0x1125   :  { %v2783_v30 = vadd.f32 %v2777_v24, %v2743_v50  ;;  %v2778_v6 = vmul.f32 0.044715, %v2772_v57  ;;  %v2751_v59 = vadd.f32 %v3353_v63, %v2750_v39  ;;  %v3891_v28 = vpop.f32.mrb[85].mxu0 }
0x1126   :  { %v2753_v60 = vpop.f32.mrb[86].mxu0 }
0x1127   :  { %v2789_v61 = vmul.f32 0.7978846, %v2783_v30  ;;  %v2784_v62 = vadd.f32 %v2778_v6, %v2746_v53  ;;  %v2767_v42 = vmul.f32 %v2751_v59, %v2751_v59  ;;  %v2754_v0 = vadd.f32 %v3353_v63, %v2753_v60  ;;  %v3892_v2 = vpop.f32.mrb[87].mxu0 }
0x1129   :  { %4246 = vtanh.f32 %v2789_v61  ;;  %v2790_v4 = vmul.f32 0.7978846, %v2784_v62  ;;  %v2773_v34 = vmul.f32 %v2767_v42, %v2751_v59  ;;  %v2768_v3 = vmul.f32 %v2754_v0, %v2754_v0 }
0x112b   :  { %4248 = vtanh.f32 %v2790_v4  ;;  %v2779_v7 = vmul.f32 0.044715, %v2773_v34  ;;  %v2774_v8 = vmul.f32 %v2768_v3, %v2754_v0 }
0x112c   :  { %v2758_v9 = vpop.f32.mrb[88].mxu0 }
0x112d   :  { %v2785_v21 = vadd.f32 %v2779_v7, %v2751_v59  ;;  %v2780_v15 = vmul.f32 0.044715, %v2774_v8  ;;  %v2759_v58 = vadd.f32 %v3353_v63, %v2758_v9  ;;  %v3895_v18 = vpop.f32.mrb[89].mxu0 }
0x112e   :  { %v2761_v1 = vpop.f32.mrb[90].mxu0 }
0x112f   :  { %v2791_v19 = vmul.f32 0.7978846, %v2785_v21  ;;  %v2786_v16 = vadd.f32 %v2780_v15, %v2754_v0  ;;  %v2769_v46 = vmul.f32 %v2759_v58, %v2759_v58  ;;  %v2762_v47 = vadd.f32 %v3353_v63, %v2761_v1  ;;  %v3896_v13 = vpop.f32.mrb[91].mxu0 }
0x1131   :  { %4250 = vtanh.f32 %v2791_v19  ;;  %v2792_v10 = vmul.f32 0.7978846, %v2786_v16  ;;  %v2775_v36 = vmul.f32 %v2769_v46, %v2759_v58  ;;  %v2770_v14 = vmul.f32 %v2762_v47, %v2762_v47 }
0x1133   :  { %v4247_v31 = vpop.eup %4246  ;;  %4252 = vtanh.f32 %v2792_v10  ;;  %v2781_v33 = vmul.f32 0.044715, %v2775_v36  ;;  %v2776_v23 = vmul.f32 %v2770_v14, %v2762_v47 }
0x1134   :  { %v2801_v25 = vadd.f32 1.0, %v4247_v31 }
0x1135   :  { %v4249_v45 = vpop.eup %4248  ;;  %v2787_v27 = vadd.f32 %v2781_v33, %v2759_v58  ;;  %v2782_v26 = vmul.f32 0.044715, %v2776_v23 }
0x1136   :  { %v2807_v11 = vmul.f32 0.5, %v2801_v25  ;;  %v2802_v38 = vadd.f32 1.0, %v4249_v45 }
0x1137   :  { %v2793_v5 = vmul.f32 0.7978846, %v2787_v27  ;;  %v2788_v40 = vadd.f32 %v2782_v26, %v2762_v47 }
0x1138   :  { %v2808_v43 = vmul.f32 0.5, %v2802_v38  ;;  %v2813_v48 = vmul.f32 %v2807_v11, %v2743_v50 }
0x1139   :  { %4254 = vtanh.f32 %v2793_v5  ;;  %v2794_v55 = vmul.f32 0.7978846, %v2788_v40 }
0x113a   :  { %v2814_v35 = vmul.f32 %v2808_v43, %v2746_v53 }
0x113b   :  { %v4251_v63 = vpop.eup %4250  ;;  %4256 = vtanh.f32 %v2794_v55 }
0x113c   :  { %v2819_v49 = vpack.c.bf16 %v2814_v35, %v2813_v48  ;;  %v2803_v41 = vadd.f32 1.0, %v4251_v63 }
0x113d   :  { %v4253_v17 = vpop.eup %4252 }
0x113e   :  { %v2809_v52 = vmul.f32 0.5, %v2803_v41  ;;  %v2804_v54 = vadd.f32 1.0, %v4253_v17  ;;  %3906 = vmatmul.mubr.msk.bf16.vlgmr.msra.gmra.mrb[80].mxu1 %vm1422_vm8, %v2819_v49 }
0x113f   :  { %3909 = vmatprep.mubr.msk.bf16.mxu1 %vm4303_vm1, %v4302_v44 }
0x1140   :  { %v2810_v51 = vmul.f32 0.5, %v2804_v54  ;;  %v2815_v56 = vmul.f32 %v2809_v52, %v2751_v59  ;;  %v3368_v59 = vld [vmem:[%s5328_s5 + $0x14] ss:$0 sm:$0xff] }
0x1142   :  { %v2816_v24 = vmul.f32 %v2810_v51, %v2754_v0 }
0x1143   :  { %v4255_v57 = vpop.eup %4254 }
0x1144   :  { %v2805_v39 = vadd.f32 1.0, %v4255_v57  ;;  %v2820_v30 = vpack.c.bf16 %v2816_v24, %v2815_v56 }
0x1145   :  { %v4257_v50 = vpop.eup %4256 }
0x1146   :  { %v2811_v53 = vmul.f32 0.5, %v2805_v39  ;;  %v2806_v6 = vadd.f32 1.0, %v4257_v50  ;;  %3910 = vmatmul.mubr.msk.bf16.gmra.mrb[84].mxu1 %vm1422_vm8, %v2820_v30 }
0x1147   :  { %3913 = vmatprep.mubr.msk.bf16.mxu1 %vm4303_vm1, %v4302_v44 }
0x1148   :  { %v2812_v28 = vmul.f32 0.5, %v2806_v6  ;;  %v2817_v60 = vmul.f32 %v2811_v53, %v2759_v58 }
0x114a   :  { %v2818_v61 = vmul.f32 %v2812_v28, %v2762_v47 }
0x114c   :  { %v2821_v62 = vpack.c.bf16 %v2818_v61, %v2817_v60  ;;  %v4088_v61 = vld [vmem:[%s5331_s8] sm:$0xff]  }
0x114d   :  { %3918 = vmatpush3.bf16.msra.mxu0 %v4088_v61 }
0x114e   :  { %3914 = vmatmul.mubr.msk.bf16.gmra.mrb[88].mxu1 %vm1422_vm8, %v2821_v62  ;;  %3919 = vmatprep.subr.bf16.mxu0 %v4302_v44  ;;  %v4089_v62 = vld [vmem:[%s5331_s8 + $0x8] sm:$0xff]  }
0x1151   :  { %3920 = vmatpush3.bf16.msra.mxu0 %v4089_v62 }
0x1211   :  { %v2903_v42 = vpop.f32.mrb[80].mxu1 }
0x1212   :  { %v2904_v0 = vadd.f32 %v3368_v59, %v2903_v42  ;;  %v3907_v2 = vpop.f32.mrb[81].mxu1 }
0x1213   :  { %v2906_v4 = vpop.f32.mrb[82].mxu1 }
0x1214   :  { %v2907_v34 = vadd.f32 %v3368_v59, %v2906_v4  ;;  %v3908_v3 = vpop.f32.mrb[83].mxu1  ;;  %v2926_v7 = vadd.f32 %v2904_v0, %v5201_v20 }
0x1216   :  { %v2927_v8 = vadd.f32 %v2907_v34, %v5203_v22  ;;  %v2934_v9 = vsel %vm48_vm0, %v2926_v7, 0.0 }
0x1217   :  { %2935 = vadd.xlane.f32.xlu0 %v2934_v9 }
0x1218   :  { %v2937_v18 = vsel %vm48_vm0, %v2927_v8, 0.0 }
0x1219   :  { %v2911_v21 = vpop.f32.mrb[84].mxu1 }
0x121a   :  { %v2912_v15 = vadd.f32 %v3368_v59, %v2911_v21  ;;  %v3911_v58 = vpop.f32.mrb[85].mxu1 }
0x121b   :  { %2938 = vadd.xlane.f32.xlu0 %v2937_v18  ;;  %v2914_v1 = vpop.f32.mrb[86].mxu1 }
0x121c   :  { %v2915_v19 = vadd.f32 %v3368_v59, %v2914_v1  ;;  %v3912_v16 = vpop.f32.mrb[87].mxu1  ;;  %v2928_v46 = vadd.f32 %v2912_v15, %v5211_v37 }
0x121e   :  { %v2929_v47 = vadd.f32 %v2915_v19, %v5213_v32  ;;  %v2940_v20 = vsel %vm48_vm0, %v2928_v46, 0.0 }
0x121f   :  { %2941 = vadd.xlane.f32.xlu1 %v2940_v20  ;;  %v3378_v20 = vld [vmem:[%s5328_s5 + $0x17] ss:$0 sm:$0xff] }
0x1220   :  { %v2943_v36 = vsel %vm48_vm0, %v2929_v47, 0.0 }
0x1221   :  { %v2919_v22 = vpop.f32.mrb[88].mxu1 }
0x1222   :  { %v2920_v13 = vadd.f32 %v3368_v59, %v2919_v22  ;;  %v3915_v10 = vpop.f32.mrb[89].mxu1 }
0x1223   :  { %2944 = vadd.xlane.f32.xlu1 %v2943_v36  ;;  %v2922_v14 = vpop.f32.mrb[90].mxu1 }
0x1224   :  { %v2930_v31 = vadd.f32 %v2920_v13, %v5220_v12  ;;  %v2923_v33 = vadd.f32 %v3368_v59, %v2922_v14  ;;  %v3916_v23 = vpop.f32.mrb[91].mxu1  ;;  %v3379_v14 = vld [vmem:[%s5328_s5 + $0x18] ss:$0 sm:$0xff] }
0x1226   :  { %v2931_v25 = vadd.f32 %v2923_v33, %v5222_v29  ;;  %v2946_v37 = vsel %vm48_vm0, %v2930_v31, 0.0 }
0x1227   :  { %2947 = vadd.xlane.f32.xlu0 %v2946_v37 }
0x1228   :  { %v2949_v32 = vsel %vm48_vm0, %v2931_v25, 0.0 }
0x1229   :  { %2950 = vadd.xlane.f32.xlu1 %v2949_v32 }
0x12a4   :  { %v2936_v45 = vpop.xlane.xlu0 %2935 }
0x12a5   :  { %v2952_v27 = vmul.f32 0.03125, %v2936_v45 }
0x12a7   :  { %v5269_v26 = vsub.f32 %v2926_v7, %v2952_v27 }
0x12a8   :  { %v2939_v11 = vpop.xlane.xlu0 %2938 }
0x12a9   :  { %v2953_v38 = vmul.f32 0.03125, %v2939_v11  ;;  %v2964_v5 = vmul.f32 %v5269_v26, %v5269_v26 }
0x12ab   :  { %v2959_v12 = vsub.f32 %v2927_v8, %v2953_v38  ;;  %v2970_v40 = vsel %vm48_vm0, %v2964_v5, 0.0 }
0x12ac   :  { %v2942_v43 = vpop.xlane.xlu1 %2941  ;;  %2971 = vadd.xlane.f32.xlu0 %v2970_v40 }
0x12ad   :  { %v2954_v29 = vmul.f32 0.03125, %v2942_v43  ;;  %v2965_v55 = vmul.f32 %v2959_v12, %v2959_v12 }
0x12af   :  { %v2960_v48 = vsub.f32 %v2928_v46, %v2954_v29  ;;  %v2973_v35 = vsel %vm48_vm0, %v2965_v55, 0.0 }
0x12b0   :  { %v2945_v63 = vpop.xlane.xlu1 %2944  ;;  %2974 = vadd.xlane.f32.xlu0 %v2973_v35 }
0x12b1   :  { %v2955_v49 = vmul.f32 0.03125, %v2945_v63  ;;  %v2966_v41 = vmul.f32 %v2960_v48, %v2960_v48 }
0x12b3   :  { %v2961_v17 = vsub.f32 %v2929_v47, %v2955_v49  ;;  %v2976_v52 = vsel %vm48_vm0, %v2966_v41, 0.0 }
0x12b4   :  { %2977 = vadd.xlane.f32.xlu1 %v2976_v52  ;;  %v2948_v54 = vpop.xlane.xlu0 %2947 }
0x12b5   :  { %v2956_v51 = vmul.f32 0.03125, %v2948_v54  ;;  %v2967_v56 = vmul.f32 %v2961_v17, %v2961_v17 }
0x12b6   :  { %v2951_v24 = vpop.xlane.xlu1 %2950 }
0x12b7   :  { %v2962_v57 = vsub.f32 %v2930_v31, %v2956_v51  ;;  %v2957_v39 = vmul.f32 0.03125, %v2951_v24  ;;  %v2979_v30 = vsel %vm48_vm0, %v2967_v56, 0.0 }
0x12b8   :  { %2980 = vadd.xlane.f32.xlu1 %v2979_v30 }
0x12b9   :  { %v5277_v50 = vsub.f32 %v2931_v25, %v2957_v39  ;;  %v2968_v53 = vmul.f32 %v2962_v57, %v2962_v57 }
0x12bb   :  { %v2982_v6 = vsel %vm48_vm0, %v2968_v53, 0.0  ;;  %v2969_v28 = vmul.f32 %v5277_v50, %v5277_v50 }
0x12bc   :  { %2983 = vadd.xlane.f32.xlu0 %v2982_v6 }
0x12bd   :  { %v2985_v60 = vsel %vm48_vm0, %v2969_v28, 0.0 }
0x12be   :  { %2986 = vadd.xlane.f32.xlu1 %v2985_v60 }
0x1339   :  { %v2972_v59 = vpop.xlane.xlu0 %2971 }
0x133a   :  { %v2988_v42 = vmul.f32 0.03125, %v2972_v59 }
0x133c   :  { %v2994_v4 = vadd.f32 1e-12, %v2988_v42 }
0x133d   :  { %v2975_v0 = vpop.xlane.xlu0 %2974 }
0x133e   :  { %v2989_v2 = vmul.f32 0.03125, %v2975_v0 }
0x1340   :  { %v2995_v34 = vadd.f32 1e-12, %v2989_v2  ;;  %v3380_v2 = vld [vmem:[%s5330_s7 + $0x2] ss:$0 sm:$0xff] }
0x1341   :  { %v2978_v3 = vpop.xlane.xlu1 %2977 }
0x1342   :  { %4258 = vrsqrt.f32 %v2995_v34  ;;  %v2990_v7 = vmul.f32 0.03125, %v2978_v3 }
0x1343   :  { %4260 = vrsqrt.f32 %v2994_v4 }
0x1344   :  { %v2996_v8 = vadd.f32 1e-12, %v2990_v7 }
0x1345   :  { %v2981_v9 = vpop.xlane.xlu1 %2980 }
0x1346   :  { %4262 = vrsqrt.f32 %v2996_v8  ;;  %v2991_v21 = vmul.f32 0.03125, %v2981_v9 }
0x1348   :  { %v2997_v44 = vadd.f32 1e-12, %v2991_v21 }
0x1349   :  { %v2984_v15 = vpop.xlane.xlu0 %2983 }
0x134a   :  { %4264 = vrsqrt.f32 %v2997_v44  ;;  %v2992_v58 = vmul.f32 0.03125, %v2984_v15 }
0x134b   :  { %v2987_v18 = vpop.xlane.xlu1 %2986 }
0x134c   :  { %v4259_v1 = vpop.eup %4258  ;;  %v2998_v19 = vadd.f32 1e-12, %v2992_v58  ;;  %v2993_v16 = vmul.f32 0.03125, %v2987_v18 }
0x134d   :  { %v4261_v46 = vpop.eup %4260  ;;  %v3007_v47 = vmul.f32 %v4259_v1, %v2959_v12 }
0x134e   :  { %4266 = vrsqrt.f32 %v2998_v19  ;;  %v2999_v22 = vadd.f32 1e-12, %v2993_v16  ;;  %v3006_v36 = vmul.f32 %v4261_v46, %v5269_v26 }
0x134f   :  { %v3017_v13 = vmul.f32 %v3378_v20, %v3007_v47  ;;  %v3384_v47 = vld [vmem:[%s5330_s7 + $0x3] ss:$0 sm:$0xff] }
0x1350   :  { %v4263_v10 = vpop.eup %4262  ;;  %4268 = vrsqrt.f32 %v2999_v22  ;;  %v3016_v37 = vmul.f32 %v3378_v20, %v3006_v36  ;;  %v3385_v22 = vld [vmem:[%s5330_s7 + $0x4] ss:$0 sm:$0xff] }
0x1351   :  { %v3008_v31 = vmul.f32 %v4263_v10, %v2960_v48  ;;  %v3027_v33 = vadd.f32 %v3379_v14, %v3017_v13 }
0x1352   :  { %v3026_v12 = vadd.f32 %v3379_v14, %v3016_v37 }
0x1353   :  { %v3018_v23 = vmul.f32 %v3378_v20, %v3008_v31  ;;  %v3033_v27 = vpack.c.bf16 %v3027_v33, %v3027_v33 }
0x1354   :  { %v4265_v25 = vpop.eup %4264  ;;  %v3032_v49 = vpack.c.bf16 %v3026_v12, %v3026_v12 }
0x1355   :  { %v3028_v32 = vadd.f32 %v3379_v14, %v3018_v23  ;;  %v3009_v45 = vmul.f32 %v4265_v25, %v2961_v17  ;;  %v3054_v29 = vunpack.c.l.b16 %v3033_v27 }
0x1356   :  { %v3053_v39 = vunpack.c.l.b16 %v3032_v49 }
0x1357   :  { %v3034_v11 = vpack.c.bf16 %v3028_v32, %v3028_v32  ;;  %v3019_v38 = vmul.f32 %v3378_v20, %v3009_v45  ;;  %v3059_v51 = vrot.slane %v3054_v29, 7 }
0x1358   :  { %v4267_v5 = vpop.eup %4266 }
0x1359   :  { %v3029_v40 = vadd.f32 %v3379_v14, %v3019_v38  ;;  %v3010_v43 = vmul.f32 %v4267_v5, %v2962_v57  ;;  %v3055_v55 = vunpack.c.l.b16 %v3034_v11  ;;  %v3061_v6 = vsel %vm3060_vm9, %v3059_v51, %v3053_v39 }
0x135a   :  { %v4269_v26 = vpop.eup %4268 }
0x135b   :  { %v3035_v35 = vpack.c.bf16 %v3029_v40, %v3029_v40  ;;  %v3020_v63 = vmul.f32 %v3378_v20, %v3010_v43  ;;  %v3011_v48 = vmul.f32 %v4269_v26, %v5277_v50  ;;  %v3062_v17 = vrot.slane %v3055_v55, 6 }
0x135d   :  { %v3056_v41 = vunpack.c.l.b16 %v3035_v35  ;;  %v3030_v52 = vadd.f32 %v3379_v14, %v3020_v63  ;;  %v3021_v54 = vmul.f32 %v3378_v20, %v3011_v48  ;;  %v3064_v28 = vsel %vm3063_vm10, %v3062_v17, %v3061_v6 }
0x135f   :  { %v3036_v56 = vpack.c.bf16 %v3030_v52, %v3030_v52  ;;  %v3031_v24 = vadd.f32 %v3379_v14, %v3021_v54  ;;  %v3065_v30 = vrot.slane %v3056_v41, 5 }
0x1361   :  { %v3057_v57 = vunpack.c.l.b16 %v3036_v56  ;;  %v3037_v53 = vpack.c.bf16 %v3031_v24, %v3031_v24  ;;  %v3067_v61 = vsel %vm3066_vm11, %v3065_v30, %v3064_v28 }
0x1363   :  { %v3068_v60 = vrot.slane %v3057_v57, 4  ;;  %v3058_v50 = vunpack.c.l.b16 %v3037_v53 }
0x1365   :  { %v3071_v62 = vrot.slane %v3058_v50, 3  ;;  %v3070_v59 = vsel %vm3069_vm12, %v3068_v60, %v3067_v61 }
0x1367   :  { %v3073_v42 = vsel %vm3072_vm13, %v3071_v62, %v3070_v59 }
0x1368   :  { %v3074_v0 = vpack.c.b16 %v3073_v42, %v3073_v42 }
0x136a   :  { %3922 = vmatmul.mubr.msk.bf16.vlgmr.msra.gmra.mrb[92].mxu0 %vm48_vm0, %v3074_v0 }
0x143d   :  { %v3124_v4 = vpop.f32.mrb[92].mxu0 }
0x143e   :  { %v3125_v34 = vadd.f32 %v3380_v2, %v3124_v4  ;;  %v3923_v3 = vpop.f32.mrb[93].mxu0 }
0x143f   :  { %v3127_v7 = vpop.f32.mrb[94].mxu0 }
0x1440   :  { %v3924_v8 = vpop.f32.mrb[95].mxu0  ;;  %v3133_v9 = vsel %vm3132_vm14, %v3125_v34, 0.0 }
0x1441   :  { %3134 = vadd.xlane.f32.xlu0 %v3133_v9 }
0x14ce   :  { %v3135_v21 = vpop.xlane.xlu0 %3134 }
0x14cf   :  { %v3136_v44 = vmul.f32 0.03125, %v3135_v21 }
0x14d1   :  { %v3137_v15 = vsub.f32 %v3125_v34, %v3136_v44 }
0x14d3   :  { %v3138_v58 = vmul.f32 %v3137_v15, %v3137_v15 }
0x14d5   :  { %v3139_v18 = vsel %vm3132_vm14, %v3138_v58, 0.0 }
0x14d6   :  { %3140 = vadd.xlane.f32.xlu1 %v3139_v18 }
0x1563   :  { %v3141_v1 = vpop.xlane.xlu1 %3140 }
0x1564   :  { %v3142_v19 = vmul.f32 0.03125, %v3141_v1 }
0x1566   :  { %v3143_v16 = vadd.f32 1e-12, %v3142_v19 }
0x1568   :  { %4270 = vrsqrt.f32 %v3143_v16 }
0x1572   :  { %v4271_v46 = vpop.eup %4270 }
0x1573   :  { %v3145_v20 = vmul.f32 %v4271_v46, %v3137_v15 }
0x1575   :  { %v3150_v13 = vmul.f32 %v3384_v47, %v3145_v20 }
0x1577   :  { %v3155_v10 = vadd.f32 %v3385_v22, %v3150_v13 }
0x1579   :  { %3156 = vst.msk [vmem:[#allocation2] sm:$0x3f] %vm3132_vm14, %v3155_v10 }
0x157a   :  { %4289 = shalt.err (!%p4286_p4)
}
0x157b   :  { %s4290_s18 = scalar_lea.hbm %s5332_s9, 128 }
0x157c   :  { %p4291_p5 = scmp.ne.s32.totalorder %s5332_s9, %s4290_s18  ;;  %p4294_p6 = scmp.lt.u32.totalorder %s4290_s18, %s5332_s9 }
0x157e   :  { %p4296_p7 = pnand %p4294_p6, %p4291_p5 }
0x1580   :  { %4299 = shalt.err (!%p4296_p7)
}
0x1581   :  { %3166 = dma.vmem_to_hbm [thread:$0]  %s3164_s14, 128, %s5332_s9, [#allocation3]  }
0x1582   :  { %4300 = dma.done.wait [#allocation3], 128  }
0x1583   :  { %4301 = vsyncadd [#allocation3], 4294967168 }
0x1584   :  { %3170 = vsyncpa [#allocation3], 1 }

</bundles_post_ra>
